<compile_context>
chip_gen: v7x
topology: tpu7x:2x2x1
jax: 0.10.0
libtpu: 0.0.40
codegen_flags: <defaults>
</compile_context>

<pallas_src>
import jax
import jax.numpy as jnp
from jax.experimental import pallas as pl
from jax.experimental.pallas import tpu as pltpu

# Module hyperparameters (from the PyTorch script)
NUM_FILTERS = 8
HIDDEN_DIM = 20 * NUM_FILTERS   # hidden_dim1..4 = 160
LATENT_DIM = 10 * NUM_FILTERS   # 80
LATENT_PAD = 128                # lane-padded latent (80 -> 128)
INPUT_DIM = 160                 # encoder input_dim (chosen; not fixed by snippet)
OUTPUT_DIM = 160                # decoder output_dim (chosen to mirror input)


def _round_up(x, m):
    return (x + m - 1) // m * m


def vae_kernel(
    # inputs
    x_ref, eps_ref,
    we1, be1, we2, be2, we3, be3, we4, be4,   # encoder hidden layers (bf16 W, f32 b)
    wmv, bmv,                                 # fused mean||log_var head (160 -> 256)
    wd1, bd1, wd2, bd2, wd3, bd3, wd4, bd4,   # decoder hidden layers
    wo, bo,                                   # decoder output layer
    # outputs
    xhat_ref, mv_ref,
):
    f32 = jnp.float32
    bf16 = jnp.bfloat16

    def linear(h, w_ref, b_ref):
        # bf16 operands feed the MXU; f32 accumulation; f32 bias add.
        return jnp.dot(h.astype(bf16), w_ref[...],
                       preferred_element_type=f32) + b_ref[...]

    x = x_ref[...].astype(f32)

    # ---- Encoder ----
    h = jnp.tanh(linear(x, we1, be1))
    h = jnp.tanh(linear(h, we2, be2))
    h = jnp.tanh(linear(h, we3, be3))
    h = jnp.tanh(linear(h, we4, be4))

    # Fused mean||log_var head: one lane-dense (TILE_B, 256) result, split at
    # the 128-lane boundary (no cross-lane shuffle).
    mv = linear(h, wmv, bmv)
    mean = mv[:, :LATENT_PAD]
    log_var = mv[:, LATENT_PAD:]

    # ---- Reparameterization (f32): z = mean + exp(0.5*log_var) * eps ----
    z = mean + jnp.exp(0.5 * log_var) * eps_ref[...].astype(f32)

    # ---- Decoder (wd1 has zero rows for the padded latent lanes) ----
    d = jnp.tanh(linear(z, wd1, bd1))
    d = jnp.tanh(linear(d, wd2, bd2))
    d = jnp.tanh(linear(d, wd3, bd3))
    d = jnp.tanh(linear(d, wd4, bd4))
    x_hat = linear(d, wo, bo)

    xhat_ref[...] = x_hat.astype(xhat_ref.dtype)
    mv_ref[...] = mv.astype(mv_ref.dtype)


def pack_params(params):
    """Logical f32 params -> kernel params (bf16 weights, fused/padded head)."""
    (we1, be1, we2, be2, we3, be3, we4, be4,
     wm, bm, wv, bv,
     wd1, bd1, wd2, bd2, wd3, bd3, wd4, bd4, wo, bo) = params

    bf16 = jnp.bfloat16
    f32 = jnp.float32

    def w(a):
        return a.astype(bf16)

    def b(a):
        return a.reshape(1, -1).astype(f32)

    # Fused + lane-padded mean/log_var head: (HIDDEN, 2*LATENT_PAD)
    wmv = jnp.zeros((HIDDEN_DIM, 2 * LATENT_PAD), f32)
    wmv = wmv.at[:, :LATENT_DIM].set(wm)
    wmv = wmv.at[:, LATENT_PAD:LATENT_PAD + LATENT_DIM].set(wv)
    bmv = jnp.zeros((1, 2 * LATENT_PAD), f32)
    bmv = bmv.at[:, :LATENT_DIM].set(bm.reshape(1, -1))
    bmv = bmv.at[:, LATENT_PAD:LATENT_PAD + LATENT_DIM].set(bv.reshape(1, -1))

    # Decoder first layer: zero rows for padded latent lanes 80..127 so the
    # padded z lanes contribute nothing.
    wd1p = jnp.zeros((LATENT_PAD, HIDDEN_DIM), f32).at[:LATENT_DIM].set(wd1)

    return [
        w(we1), b(be1), w(we2), b(be2), w(we3), b(be3), w(we4), b(be4),
        w(wmv), bmv,
        w(wd1p), b(bd1), w(wd2), b(bd2), w(wd3), b(bd3), w(wd4), b(bd4),
        w(wo), b(bo),
    ]


def vae_forward(x, eps, params, *, tile_b=128):
    """x: (B, INPUT_DIM), eps: (B, LATENT_DIM), params: flat list of 22 f32 arrays."""
    B = x.shape[0]
    kparams = pack_params(params)

    TILE_B = min(tile_b, _round_up(B, 8))
    B_pad = _round_up(B, TILE_B)

    x_p = jnp.zeros((B_pad, INPUT_DIM), jnp.float32).at[:B].set(x)
    eps_p = jnp.zeros((B_pad, LATENT_PAD), jnp.float32).at[:B, :LATENT_DIM].set(eps)

    grid = (B_pad // TILE_B,)

    def batch_spec(d):
        return pl.BlockSpec((TILE_B, d), lambda i: (i, 0))

    def const_spec(shape):
        # constant block index -> stays VMEM-resident, no re-DMA per step
        return pl.BlockSpec(shape, lambda i: (0, 0))

    in_specs = [batch_spec(INPUT_DIM), batch_spec(LATENT_PAD)]
    in_specs += [const_spec(tuple(p.shape)) for p in kparams]

    out_specs = (batch_spec(OUTPUT_DIM), batch_spec(2 * LATENT_PAD))
    out_shape = (
        jax.ShapeDtypeStruct((B_pad, OUTPUT_DIM), jnp.float32),      # x_hat
        jax.ShapeDtypeStruct((B_pad, 2 * LATENT_PAD), jnp.float32),  # mean||log_var slab
    )

    # Advisory cost estimate so XLA schedules around the custom call sensibly.
    layer_dims = ([(INPUT_DIM, HIDDEN_DIM)] + [(HIDDEN_DIM, HIDDEN_DIM)] * 3
                  + [(HIDDEN_DIM, 2 * LATENT_PAD)]
                  + [(LATENT_PAD, HIDDEN_DIM)] + [(HIDDEN_DIM, HIDDEN_DIM)] * 3
                  + [(HIDDEN_DIM, OUTPUT_DIM)])
    flops = 2 * B_pad * sum(di * do for di, do in layer_dims)
    transcendentals = B_pad * (8 * HIDDEN_DIM + LATENT_PAD)
    param_bytes = sum(int(p.size) * p.dtype.itemsize for p in kparams)
    io_bytes = 4 * (int(x_p.size) + int(eps_p.size)
                    + B_pad * OUTPUT_DIM + B_pad * 2 * LATENT_PAD)
    cost = pl.CostEstimate(flops=flops, transcendentals=transcendentals,
                           bytes_accessed=param_bytes + io_bytes)

    xhat_p, mv_p = pl.pallas_call(
        vae_kernel,
        grid=grid,
        in_specs=in_specs,
        out_specs=out_specs,
        out_shape=out_shape,
        compiler_params=pltpu.CompilerParams(
            dimension_semantics=("parallel",)),
        cost_estimate=cost,
    )(x_p, eps_p, *kparams)

    x_hat = xhat_p[:B]
    mean = mv_p[:B, :LATENT_DIM]
    log_var = mv_p[:B, LATENT_PAD:LATENT_PAD + LATENT_DIM]
    return x_hat, mean, log_var


def init_params(key):
    """Deterministic init. Weights stored as (in_features, out_features), f32."""
    dims = [
        # encoder
        (INPUT_DIM, HIDDEN_DIM), (HIDDEN_DIM, HIDDEN_DIM),
        (HIDDEN_DIM, HIDDEN_DIM), (HIDDEN_DIM, HIDDEN_DIM),
        (HIDDEN_DIM, LATENT_DIM), (HIDDEN_DIM, LATENT_DIM),
        # decoder
        (LATENT_DIM, HIDDEN_DIM), (HIDDEN_DIM, HIDDEN_DIM),
        (HIDDEN_DIM, HIDDEN_DIM), (HIDDEN_DIM, HIDDEN_DIM),
        (HIDDEN_DIM, OUTPUT_DIM),
    ]
    params = []
    keys = jax.random.split(key, len(dims))
    for k, (d_in, d_out) in zip(keys, dims):
        w = jax.random.normal(k, (d_in, d_out), dtype=jnp.float32) * 0.05
        b = jnp.zeros((1, d_out), dtype=jnp.float32)
        params.append(w)
        params.append(b)
    return params


def vae_reference(x, eps, params):
    """Pure-JAX f32 reference for validation."""
    (we1, be1, we2, be2, we3, be3, we4, be4,
     wm, bm, wv, bv,
     wd1, bd1, wd2, bd2, wd3, bd3, wd4, bd4, wo, bo) = params
    h = jnp.tanh(x @ we1 + be1)
    h = jnp.tanh(h @ we2 + be2)
    h = jnp.tanh(h @ we3 + be3)
    h = jnp.tanh(h @ we4 + be4)
    mean = h @ wm + bm
    log_var = h @ wv + bv
    z = mean + jnp.exp(0.5 * log_var) * eps
    d = jnp.tanh(z @ wd1 + bd1)
    d = jnp.tanh(d @ wd2 + bd2)
    d = jnp.tanh(d @ wd3 + bd3)
    d = jnp.tanh(d @ wd4 + bd4)
    x_hat = d @ wo + bo
    return x_hat, mean, log_var


if __name__ == "__main__":
    key = jax.random.PRNGKey(0)
    k_param, k_x, k_eps = jax.random.split(key, 3)

    B = 256  # small, but exercises the batch grid (2 steps of TILE_B=128)
    params = init_params(k_param)
    x = jax.random.normal(k_x, (B, INPUT_DIM), dtype=jnp.float32)
    # Reparameterization noise (torch.randn_like equivalent), drawn host-side
    # so the kernel is deterministic and matches the reference exactly.
    eps = jax.random.normal(k_eps, (B, LATENT_DIM), dtype=jnp.float32)

    x_hat, mean, log_var = vae_forward(x, eps, params)
    jax.block_until_ready((x_hat, mean, log_var))

    # Validate against f32 pure-JAX reference. Matmul operands are bf16 inside
    # the kernel, so tolerances are looser than a pure-f32 comparison.
    rx, rm, rlv = vae_reference(x, eps, params)
    assert jnp.allclose(mean, rm, atol=5e-2, rtol=5e-2)
    assert jnp.allclose(log_var, rlv, atol=5e-2, rtol=5e-2)
    assert jnp.allclose(x_hat, rx, atol=5e-2, rtol=5e-2)

    print("KERNEL_OK")
</pallas_src>

<mosaic_0001>
module attributes {stable_mosaic.version = 11 : i64} {
  func.func @vae_kernel(%arg0: i32, %arg1: memref<128x160xf32, #tpu.memory_space<vmem>>, %arg2: memref<128x128xf32, #tpu.memory_space<vmem>>, %arg3: memref<160x160xbf16, #tpu.memory_space<vmem>>, %arg4: memref<1x160xf32, #tpu.memory_space<vmem>>, %arg5: memref<160x160xbf16, #tpu.memory_space<vmem>>, %arg6: memref<1x160xf32, #tpu.memory_space<vmem>>, %arg7: memref<160x160xbf16, #tpu.memory_space<vmem>>, %arg8: memref<1x160xf32, #tpu.memory_space<vmem>>, %arg9: memref<160x160xbf16, #tpu.memory_space<vmem>>, %arg10: memref<1x160xf32, #tpu.memory_space<vmem>>, %arg11: memref<160x256xbf16, #tpu.memory_space<vmem>>, %arg12: memref<1x256xf32, #tpu.memory_space<vmem>>, %arg13: memref<128x160xbf16, #tpu.memory_space<vmem>>, %arg14: memref<1x160xf32, #tpu.memory_space<vmem>>, %arg15: memref<160x160xbf16, #tpu.memory_space<vmem>>, %arg16: memref<1x160xf32, #tpu.memory_space<vmem>>, %arg17: memref<160x160xbf16, #tpu.memory_space<vmem>>, %arg18: memref<1x160xf32, #tpu.memory_space<vmem>>, %arg19: memref<160x160xbf16, #tpu.memory_space<vmem>>, %arg20: memref<1x160xf32, #tpu.memory_space<vmem>>, %arg21: memref<160x160xbf16, #tpu.memory_space<vmem>>, %arg22: memref<1x160xf32, #tpu.memory_space<vmem>>, %arg23: memref<128x160xf32, #tpu.memory_space<vmem>>, %arg24: memref<128x256xf32, #tpu.memory_space<vmem>>) attributes {dimension_semantics = [#tpu.dimension_semantics<parallel>], iteration_bounds = array<i64: 2>, scalar_prefetch = 0 : i64, scratch_operands = 0 : i64, tpu.core_type = #tpu.core_type<tc>, window_params = [{transform_indices = @transform_0, window_bounds = array<i64: 128, 160>}, {transform_indices = @transform_1, window_bounds = array<i64: 128, 128>}, {pipeline_mode = #tpu.pipeline_mode<synchronous>, transform_indices = @transform_2, window_bounds = array<i64: 160, 160>}, {pipeline_mode = #tpu.pipeline_mode<synchronous>, transform_indices = @transform_3, window_bounds = array<i64: 1, 160>}, {pipeline_mode = #tpu.pipeline_mode<synchronous>, transform_indices = @transform_4, window_bounds = array<i64: 160, 160>}, {pipeline_mode = #tpu.pipeline_mode<synchronous>, transform_indices = @transform_5, window_bounds = array<i64: 1, 160>}, {pipeline_mode = #tpu.pipeline_mode<synchronous>, transform_indices = @transform_6, window_bounds = array<i64: 160, 160>}, {pipeline_mode = #tpu.pipeline_mode<synchronous>, transform_indices = @transform_7, window_bounds = array<i64: 1, 160>}, {pipeline_mode = #tpu.pipeline_mode<synchronous>, transform_indices = @transform_8, window_bounds = array<i64: 160, 160>}, {pipeline_mode = #tpu.pipeline_mode<synchronous>, transform_indices = @transform_9, window_bounds = array<i64: 1, 160>}, {pipeline_mode = #tpu.pipeline_mode<synchronous>, transform_indices = @transform_10, window_bounds = array<i64: 160, 256>}, {pipeline_mode = #tpu.pipeline_mode<synchronous>, transform_indices = @transform_11, window_bounds = array<i64: 1, 256>}, {pipeline_mode = #tpu.pipeline_mode<synchronous>, transform_indices = @transform_12, window_bounds = array<i64: 128, 160>}, {pipeline_mode = #tpu.pipeline_mode<synchronous>, transform_indices = @transform_13, window_bounds = array<i64: 1, 160>}, {pipeline_mode = #tpu.pipeline_mode<synchronous>, transform_indices = @transform_14, window_bounds = array<i64: 160, 160>}, {pipeline_mode = #tpu.pipeline_mode<synchronous>, transform_indices = @transform_15, window_bounds = array<i64: 1, 160>}, {pipeline_mode = #tpu.pipeline_mode<synchronous>, transform_indices = @transform_16, window_bounds = array<i64: 160, 160>}, {pipeline_mode = #tpu.pipeline_mode<synchronous>, transform_indices = @transform_17, window_bounds = array<i64: 1, 160>}, {pipeline_mode = #tpu.pipeline_mode<synchronous>, transform_indices = @transform_18, window_bounds = array<i64: 160, 160>}, {pipeline_mode = #tpu.pipeline_mode<synchronous>, transform_indices = @transform_19, window_bounds = array<i64: 1, 160>}, {pipeline_mode = #tpu.pipeline_mode<synchronous>, transform_indices = @transform_20, window_bounds = array<i64: 160, 160>}, {pipeline_mode = #tpu.pipeline_mode<synchronous>, transform_indices = @transform_21, window_bounds = array<i64: 1, 160>}, {transform_indices = @transform_22, window_bounds = array<i64: 128, 160>}, {transform_indices = @transform_23, window_bounds = array<i64: 128, 256>}]} {
    %c0 = arith.constant 0 : index
    %c0_0 = arith.constant 0 : index
    %0 = vector.load %arg1[%c0, %c0_0] : memref<128x160xf32, #tpu.memory_space<vmem>>, vector<128x160xf32>
    %1 = arith.truncf %0 : vector<128x160xf32> to vector<128x160xbf16>
    %c0_1 = arith.constant 0 : index
    %c0_2 = arith.constant 0 : index
    %2 = vector.load %arg3[%c0_1, %c0_2] : memref<160x160xbf16, #tpu.memory_space<vmem>>, vector<160x160xbf16>
    %cst = arith.constant dense<0.000000e+00> : vector<128x160xf32>
    %3 = tpu.matmul %1, %2, %cst {dimension_numbers = #tpu.dot_dimension_numbers<[1], [0], [0], [1], [0, 0, 1, 1], [], []>} : vector<128x160xbf16>, vector<160x160xbf16>, vector<128x160xf32> -> vector<128x160xf32>
    %c0_3 = arith.constant 0 : index
    %c0_4 = arith.constant 0 : index
    %4 = vector.load %arg4[%c0_3, %c0_4] : memref<1x160xf32, #tpu.memory_space<vmem>>, vector<1x160xf32>
    %5 = vector.broadcast %4 : vector<1x160xf32> to vector<128x160xf32>
    %6 = arith.addf %3, %5 : vector<128x160xf32>
    %7 = math.tanh %6 : vector<128x160xf32>
    %8 = arith.truncf %7 : vector<128x160xf32> to vector<128x160xbf16>
    %c0_5 = arith.constant 0 : index
    %c0_6 = arith.constant 0 : index
    %9 = vector.load %arg5[%c0_5, %c0_6] : memref<160x160xbf16, #tpu.memory_space<vmem>>, vector<160x160xbf16>
    %cst_7 = arith.constant dense<0.000000e+00> : vector<128x160xf32>
    %10 = tpu.matmul %8, %9, %cst_7 {dimension_numbers = #tpu.dot_dimension_numbers<[1], [0], [0], [1], [0, 0, 1, 1], [], []>} : vector<128x160xbf16>, vector<160x160xbf16>, vector<128x160xf32> -> vector<128x160xf32>
    %c0_8 = arith.constant 0 : index
    %c0_9 = arith.constant 0 : index
    %11 = vector.load %arg6[%c0_8, %c0_9] : memref<1x160xf32, #tpu.memory_space<vmem>>, vector<1x160xf32>
    %12 = vector.broadcast %11 : vector<1x160xf32> to vector<128x160xf32>
    %13 = arith.addf %10, %12 : vector<128x160xf32>
    %14 = math.tanh %13 : vector<128x160xf32>
    %15 = arith.truncf %14 : vector<128x160xf32> to vector<128x160xbf16>
    %c0_10 = arith.constant 0 : index
    %c0_11 = arith.constant 0 : index
    %16 = vector.load %arg7[%c0_10, %c0_11] : memref<160x160xbf16, #tpu.memory_space<vmem>>, vector<160x160xbf16>
    %cst_12 = arith.constant dense<0.000000e+00> : vector<128x160xf32>
    %17 = tpu.matmul %15, %16, %cst_12 {dimension_numbers = #tpu.dot_dimension_numbers<[1], [0], [0], [1], [0, 0, 1, 1], [], []>} : vector<128x160xbf16>, vector<160x160xbf16>, vector<128x160xf32> -> vector<128x160xf32>
    %c0_13 = arith.constant 0 : index
    %c0_14 = arith.constant 0 : index
    %18 = vector.load %arg8[%c0_13, %c0_14] : memref<1x160xf32, #tpu.memory_space<vmem>>, vector<1x160xf32>
    %19 = vector.broadcast %18 : vector<1x160xf32> to vector<128x160xf32>
    %20 = arith.addf %17, %19 : vector<128x160xf32>
    %21 = math.tanh %20 : vector<128x160xf32>
    %22 = arith.truncf %21 : vector<128x160xf32> to vector<128x160xbf16>
    %c0_15 = arith.constant 0 : index
    %c0_16 = arith.constant 0 : index
    %23 = vector.load %arg9[%c0_15, %c0_16] : memref<160x160xbf16, #tpu.memory_space<vmem>>, vector<160x160xbf16>
    %cst_17 = arith.constant dense<0.000000e+00> : vector<128x160xf32>
    %24 = tpu.matmul %22, %23, %cst_17 {dimension_numbers = #tpu.dot_dimension_numbers<[1], [0], [0], [1], [0, 0, 1, 1], [], []>} : vector<128x160xbf16>, vector<160x160xbf16>, vector<128x160xf32> -> vector<128x160xf32>
    %c0_18 = arith.constant 0 : index
    %c0_19 = arith.constant 0 : index
    %25 = vector.load %arg10[%c0_18, %c0_19] : memref<1x160xf32, #tpu.memory_space<vmem>>, vector<1x160xf32>
    %26 = vector.broadcast %25 : vector<1x160xf32> to vector<128x160xf32>
    %27 = arith.addf %24, %26 : vector<128x160xf32>
    %28 = math.tanh %27 : vector<128x160xf32>
    %29 = arith.truncf %28 : vector<128x160xf32> to vector<128x160xbf16>
    %c0_20 = arith.constant 0 : index
    %c0_21 = arith.constant 0 : index
    %30 = vector.load %arg11[%c0_20, %c0_21] : memref<160x256xbf16, #tpu.memory_space<vmem>>, vector<160x256xbf16>
    %cst_22 = arith.constant dense<0.000000e+00> : vector<128x256xf32>
    %31 = tpu.matmul %29, %30, %cst_22 {dimension_numbers = #tpu.dot_dimension_numbers<[1], [0], [0], [1], [0, 0, 1, 1], [], []>} : vector<128x160xbf16>, vector<160x256xbf16>, vector<128x256xf32> -> vector<128x256xf32>
    %c0_23 = arith.constant 0 : index
    %c0_24 = arith.constant 0 : index
    %32 = vector.load %arg12[%c0_23, %c0_24] : memref<1x256xf32, #tpu.memory_space<vmem>>, vector<1x256xf32>
    %33 = vector.broadcast %32 : vector<1x256xf32> to vector<128x256xf32>
    %34 = arith.addf %31, %33 : vector<128x256xf32>
    %35 = vector.extract_strided_slice %34 {offsets = [0, 0], sizes = [128, 128], strides = [1, 1]} : vector<128x256xf32> to vector<128x128xf32>
    %36 = vector.extract_strided_slice %34 {offsets = [0, 128], sizes = [128, 128], strides = [1, 1]} : vector<128x256xf32> to vector<128x128xf32>
    %cst_25 = arith.constant 5.000000e-01 : f32
    %37 = vector.broadcast %cst_25 : f32 to vector<128x128xf32>
    %38 = arith.mulf %37, %36 : vector<128x128xf32>
    %39 = math.exp %38 : vector<128x128xf32>
    %c0_26 = arith.constant 0 : index
    %c0_27 = arith.constant 0 : index
    %40 = vector.load %arg2[%c0_26, %c0_27] : memref<128x128xf32, #tpu.memory_space<vmem>>, vector<128x128xf32>
    %41 = arith.mulf %39, %40 : vector<128x128xf32>
    %42 = arith.addf %35, %41 : vector<128x128xf32>
    %43 = arith.truncf %42 : vector<128x128xf32> to vector<128x128xbf16>
    %c0_28 = arith.constant 0 : index
    %c0_29 = arith.constant 0 : index
    %44 = vector.load %arg13[%c0_28, %c0_29] : memref<128x160xbf16, #tpu.memory_space<vmem>>, vector<128x160xbf16>
    %cst_30 = arith.constant dense<0.000000e+00> : vector<128x160xf32>
    %45 = tpu.matmul %43, %44, %cst_30 {dimension_numbers = #tpu.dot_dimension_numbers<[1], [0], [0], [1], [0, 0, 1, 1], [], []>} : vector<128x128xbf16>, vector<128x160xbf16>, vector<128x160xf32> -> vector<128x160xf32>
    %c0_31 = arith.constant 0 : index
    %c0_32 = arith.constant 0 : index
    %46 = vector.load %arg14[%c0_31, %c0_32] : memref<1x160xf32, #tpu.memory_space<vmem>>, vector<1x160xf32>
    %47 = vector.broadcast %46 : vector<1x160xf32> to vector<128x160xf32>
    %48 = arith.addf %45, %47 : vector<128x160xf32>
    %49 = math.tanh %48 : vector<128x160xf32>
    %50 = arith.truncf %49 : vector<128x160xf32> to vector<128x160xbf16>
    %c0_33 = arith.constant 0 : index
    %c0_34 = arith.constant 0 : index
    %51 = vector.load %arg15[%c0_33, %c0_34] : memref<160x160xbf16, #tpu.memory_space<vmem>>, vector<160x160xbf16>
    %cst_35 = arith.constant dense<0.000000e+00> : vector<128x160xf32>
    %52 = tpu.matmul %50, %51, %cst_35 {dimension_numbers = #tpu.dot_dimension_numbers<[1], [0], [0], [1], [0, 0, 1, 1], [], []>} : vector<128x160xbf16>, vector<160x160xbf16>, vector<128x160xf32> -> vector<128x160xf32>
    %c0_36 = arith.constant 0 : index
    %c0_37 = arith.constant 0 : index
    %53 = vector.load %arg16[%c0_36, %c0_37] : memref<1x160xf32, #tpu.memory_space<vmem>>, vector<1x160xf32>
    %54 = vector.broadcast %53 : vector<1x160xf32> to vector<128x160xf32>
    %55 = arith.addf %52, %54 : vector<128x160xf32>
    %56 = math.tanh %55 : vector<128x160xf32>
    %57 = arith.truncf %56 : vector<128x160xf32> to vector<128x160xbf16>
    %c0_38 = arith.constant 0 : index
    %c0_39 = arith.constant 0 : index
    %58 = vector.load %arg17[%c0_38, %c0_39] : memref<160x160xbf16, #tpu.memory_space<vmem>>, vector<160x160xbf16>
    %cst_40 = arith.constant dense<0.000000e+00> : vector<128x160xf32>
    %59 = tpu.matmul %57, %58, %cst_40 {dimension_numbers = #tpu.dot_dimension_numbers<[1], [0], [0], [1], [0, 0, 1, 1], [], []>} : vector<128x160xbf16>, vector<160x160xbf16>, vector<128x160xf32> -> vector<128x160xf32>
    %c0_41 = arith.constant 0 : index
    %c0_42 = arith.constant 0 : index
    %60 = vector.load %arg18[%c0_41, %c0_42] : memref<1x160xf32, #tpu.memory_space<vmem>>, vector<1x160xf32>
    %61 = vector.broadcast %60 : vector<1x160xf32> to vector<128x160xf32>
    %62 = arith.addf %59, %61 : vector<128x160xf32>
    %63 = math.tanh %62 : vector<128x160xf32>
    %64 = arith.truncf %63 : vector<128x160xf32> to vector<128x160xbf16>
    %c0_43 = arith.constant 0 : index
    %c0_44 = arith.constant 0 : index
    %65 = vector.load %arg19[%c0_43, %c0_44] : memref<160x160xbf16, #tpu.memory_space<vmem>>, vector<160x160xbf16>
    %cst_45 = arith.constant dense<0.000000e+00> : vector<128x160xf32>
    %66 = tpu.matmul %64, %65, %cst_45 {dimension_numbers = #tpu.dot_dimension_numbers<[1], [0], [0], [1], [0, 0, 1, 1], [], []>} : vector<128x160xbf16>, vector<160x160xbf16>, vector<128x160xf32> -> vector<128x160xf32>
    %c0_46 = arith.constant 0 : index
    %c0_47 = arith.constant 0 : index
    %67 = vector.load %arg20[%c0_46, %c0_47] : memref<1x160xf32, #tpu.memory_space<vmem>>, vector<1x160xf32>
    %68 = vector.broadcast %67 : vector<1x160xf32> to vector<128x160xf32>
    %69 = arith.addf %66, %68 : vector<128x160xf32>
    %70 = math.tanh %69 : vector<128x160xf32>
    %71 = arith.truncf %70 : vector<128x160xf32> to vector<128x160xbf16>
    %c0_48 = arith.constant 0 : index
    %c0_49 = arith.constant 0 : index
    %72 = vector.load %arg21[%c0_48, %c0_49] : memref<160x160xbf16, #tpu.memory_space<vmem>>, vector<160x160xbf16>
    %cst_50 = arith.constant dense<0.000000e+00> : vector<128x160xf32>
    %73 = tpu.matmul %71, %72, %cst_50 {dimension_numbers = #tpu.dot_dimension_numbers<[1], [0], [0], [1], [0, 0, 1, 1], [], []>} : vector<128x160xbf16>, vector<160x160xbf16>, vector<128x160xf32> -> vector<128x160xf32>
    %c0_51 = arith.constant 0 : index
    %c0_52 = arith.constant 0 : index
    %74 = vector.load %arg22[%c0_51, %c0_52] : memref<1x160xf32, #tpu.memory_space<vmem>>, vector<1x160xf32>
    %75 = vector.broadcast %74 : vector<1x160xf32> to vector<128x160xf32>
    %76 = arith.addf %73, %75 : vector<128x160xf32>
    %c0_53 = arith.constant 0 : index
    %c0_54 = arith.constant 0 : index
    %77 = vector.load %arg23[%c0_53, %c0_54] : memref<128x160xf32, #tpu.memory_space<vmem>>, vector<128x160xf32>
    tpu.vector_store %arg23[%c0_53, %c0_54], %76 {strides = array<i32>} : memref<128x160xf32, #tpu.memory_space<vmem>>, vector<128x160xf32>,
    %c0_55 = arith.constant 0 : index
    %c0_56 = arith.constant 0 : index
    %78 = vector.load %arg24[%c0_55, %c0_56] : memref<128x256xf32, #tpu.memory_space<vmem>>, vector<128x256xf32>
    tpu.vector_store %arg24[%c0_55, %c0_56], %34 {strides = array<i32>} : memref<128x256xf32, #tpu.memory_space<vmem>>, vector<128x256xf32>,
    return
  }
  func.func @transform_0(%arg0: i32) -> (i32, i32) {
    %c0_i32 = arith.constant 0 : i32
    %c0_i32_0 = arith.constant 0 : i32
    return %arg0, %c0_i32 : i32, i32
  }
  func.func @transform_1(%arg0: i32) -> (i32, i32) {
    %c0_i32 = arith.constant 0 : i32
    %c0_i32_0 = arith.constant 0 : i32
    return %arg0, %c0_i32 : i32, i32
  }
  func.func @transform_2(%arg0: i32) -> (i32, i32) {
    %c0_i32 = arith.constant 0 : i32
    %c0_i32_0 = arith.constant 0 : i32
    %c0_i32_1 = arith.constant 0 : i32
    return %c0_i32, %c0_i32_0 : i32, i32
  }
  func.func @transform_3(%arg0: i32) -> (i32, i32) {
    %c0_i32 = arith.constant 0 : i32
    %c0_i32_0 = arith.constant 0 : i32
    %c0_i32_1 = arith.constant 0 : i32
    return %c0_i32, %c0_i32_0 : i32, i32
  }
  func.func @transform_4(%arg0: i32) -> (i32, i32) {
    %c0_i32 = arith.constant 0 : i32
    %c0_i32_0 = arith.constant 0 : i32
    %c0_i32_1 = arith.constant 0 : i32
    return %c0_i32, %c0_i32_0 : i32, i32
  }
  func.func @transform_5(%arg0: i32) -> (i32, i32) {
    %c0_i32 = arith.constant 0 : i32
    %c0_i32_0 = arith.constant 0 : i32
    %c0_i32_1 = arith.constant 0 : i32
    return %c0_i32, %c0_i32_0 : i32, i32
  }
  func.func @transform_6(%arg0: i32) -> (i32, i32) {
    %c0_i32 = arith.constant 0 : i32
    %c0_i32_0 = arith.constant 0 : i32
    %c0_i32_1 = arith.constant 0 : i32
    return %c0_i32, %c0_i32_0 : i32, i32
  }
  func.func @transform_7(%arg0: i32) -> (i32, i32) {
    %c0_i32 = arith.constant 0 : i32
    %c0_i32_0 = arith.constant 0 : i32
    %c0_i32_1 = arith.constant 0 : i32
    return %c0_i32, %c0_i32_0 : i32, i32
  }
  func.func @transform_8(%arg0: i32) -> (i32, i32) {
    %c0_i32 = arith.constant 0 : i32
    %c0_i32_0 = arith.constant 0 : i32
    %c0_i32_1 = arith.constant 0 : i32
    return %c0_i32, %c0_i32_0 : i32, i32
  }
  func.func @transform_9(%arg0: i32) -> (i32, i32) {
    %c0_i32 = arith.constant 0 : i32
    %c0_i32_0 = arith.constant 0 : i32
    %c0_i32_1 = arith.constant 0 : i32
    return %c0_i32, %c0_i32_0 : i32, i32
  }
  func.func @transform_10(%arg0: i32) -> (i32, i32) {
    %c0_i32 = arith.constant 0 : i32
    %c0_i32_0 = arith.constant 0 : i32
    %c0_i32_1 = arith.constant 0 : i32
    return %c0_i32, %c0_i32_0 : i32, i32
  }
  func.func @transform_11(%arg0: i32) -> (i32, i32) {
    %c0_i32 = arith.constant 0 : i32
    %c0_i32_0 = arith.constant 0 : i32
    %c0_i32_1 = arith.constant 0 : i32
    return %c0_i32, %c0_i32_0 : i32, i32
  }
  func.func @transform_12(%arg0: i32) -> (i32, i32) {
    %c0_i32 = arith.constant 0 : i32
    %c0_i32_0 = arith.constant 0 : i32
    %c0_i32_1 = arith.constant 0 : i32
    return %c0_i32, %c0_i32_0 : i32, i32
  }
  func.func @transform_13(%arg0: i32) -> (i32, i32) {
    %c0_i32 = arith.constant 0 : i32
    %c0_i32_0 = arith.constant 0 : i32
    %c0_i32_1 = arith.constant 0 : i32
    return %c0_i32, %c0_i32_0 : i32, i32
  }
  func.func @transform_14(%arg0: i32) -> (i32, i32) {
    %c0_i32 = arith.constant 0 : i32
    %c0_i32_0 = arith.constant 0 : i32
    %c0_i32_1 = arith.constant 0 : i32
    return %c0_i32, %c0_i32_0 : i32, i32
  }
  func.func @transform_15(%arg0: i32) -> (i32, i32) {
    %c0_i32 = arith.constant 0 : i32
    %c0_i32_0 = arith.constant 0 : i32
    %c0_i32_1 = arith.constant 0 : i32
    return %c0_i32, %c0_i32_0 : i32, i32
  }
  func.func @transform_16(%arg0: i32) -> (i32, i32) {
    %c0_i32 = arith.constant 0 : i32
    %c0_i32_0 = arith.constant 0 : i32
    %c0_i32_1 = arith.constant 0 : i32
    return %c0_i32, %c0_i32_0 : i32, i32
  }
  func.func @transform_17(%arg0: i32) -> (i32, i32) {
    %c0_i32 = arith.constant 0 : i32
    %c0_i32_0 = arith.constant 0 : i32
    %c0_i32_1 = arith.constant 0 : i32
    return %c0_i32, %c0_i32_0 : i32, i32
  }
  func.func @transform_18(%arg0: i32) -> (i32, i32) {
    %c0_i32 = arith.constant 0 : i32
    %c0_i32_0 = arith.constant 0 : i32
    %c0_i32_1 = arith.constant 0 : i32
    return %c0_i32, %c0_i32_0 : i32, i32
  }
  func.func @transform_19(%arg0: i32) -> (i32, i32) {
    %c0_i32 = arith.constant 0 : i32
    %c0_i32_0 = arith.constant 0 : i32
    %c0_i32_1 = arith.constant 0 : i32
    return %c0_i32, %c0_i32_0 : i32, i32
  }
  func.func @transform_20(%arg0: i32) -> (i32, i32) {
    %c0_i32 = arith.constant 0 : i32
    %c0_i32_0 = arith.constant 0 : i32
    %c0_i32_1 = arith.constant 0 : i32
    return %c0_i32, %c0_i32_0 : i32, i32
  }
  func.func @transform_21(%arg0: i32) -> (i32, i32) {
    %c0_i32 = arith.constant 0 : i32
    %c0_i32_0 = arith.constant 0 : i32
    %c0_i32_1 = arith.constant 0 : i32
    return %c0_i32, %c0_i32_0 : i32, i32
  }
  func.func @transform_22(%arg0: i32) -> (i32, i32) {
    %c0_i32 = arith.constant 0 : i32
    %c0_i32_0 = arith.constant 0 : i32
    return %arg0, %c0_i32 : i32, i32
  }
  func.func @transform_23(%arg0: i32) -> (i32, i32) {
    %c0_i32 = arith.constant 0 : i32
    %c0_i32_0 = arith.constant 0 : i32
    return %arg0, %c0_i32 : i32, i32
  }
}

</mosaic_0001>

<bundles_post_ra>
// kernel: tpu_custom_call.1
= control target key start
LH: loop header
LB: loop body
LE: loop exit
PB: predicated region body
PF: predicated region fallthrough
CT: control target
= control target key end

     0   :  { %s7039_s0 = inlined_call_operand.vmem [shape: f32[256,160], index: 0, kind: input, shape index: {}]   ;;  %s7040_s1 = inlined_call_operand.vmem [shape: f32[256,128], index: 1, kind: input, shape index: {}]   ;;  %s7041_s2 = inlined_call_operand.vmem [shape: bf16[160,160], index: 2, kind: input, shape index: {}]   ;;  %s7042_s3 = inlined_call_operand.vmem [shape: f32[1,160], index: 3, kind: input, shape index: {}]   ;;  %s7043_s4 = inlined_call_operand.vmem [shape: bf16[160,160], index: 4, kind: input, shape index: {}]   ;;  %s7044_s5 = inlined_call_operand.vmem [shape: f32[1,160], index: 5, kind: input, shape index: {}]   ;;  %s7045_s6 = inlined_call_operand.vmem [shape: bf16[160,160], index: 6, kind: input, shape index: {}]   ;;  %s7046_s7 = inlined_call_operand.vmem [shape: f32[1,160], index: 7, kind: input, shape index: {}]   ;;  %s7047_s8 = inlined_call_operand.vmem [shape: bf16[160,160], index: 8, kind: input, shape index: {}]   ;;  %s7048_s9 = inlined_call_operand.vmem [shape: f32[1,160], index: 9, kind: input, shape index: {}]   ;;  %s7049_s10 = inlined_call_operand.vmem [shape: bf16[160,256], index: 10, kind: input, shape index: {}]   ;;  %s7050_s11 = inlined_call_operand.vmem [shape: f32[1,256], index: 11, kind: input, shape index: {}]   ;;  %s7051_s12 = inlined_call_operand.vmem [shape: bf16[128,160], index: 12, kind: input, shape index: {}]   ;;  %s7052_s13 = inlined_call_operand.vmem [shape: f32[1,160], index: 13, kind: input, shape index: {}]   ;;  %s7053_s14 = inlined_call_operand.hbm [shape: bf16[160,160], index: 14, kind: input, shape index: {}]   ;;  %s7054_s15 = inlined_call_operand.vmem [shape: f32[1,160], index: 15, kind: input, shape index: {}]   ;;  %s7055_s16 = inlined_call_operand.hbm [shape: bf16[160,160], index: 16, kind: input, shape index: {}]   ;;  %s7056_s17 = inlined_call_operand.vmem [shape: f32[1,160], index: 17, kind: input, shape index: {}]   ;;  %s7057_s18 = inlined_call_operand.hbm [shape: bf16[160,160], index: 18, kind: input, shape index: {}]   ;;  %s7058_s19 = inlined_call_operand.vmem [shape: f32[1,160], index: 19, kind: input, shape index: {}]   ;;  %s7059_s20 = inlined_call_operand.hbm [shape: bf16[160,160], index: 20, kind: input, shape index: {}]   ;;  %s7060_s21 = inlined_call_operand.vmem [shape: f32[1,160], index: 21, kind: input, shape index: {}]   ;;  %s7061_s22 = inlined_call_operand.vmem [shape: f32[256,160], index: 22, kind: output, shape index: {0}]   ;;  %s7062_s23 = inlined_call_operand.hbm [shape: f32[256,256], index: 23, kind: output, shape index: {1}]  }
   0x1   :  { %7080 = sst [smem:[#allocation22_spill]] %s7039_s0 }
   0x2   :  { %7081 = sst [smem:[#allocation23_spill]] %s7040_s1 }
   0x3   :  { %7082 = sst [smem:[#allocation24_spill]] %s7041_s2 }
   0x4   :  { %7083 = sst [smem:[#allocation25_spill]] %s7042_s3 }
   0x5   :  { %7084 = sst [smem:[#allocation26_spill]] %s7043_s4 }
   0x6   :  { %7085 = sst [smem:[#allocation27_spill]] %s7044_s5 }
   0x7   :  { %7086 = sst [smem:[#allocation28_spill]] %s7045_s6 }
   0x8   :  { %7087 = sst [smem:[#allocation29_spill]] %s7046_s7 }
   0x9   :  { %7088 = sst [smem:[#allocation30_spill]] %s7058_s19 }
   0xa   :  { %7089 = sst [smem:[#allocation31_spill]] %s7060_s21 }
   0xb   :  { %7090 = sst [smem:[#allocation32_spill]] %s7061_s22 }
   0xc   :  { %7091 = sst [smem:[#allocation33_spill]] %s7062_s23 }
   0xd   :  { %29 = vsyncpa [#allocation3], 0 }
   0xe   :  { %30 = vsyncpa [#allocation6], 0 }
   0xf   :  { %31 = vsyncpa [#allocation9], 0 }
  0x10   :  { %32 = vsyncpa [#allocation4], 0 }
  0x11   :  { %34 = vsyncpa [#allocation4 + $0x1], 0  ;;  %s5762_s4 = smov 0   ;;  %s5764_s30 = smov 0  }
  0x12   :  { %s5766_s24 = smov 0   ;;  %s5768_s25 = smov 0  }
  0x13 LB: > { %7092 = sst [smem:[#allocation15_spill]] %s5618_s4  ;;  %s5783_s5 = sadd.s32 4294967295, %s5630_s25   ;;  %s5630_s25 = sphi %s5768_s25, %s7131_s25   ;;  %s5626_s24 = sphi %s5766_s24, %s7133_s24   ;;  %s5622_s30 = sphi %s5764_s30, %s7135_s30   ;;  %s5618_s4 = sphi %s5762_s4, %s7134_s4  }
  0x14   : > { %7093 = sst [smem:[#allocation16_spill]] %s5626_s24  ;;  %s4222_s1 = sadd.s32 4294967294, %s5630_s25  }
  0x15   : > { %7094 = sst [smem:[#allocation17_spill]] %s5630_s25  ;;  %s5787_s26 = sadd.s32 1, %s5630_s25  }
  0x16   : > { %7095 = sst [smem:[#allocation18_spill]] %s5787_s26  ;;  %s545_s2 = sadd.s32 1, %s5626_s24 }
  0x17   : > { %s542_s6 = ssub.s32 %s5630_s25, %s5787_s26  ;;  %p555_p0 = scmp.ne.s32.totalorder %s5626_s24, %s5622_s30 }
  0x18   : > { %p543_p1 = scmp.eq.s32.totalorder %s542_s6, 0  ;;  %p556_p2 = scmp.eq.s32.totalorder %s5783_s5, 1 }
  0x19   : > { %p561_p3 = scmp.ne.s32.totalorder %s5622_s30, %s5618_s4  ;;  %p562_p4 = scmp.eq.s32.totalorder %s4222_s1, 1 }
  0x1a   : > { %s5798_s27 = scalar_select %p543_p1, %s5626_s24, %s545_s2  }
  0x1b   : > { %p5800_p5 = por %p556_p2, %p555_p0  ;;  %p5804_p6 = por %p562_p4, %p561_p3 }
  0x1c   : > { %7096 = sst [smem:[#allocation19_spill]] %s5798_s27  ;;  %p4223_p7 = scmp.ge.s32.totalorder %s5630_s25, 1 }
  0x1d   : > { %s7097_s7 = scalar_select %p5800_p5, 1, 0 }
  0x1e   : > { %s7099_s28 = scalar_select %p5804_p6, 1, 0 }
  0x1f   : > { %7098 = sst [smem:[#allocation20_spill]] %s7097_s7  ;;  %p569_p8 = scmp.lt.s32.totalorder %s5630_s25, 3 }
  0x20   : > { %7100 = sst [smem:[#allocation21_spill]] %s7099_s28  ;;  %p7072_p9 = scmp.eq.s32.totalorder %s5783_s5, 0 }
  0x21   : > { %p5811_p10 = pnand %p4223_p7, %p569_p8  ;;  %s5632_s3 = smov [#allocation5]  }
  0x22   : > { %s633_s0 = sshll.u32 %s5632_s3, 4  ;;  %s5633_s2 = smov [#allocation2]   ;;  %s5817_s0 = int_to_ptr.vmem [resolvable:$true] %s633_s0 }
  0x23   : > { %s7101_s29 = scalar_select %p5811_p10, 1, 0 }
  0x24   : > { %p4539_p11 = pneg %p5811_p10  ;;  %s617_s6 = sshll.u32 %s5633_s2, 4  ;;  %s5825_s6 = int_to_ptr.vmem [resolvable:$true] %s617_s6 }
  0x25   : > { %s5634_s27 = smov [#allocation7]   ;;  %s5444_s4 = scalar_lea.hbm %s7055_s16, 2560 }
  0x26   : > { %p5821_p12 = pnand %p7072_p9, %p4539_p11  ;;  %s5827_s24 = sshll.u32 %s5634_s27, 4  ;;  %s650_s24 = int_to_ptr.vmem [resolvable:$true] %s5827_s24 }
  0x27   : > { %p5445_p13 = scmp.ne.s32.totalorder %s7055_s16, %s5444_s4  ;;  %p5451_p3 = scmp.lt.u32.totalorder %s5444_s4, %s7055_s16 }
  0x28   : > { %p5837_p0 = pneg %p5821_p12 }
  0x2a   : > { %p5447_p1 = pnand %p5837_p0, %p5445_p13 }
  0x2c   : > { %p5448_p2 = pneg %p5447_p1 }
  0x2e   : > { %p5453_p4 = pnand %p5451_p3, %p5448_p2 }
  0x30   : > { %5456 = shalt.err (!%p5453_p4)
}
  0x31   : > { %s5457_s25 = scalar_lea.vmem %s5817_s0, 2560  ;;  %p5465_p9 = scmp.lt.s32.totalorder %s5817_s0, %s5817_s0 }
  0x32   : > { %p5458_p7 = scmp.ne.s32.totalorder %s5817_s0, %s5457_s25  ;;  %p5466_p6 = scmp.lt.s32.totalorder %s5457_s25, %s5457_s25 }
  0x34   : > { %p5460_p8 = pnand %p5458_p7, %p5837_p0  ;;  %p5467_p13 = por %p5466_p6, %p5465_p9 }
  0x36   : > { %p5461_p11 = pneg %p5460_p8 }
  0x38   : > { %p5468_p1 = pnand %p5467_p13, %p5461_p11 }
  0x3a   : > { %5471 = shalt.err (!%p5468_p1)
}
  0x3b   : > { %s5635_s26 = smov 128   ;;  %s5636_s4 = smov 8  }
  0x3c   : > { %4545 = dma.hbm_to_vmem [thread:$0]  (!%p5821_p12), %s7055_s16, 2560, %s5817_s0, [#allocation6], %s5635_s26, %s5635_s26, %s5636_s4  }
  0x3d   : > { %s5472_s25 = scalar_lea.hbm %s7053_s14, 2560 }
  0x3e   : > { %p5473_p6 = scmp.ne.s32.totalorder %s7053_s14, %s5472_s25  ;;  %p5479_p3 = scmp.lt.u32.totalorder %s5472_s25, %s7053_s14 }
  0x40   : > { %p5475_p9 = pnand %p5473_p6, %p5837_p0 }
  0x42   : > { %p5476_p2 = pneg %p5475_p9 }
  0x44   : > { %p5481_p4 = pnand %p5479_p3, %p5476_p2 }
  0x46   : > { %5484 = shalt.err (!%p5481_p4)
}
  0x47   : > { %s5485_s0 = scalar_lea.vmem %s5825_s6, 2560  ;;  %p5493_p13 = scmp.lt.s32.totalorder %s5825_s6, %s5825_s6 }
  0x48   : > { %p5486_p7 = scmp.ne.s32.totalorder %s5825_s6, %s5485_s0  ;;  %p5494_p1 = scmp.lt.s32.totalorder %s5485_s0, %s5485_s0 }
  0x4a   : > { %p5488_p8 = pnand %p5486_p7, %p5837_p0  ;;  %p5495_p6 = por %p5494_p1, %p5493_p13 }
  0x4c   : > { %p5489_p11 = pneg %p5488_p8 }
  0x4e   : > { %p5496_p9 = pnand %p5495_p6, %p5489_p11 }
  0x50   : > { %5499 = shalt.err (!%p5496_p9)
}
  0x51   : > { %4542 = dma.hbm_to_vmem [thread:$0]  (!%p5821_p12), %s7053_s14, 2560, %s5825_s6, [#allocation3], %s5635_s26, %s5635_s26, %s5636_s4  }
  0x52   : > { %s5500_s28 = scalar_lea.hbm %s7057_s18, 2560 }
  0x53   : > { %p5501_p2 = scmp.ne.s32.totalorder %s7057_s18, %s5500_s28  ;;  %p5507_p7 = scmp.lt.u32.totalorder %s5500_s28, %s7057_s18 }
  0x55   : > { %p5503_p3 = pnand %p5501_p2, %p5837_p0 }
  0x57   : > { %p5504_p4 = pneg %p5503_p3 }
  0x59   : > { %p5509_p8 = pnand %p5507_p7, %p5504_p4 }
  0x5b   : > { %5512 = shalt.err (!%p5509_p8)
}
  0x5c   : > { %s5513_s0 = scalar_lea.vmem %s650_s24, 2560  ;;  %p5521_p6 = scmp.lt.s32.totalorder %s650_s24, %s650_s24 }
  0x5d   : > { %p5514_p11 = scmp.ne.s32.totalorder %s650_s24, %s5513_s0  ;;  %p5522_p9 = scmp.lt.s32.totalorder %s5513_s0, %s5513_s0 }
  0x5f   : > { %p5516_p13 = pnand %p5514_p11, %p5837_p0  ;;  %p5523_p5 = por %p5522_p9, %p5521_p6 }
  0x61   : > { %p5517_p1 = pneg %p5516_p13 }
  0x63   : > { %p5524_p10 = pnand %p5523_p5, %p5517_p1 }
  0x65   : > { %5527 = shalt.err (!%p5524_p10)
}
  0x66   : > { %4548 = dma.hbm_to_vmem [thread:$0]  (!%p5821_p12), %s7057_s18, 2560, %s650_s24, [#allocation6], %s5635_s26, %s5635_s26, %s5636_s4  }
  0x67   : > { %s5637_s21 = smov [#allocation8]   ;;  %s5528_s3 = scalar_lea.hbm %s7059_s20, 2560 }
  0x68   : > { %s665_s23 = sshll.u32 %s5637_s21, 4  ;;  %p5529_p5 = scmp.ne.s32.totalorder %s7059_s20, %s5528_s3  ;;  %s666_s23 = int_to_ptr.vmem [resolvable:$true] %s665_s23 }
  0x69   : > { %p5535_p3 = scmp.lt.u32.totalorder %s5528_s3, %s7059_s20 }
  0x6a   : > { %p5531_p10 = pnand %p5529_p5, %p5837_p0 }
  0x6c   : > { %p5532_p2 = pneg %p5531_p10 }
  0x6e   : > { %p5537_p4 = pnand %p5535_p3, %p5532_p2 }
  0x70   : > { %5540 = shalt.err (!%p5537_p4)
}
  0x71   : > { %s5541_s24 = scalar_lea.vmem %s666_s23, 2560  ;;  %p5549_p13 = scmp.lt.s32.totalorder %s666_s23, %s666_s23 }
  0x72   : > { %p5542_p7 = scmp.ne.s32.totalorder %s666_s23, %s5541_s24  ;;  %p5550_p1 = scmp.lt.s32.totalorder %s5541_s24, %s5541_s24 }
  0x74   : > { %p5544_p8 = pnand %p5542_p7, %p5837_p0  ;;  %p5551_p6 = por %p5550_p1, %p5549_p13 }
  0x76   : > { %p5545_p11 = pneg %p5544_p8 }
  0x78   : > { %p5552_p9 = pnand %p5551_p6, %p5545_p11 }
  0x7a   : > { %5555 = shalt.err (!%p5552_p9)
}
  0x7b   : > { %4551 = dma.hbm_to_vmem [thread:$0]  (!%p5821_p12), %s7059_s20, 2560, %s666_s23, [#allocation9], %s5635_s26, %s5635_s26, %s5636_s4  }
  0x7c   : > { %p7104_p5 = scmp.ne.s32.totalorder %s7101_s29, 0 }
  0x7d   : > { %p7105_p0 = scmp.eq.s32.totalorder (!%p7104_p5), %s5783_s5, 0 }
  0x7e   : > { %703 = sbr.rel (%p7104_p5) target bundleno = 2547 (0x9f3), region = 108 }
  0x85   : > { %5601 = dma.done.wait (%p7105_p0), [#allocation3], 2560   ;;  %p7106_p10 = pmov %p7105_p0 }
  0x86   : > { %p7107_p2 = pmov %p7105_p0 }
  0x87   : > { %5603 = vsyncadd (%p7106_p10), [#allocation3], 4294964736 }
  0x88   : > { %5605 = dma.done.wait (%p7107_p2), [#allocation6], 5120   ;;  %p7108_p3 = pmov %p7105_p0 }
  0x89   : > { %p7109_p4 = pmov %p7105_p0 }
  0x8a   : > { %5607 = vsyncadd (%p7108_p3), [#allocation6], 4294962176 }
  0x8b   : > { %5609 = dma.done.wait (%p7109_p4), [#allocation9], 2560   ;;  %p7110_p12 = pmov %p7105_p0 }
  0x8c   : > { %s4235_s22 = sshll.u32 %s5783_s5, 4  ;;  %s7111_s26 = sld [smem:[#allocation24_spill]]  ;;  %vm993_vm0 = vcmask 261120  }
  0x8d   : > { %5611 = vsyncadd (%p7110_p12), [#allocation9], 4294964736  ;;  %p792_p7 = scmp.lt.s32.totalorder %s4235_s22, 31  ;;  %s7112_s4 = sld [smem:[#allocation22_spill]] }
  0x8e   : > { %s7113_s27 = sld [smem:[#allocation26_spill]]  ;;  %s7114_s25 = sld [smem:[#allocation28_spill]] }
  0x8f   : > { %s7137_s22 = smov (!%p792_p7, %s4235_s22), 31  ;;  %s7118_s7 = sld [smem:[#allocation29_spill]] }
  0x90   : > { %s7078_s24 = sshll.u32 %s7137_s22, 4  ;;  %s788_s23 = sand.u32 1, %s5622_s30  }
  0x91   : > { %s4234_s3 = sshll.u32 %s788_s23, 8  ;;  %s7119_s19 = sld [smem:[#allocation23_spill]] }
  0x92   : > { %v4606_v0 = vld [vmem:[%s7111_s26 + $0x4] ss:$8 sps:$4 sm:$0xff]   ;;  %v4608_v1 = vld [vmem:[%s7111_s26] ss:$8 sps:$4 sm:$0xff]   ;;  %v4609_v2 = vld [vmem:[%s7111_s26 + $0x14] ss:$8 sps:$4 sm:$0xff]  }
  0x93   : > { %1018 = vmatprep.subr.bf16.mxu0 %v4606_v0  ;;  %v4611_v3 = vld [vmem:[%s7111_s26 + $0x10] ss:$8 sps:$4 sm:$0xff]   ;;  %v4612_v4 = vld [vmem:[%s7111_s26 + $0x24] ss:$8 sps:$4 sm:$0xff]   ;;  %v4614_v5 = vld [vmem:[%s7111_s26 + $0x20] ss:$8 sps:$4 sm:$0xff]   ;;  %s5974_s21 = scalar_lea.vmem %s7112_s4, %s7078_s24 }
  0x94   : > { %1019 = vmatpush1.bf16.msra.mxu0 %v4608_v1  ;;  %v4615_v6 = vld [vmem:[%s7111_s26 + $0x34] ss:$8 sps:$4 sm:$0xff]   ;;  %v4617_v7 = vld [vmem:[%s7111_s26 + $0x30] ss:$8 sps:$4 sm:$0xff]   ;;  %v4618_v8 = vld [vmem:[%s7111_s26 + $0x44] ss:$8 sps:$4 sm:$0xff]   ;;  %s7115_s0 = smov %s7114_s25 }
  0x95   : > { %1020 = vmatprep.subr.bf16.mxu0 %v4609_v2  ;;  %v814_v9 = vld [vmem:[%s5974_s21 + $0x8] sm:$0xff]  ;;  %v816_v10 = vld [vmem:[%s5974_s21 + $0x18] sm:$0xff]  ;;  %v813_v30 = vld [vmem:[%s5974_s21] sm:$0xff]  ;;  %s7116_s4 = sld [smem:[#allocation25_spill]]  ;;  %s6558_s2 = scalar_lea.vmem [#allocation10], %s4234_s3 }
  0x96   : > { %v846_v11 = vpack.c.bf16 %v816_v10, %v814_v9  ;;  %v4620_v12 = vld [vmem:[%s7111_s26 + $0x40] ss:$8 sps:$4 sm:$0xff]   ;;  %v4621_v13 = vld [vmem:[%s7111_s26 + $0x54] ss:$8 sps:$4 sm:$0xff]   ;;  %v4623_v14 = vld [vmem:[%s7111_s26 + $0x50] ss:$8 sps:$4 sm:$0xff]  }
  0x97   : > { %v4624_v15 = vld [vmem:[%s7111_s26 + $0x64] ss:$8 sps:$4 sm:$0xff]   ;;  %v4626_v16 = vld [vmem:[%s7111_s26 + $0x60] ss:$8 sps:$4 sm:$0xff]   ;;  %v4627_v17 = vld [vmem:[%s7111_s26 + $0x74] ss:$8 sps:$4 sm:$0xff]  }
  0x98   : > { %1021 = vmatpush1.bf16.msra.mxu0 %v4611_v3  ;;  %4263 = vmatprep.mubr.msk.bf16.mxu0 %vm993_vm0, %v846_v11  ;;  %v4636_v18 = vld [vmem:[%s7113_s27 + $0x4] ss:$8 sps:$4 sm:$0xff]   ;;  %v4638_v19 = vld [vmem:[%s7113_s27] ss:$8 sps:$4 sm:$0xff]   ;;  %v4629_v20 = vld [vmem:[%s7111_s26 + $0x70] ss:$8 sps:$4 sm:$0xff]  }
  0x99   : > { %1022 = vmatprep.subr.bf16.mxu0 %v4612_v4  ;;  %1335 = vmatprep.subr.bf16.mxu1 %v4636_v18  ;;  %v4639_v21 = vld [vmem:[%s7113_s27 + $0x14] ss:$8 sps:$4 sm:$0xff]   ;;  %v4630_v22 = vld [vmem:[%s7111_s26 + $0x84] ss:$8 sps:$4 sm:$0xff]   ;;  %v4641_v23 = vld [vmem:[%s7113_s27 + $0x10] ss:$8 sps:$4 sm:$0xff]  }
  0x9a   : > { %1336 = vmatpush1.bf16.msra.mxu1 %v4638_v19  ;;  %v4642_v24 = vld [vmem:[%s7113_s27 + $0x24] ss:$8 sps:$4 sm:$0xff]   ;;  %v4632_v25 = vld [vmem:[%s7111_s26 + $0x80] ss:$8 sps:$4 sm:$0xff]   ;;  %v4633_v26 = vld [vmem:[%s7111_s26 + $0x94] ss:$8 sps:$4 sm:$0xff]  }
  0x9b   : > { %1337 = vmatprep.subr.bf16.mxu1 %v4639_v21  ;;  %v4644_v27 = vld [vmem:[%s7113_s27 + $0x20] ss:$8 sps:$4 sm:$0xff]   ;;  %v4645_v28 = vld [vmem:[%s7113_s27 + $0x34] ss:$8 sps:$4 sm:$0xff]   ;;  %v4635_v29 = vld [vmem:[%s7111_s26 + $0x90] ss:$8 sps:$4 sm:$0xff]  }
  0x9c   : > { %1023 = vmatpush1.bf16.msra.mxu0 %v4614_v5  ;;  %v815_v31 = vld [vmem:[%s5974_s21 + $0x10] sm:$0xff]  ;;  %v818_v33 = vld [vmem:[%s5974_s21 + $0x28] sm:$0xff]  ;;  %v820_v34 = vld [vmem:[%s5974_s21 + $0x38] sm:$0xff]  ;;  %s4520_s1 = sshll.u32 %s5783_s5, 12  ;;  %s7122_s3 = sld [smem:[#allocation33_spill]] }
  0x9d   : > { %1024 = vmatprep.subr.bf16.mxu0 %v4615_v6  ;;  %v4647_v32 = vld [vmem:[%s7113_s27 + $0x30] ss:$8 sps:$4 sm:$0xff]   ;;  %v4648_v35 = vld [vmem:[%s7113_s27 + $0x44] ss:$8 sps:$4 sm:$0xff]   ;;  %v4650_v36 = vld [vmem:[%s7113_s27 + $0x40] ss:$8 sps:$4 sm:$0xff]   ;;  %v845_v37 = vpack.c.bf16 %v815_v31, %v813_v30  ;;  %v848_v38 = vpack.c.bf16 %v820_v34, %v818_v33 }
  0x9e   : > { %1338 = vmatpush1.bf16.msra.mxu1 %v4641_v23  ;;  %v817_v39 = vld [vmem:[%s5974_s21 + $0x20] sm:$0xff]  ;;  %v819_v40 = vld [vmem:[%s5974_s21 + $0x30] sm:$0xff]  ;;  %v822_v41 = vld [vmem:[%s5974_s21 + $0x48] sm:$0xff]  ;;  %s5639_s5 = smov [#allocation10]  }
  0x9f   : > { %1339 = vmatprep.subr.bf16.mxu1 %v4642_v24  ;;  %v824_v42 = vld [vmem:[%s5974_s21 + $0x58] sm:$0xff]  ;;  %v847_v43 = vpack.c.bf16 %v819_v40, %v817_v39  ;;  %v821_v45 = vld [vmem:[%s5974_s21 + $0x40] sm:$0xff]  ;;  %v823_v46 = vld [vmem:[%s5974_s21 + $0x50] sm:$0xff] }
  0xa0   : > { %1025 = vmatpush1.bf16.msra.mxu0 %v4617_v7  ;;  %v850_v44 = vpack.c.bf16 %v824_v42, %v822_v41  ;;  %v826_v47 = vld [vmem:[%s5974_s21 + $0x68] sm:$0xff]  ;;  %v828_v48 = vld [vmem:[%s5974_s21 + $0x78] sm:$0xff]  ;;  %v849_v49 = vpack.c.bf16 %v823_v46, %v821_v45  ;;  %v825_v51 = vld [vmem:[%s5974_s21 + $0x60] sm:$0xff] }
  0xa1   : > { %1026 = vmatprep.subr.bf16.mxu0 %v4618_v8  ;;  %v852_v50 = vpack.c.bf16 %v828_v48, %v826_v47  ;;  %v827_v52 = vld [vmem:[%s5974_s21 + $0x70] sm:$0xff]  ;;  %v830_v53 = vld [vmem:[%s5974_s21 + $0x88] sm:$0xff]  ;;  %v832_v54 = vld [vmem:[%s5974_s21 + $0x98] sm:$0xff] }
  0xa2   : > { %1340 = vmatpush1.bf16.msra.mxu1 %v4644_v27  ;;  %v851_v55 = vpack.c.bf16 %v827_v52, %v825_v51  ;;  %v854_v56 = vpack.c.bf16 %v832_v54, %v830_v53  ;;  %v829_v57 = vld [vmem:[%s5974_s21 + $0x80] sm:$0xff]  ;;  %v831_v58 = vld [vmem:[%s5974_s21 + $0x90] sm:$0xff]  ;;  %v834_v59 = vld [vmem:[%s5974_s21 + $0xa8] sm:$0xff] }
  0xa3   : > { %1341 = vmatprep.subr.bf16.mxu1 %v4645_v28  ;;  %v836_v60 = vld [vmem:[%s5974_s21 + $0xb8] sm:$0xff]  ;;  %v853_v61 = vpack.c.bf16 %v831_v58, %v829_v57  ;;  %v833_v63 = vld [vmem:[%s5974_s21 + $0xa0] sm:$0xff]  ;;  %v835_v0 = vld [vmem:[%s5974_s21 + $0xb0] sm:$0xff] }
  0xa4   : > { %1027 = vmatpush1.bf16.msra.mxu0 %v4620_v12  ;;  %v856_v62 = vpack.c.bf16 %v836_v60, %v834_v59  ;;  %v838_v1 = vld [vmem:[%s5974_s21 + $0xc8] sm:$0xff]  ;;  %v840_v2 = vld [vmem:[%s5974_s21 + $0xd8] sm:$0xff]  ;;  %v855_v3 = vpack.c.bf16 %v835_v0, %v833_v63  ;;  %v837_v5 = vld [vmem:[%s5974_s21 + $0xc0] sm:$0xff] }
  0xa5   : > { %1028 = vmatprep.subr.bf16.mxu0 %v4621_v13  ;;  %v858_v4 = vpack.c.bf16 %v840_v2, %v838_v1  ;;  %v839_v6 = vld [vmem:[%s5974_s21 + $0xd0] sm:$0xff]  ;;  %v842_v7 = vld [vmem:[%s5974_s21 + $0xe8] sm:$0xff]  ;;  %v844_v8 = vld [vmem:[%s5974_s21 + $0xf8] sm:$0xff] }
  0xa6   : > { %1342 = vmatpush1.bf16.msra.mxu1 %v4647_v32  ;;  %v857_v9 = vpack.c.bf16 %v839_v6, %v837_v5  ;;  %v860_v10 = vpack.c.bf16 %v844_v8, %v842_v7  ;;  %v841_v11 = vld [vmem:[%s5974_s21 + $0xe0] sm:$0xff]  ;;  %v843_v12 = vld [vmem:[%s5974_s21 + $0xf0] sm:$0xff]  ;;  %s4239_s21 = sshll.u32 %s7137_s22, 3 }
  0xa7   : > { %1343 = vmatprep.subr.bf16.mxu1 %v4648_v35  ;;  %v859_v13 = vpack.c.bf16 %v843_v12, %v841_v11  ;;  %v4657_v18 = vld [vmem:[%s7113_s27 + $0x74] ss:$8 sps:$4 sm:$0xff]   ;;  %v4659_v19 = vld [vmem:[%s7113_s27 + $0x70] ss:$8 sps:$4 sm:$0xff]   ;;  %v4662_v21 = vld [vmem:[%s7113_s27 + $0x80] ss:$8 sps:$4 sm:$0xff]   ;;  %s6581_s29 = scalar_lea.vmem %s7119_s19, %s4239_s21  ;;  %s6896_s21 = scalar_lea.hbm %s7122_s3, %s4520_s1 }
  0xa8   : > { %1029 = vmatpush1.bf16.msra.mxu0 %v4623_v14  ;;  %v4651_v14 = vld [vmem:[%s7113_s27 + $0x54] ss:$8 sps:$4 sm:$0xff]   ;;  %v4665_v23 = vld [vmem:[%s7113_s27 + $0x90] ss:$8 sps:$4 sm:$0xff]   ;;  %v4666_v24 = vld [vmem:[%s7114_s25] ss:$8 sps:$4 sm:$0xff]  }
  0xa9   : > { %1030 = vmatprep.subr.bf16.mxu0 %v4624_v15  ;;  %v4653_v15 = vld [vmem:[%s7113_s27 + $0x50] ss:$8 sps:$4 sm:$0xff]   ;;  %v4674_v28 = vld [vmem:[%s7115_s0 + $0x24] ss:$8 sps:$4 sm:$0xff]   ;;  %v4677_v30 = vld [vmem:[%s7115_s0 + $0x34] ss:$8 sps:$4 sm:$0xff]  }
  0xaa   : > { %1344 = vmatpush1.bf16.msra.mxu1 %v4650_v36  ;;  %v4669_v27 = vld [vmem:[%s7115_s0 + $0x10] ss:$8 sps:$4 sm:$0xff]   ;;  %v4680_v32 = vld [vmem:[%s7115_s0 + $0x44] ss:$8 sps:$4 sm:$0xff]   ;;  %v4678_v33 = vld [vmem:[%s7115_s0 + $0x40] ss:$8 sps:$4 sm:$0xff]  }
  0xab   : > { %1345 = vmatprep.subr.bf16.mxu1 %v4651_v14  ;;  %v4675_v31 = vld [vmem:[%s7115_s0 + $0x30] ss:$8 sps:$4 sm:$0xff]   ;;  %v4683_v34 = vld [vmem:[%s7115_s0 + $0x54] ss:$8 sps:$4 sm:$0xff]   ;;  %v4686_v36 = vld [vmem:[%s7115_s0 + $0x64] ss:$8 sps:$4 sm:$0xff]  }
  0xac   : > { %1031 = vmatpush1.bf16.msra.mxu0 %v4626_v16  ;;  %v4654_v16 = vld [vmem:[%s7113_s27 + $0x64] ss:$8 sps:$4 sm:$0xff]   ;;  %v4681_v35 = vld [vmem:[%s7115_s0 + $0x50] ss:$8 sps:$4 sm:$0xff]   ;;  %v881_v41 = vld [vmem:[%s7116_s4] sm:$0x3] }
  0xad   : > { %1032 = vmatprep.subr.bf16.mxu0 %v4627_v17  ;;  %v4656_v17 = vld [vmem:[%s7113_s27 + $0x60] ss:$8 sps:$4 sm:$0xff]   ;;  %s7117_s25 = sld [smem:[#allocation27_spill]]  ;;  %s7120_s19 = sld [smem:[#allocation30_spill]] }
  0xae   : > { %1346 = vmatpush1.bf16.msra.mxu1 %v4653_v15  ;;  %s4081_s4 = sshll.u32 %s6558_s2, 4  ;;  %s6898_s4 = int_to_ptr.vmem [resolvable:$true] %s4081_s4 }
  0xaf   : > { %1347 = vmatprep.subr.bf16.mxu1 %v4654_v16  ;;  %s5556_s6 = scalar_lea.vmem %s6898_s4, 4096 }
  0xb0   : > { %1033 = vmatpush1.bf16.msra.mxu0 %v4629_v20  ;;  %v4660_v20 = vld [vmem:[%s7113_s27 + $0x84] ss:$8 sps:$4 sm:$0xff]   ;;  %p5557_p8 = scmp.ne.s32.totalorder %s6898_s4, %s5556_s6 }
  0xb1   : > { %1034 = vmatprep.subr.bf16.mxu0 %v4630_v22  ;;  %v4663_v22 = vld [vmem:[%s7113_s27 + $0x94] ss:$8 sps:$4 sm:$0xff]  }
  0xb2   : > { %1348 = vmatpush1.bf16.msra.mxu1 %v4656_v17 }
  0xb3   : > { %1349 = vmatprep.subr.bf16.mxu1 %v4657_v18 }
  0xb4   : > { %1035 = vmatpush1.bf16.msra.mxu0 %v4632_v25  ;;  %v4668_v25 = vld [vmem:[%s7115_s0 + $0x4] ss:$8 sps:$4 sm:$0xff]  }
  0xb5   : > { %1036 = vmatprep.subr.bf16.mxu0 %v4633_v26  ;;  %v4671_v26 = vld [vmem:[%s7115_s0 + $0x14] ss:$8 sps:$4 sm:$0xff]  }
  0xb6   : > { %1350 = vmatpush1.bf16.msra.mxu1 %v4659_v19 }
  0xb7   : > { %1351 = vmatprep.subr.bf16.mxu1 %v4660_v20 }
  0xb8   : > { %1037 = vmatpush1.bf16.msra.mxu0 %v4635_v29  ;;  %v4672_v29 = vld [vmem:[%s7115_s0 + $0x20] ss:$8 sps:$4 sm:$0xff]  }
  0xb9   : > { %1652 = vmatprep.subr.bf16.mxu0 %v4668_v25 }
  0xba   : > { %1352 = vmatpush1.bf16.msra.mxu1 %v4662_v21 }
  0xbb   : > { %1051 = vmatmul.mubr.bf16.vlgmr.msra.gmra.mrb[0].mxu0 %v845_v37  ;;  %1353 = vmatprep.subr.bf16.mxu1 %v4663_v22  ;;  %v4684_v37 = vld [vmem:[%s7115_s0 + $0x60] ss:$8 sps:$4 sm:$0xff]  }
  0xbc   : > { %4264 = vmatprep.mubr.msk.bf16.mxu0 %vm993_vm0, %v848_v38  ;;  %1653 = vmatpush1.bf16.msra.mxu0 %v4666_v24  ;;  %v883_v38 = vlaneseq }
  0xbd   : > { %1654 = vmatprep.subr.bf16.mxu0 %v4671_v26 }
  0xbe   : > { %1354 = vmatpush1.bf16.msra.mxu1 %v4665_v23  ;;  %v884_v39 = vshrl.u32 %v883_v38, 7 }
  0xc0   : > { %1655 = vmatpush1.bf16.msra.mxu0 %v4669_v27  ;;  %v6157_v40 = vsub.s32 0, %v884_v39  ;;  %v6162_v42 = vsub.s32 1, %v884_v39 }
  0xc1   : > { %1656 = vmatprep.subr.bf16.mxu0 %v4674_v28 }
  0xc3   : > { %1061 = vmatmul.mubr.bf16.gmra.mrb[4].mxu0 %v847_v43  ;;  %v6165_v43 = vrot.slane %v881_v41, %v6157_v40 }
  0xc4   : > { %4265 = vmatprep.mubr.msk.bf16.mxu0 %vm993_vm0, %v850_v44  ;;  %1657 = vmatpush1.bf16.msra.mxu0 %v4672_v29  ;;  %v6168_v44 = vrot.slane %v881_v41, %v6162_v42 }
  0xc5   : > { %1658 = vmatprep.subr.bf16.mxu0 %v4677_v30 }
  0xc8   : > { %1659 = vmatpush1.bf16.msra.mxu0 %v4675_v31 }
  0xc9   : > { %1660 = vmatprep.subr.bf16.mxu0 %v4680_v32 }
  0xcb   : > { %1071 = vmatmul.mubr.bf16.gmra.mrb[8].mxu0 %v849_v49 }
  0xcc   : > { %4266 = vmatprep.mubr.msk.bf16.mxu0 %vm993_vm0, %v852_v50  ;;  %1661 = vmatpush1.bf16.msra.mxu0 %v4678_v33 }
  0xcd   : > { %1662 = vmatprep.subr.bf16.mxu0 %v4683_v34 }
  0xd0   : > { %1663 = vmatpush1.bf16.msra.mxu0 %v4681_v35 }
  0xd1   : > { %1664 = vmatprep.subr.bf16.mxu0 %v4686_v36 }
  0xd3   : > { %1081 = vmatmul.mubr.bf16.gmra.mrb[12].mxu0 %v851_v55 }
  0xd4   : > { %4267 = vmatprep.mubr.msk.bf16.mxu0 %vm993_vm0, %v854_v56  ;;  %1665 = vmatpush1.bf16.msra.mxu0 %v4684_v37 }
  0xdb   : > { %1091 = vmatmul.mubr.bf16.gmra.mrb[16].mxu0 %v853_v61 }
  0xdc   : > { %4268 = vmatprep.mubr.msk.bf16.mxu0 %vm993_vm0, %v856_v62 }
  0xe3   : > { %1101 = vmatmul.mubr.bf16.gmra.mrb[20].mxu0 %v855_v3 }
  0xe4   : > { %4269 = vmatprep.mubr.msk.bf16.mxu0 %vm993_vm0, %v858_v4 }
  0xeb   : > { %1111 = vmatmul.mubr.bf16.gmra.mrb[24].mxu0 %v857_v9 }
  0xec   : > { %4270 = vmatprep.mubr.msk.bf16.mxu0 %vm993_vm0, %v860_v10 }
  0xf3   : > { %1121 = vmatmul.mubr.bf16.gmra.mrb[28].mxu0 %v859_v13 }
 0x18e   : > { %v1052_v45 = vpop.f32.mrb[0].mxu0 }
 0x18f   : > { %v1053_v46 = vadd.f32 %v1052_v45, %v6165_v43  ;;  %v1054_v47 = vpop.f32.mrb[1].mxu0 }
 0x190   : > { %v1055_v48 = vadd.f32 %v1054_v47, %v6168_v44  ;;  %v1056_v49 = vpop.f32.mrb[2].mxu0 }
 0x191   : > { %4900 = vtanh.f32 %v1053_v46  ;;  %v1057_v50 = vadd.f32 %v1056_v49, %v6165_v43  ;;  %v1058_v51 = vpop.f32.mrb[3].mxu0 }
 0x192   : > { %4902 = vtanh.f32 %v1055_v48  ;;  %v1059_v52 = vadd.f32 %v1058_v51, %v6168_v44 }
 0x193   : > { %4904 = vtanh.f32 %v1057_v50 }
 0x194   : > { %4906 = vtanh.f32 %v1059_v52 }
 0x196   : > { %v1062_v53 = vpop.f32.mrb[4].mxu0 }
 0x197   : > { %v1063_v54 = vadd.f32 %v1062_v53, %v6165_v43  ;;  %v1064_v55 = vpop.f32.mrb[5].mxu0 }
 0x198   : > { %v1065_v56 = vadd.f32 %v1064_v55, %v6168_v44  ;;  %v1066_v57 = vpop.f32.mrb[6].mxu0 }
 0x199   : > { %4908 = vtanh.f32 %v1063_v54  ;;  %v1067_v58 = vadd.f32 %v1066_v57, %v6165_v43  ;;  %v1068_v59 = vpop.f32.mrb[7].mxu0 }
 0x19a   : > { %4910 = vtanh.f32 %v1065_v56  ;;  %v1069_v60 = vadd.f32 %v1068_v59, %v6168_v44 }
 0x19b   : > { %v4901_v61 = vpop.eup %4900  ;;  %4912 = vtanh.f32 %v1067_v58 }
 0x19c   : > { %v4903_v62 = vpop.eup %4902  ;;  %4914 = vtanh.f32 %v1069_v60 }
 0x19d   : > { %v4905_v63 = vpop.eup %4904 }
 0x19e   : > { %v4907_v0 = vpop.eup %4906  ;;  %v1072_v1 = vpop.f32.mrb[8].mxu0  ;;  %v1163_v2 = vpack.c.bf16 %v4905_v63, %v4901_v61 }
 0x19f   : > { %v1073_v3 = vadd.f32 %v1072_v1, %v6165_v43  ;;  %v1074_v4 = vpop.f32.mrb[9].mxu0  ;;  %v1164_v5 = vpack.c.bf16 %v4907_v0, %v4903_v62 }
 0x1a0   : > { %v1075_v6 = vadd.f32 %v1074_v4, %v6168_v44  ;;  %v1076_v7 = vpop.f32.mrb[10].mxu0 }
 0x1a1   : > { %4916 = vtanh.f32 %v1073_v3  ;;  %v1077_v8 = vadd.f32 %v1076_v7, %v6165_v43  ;;  %v1078_v9 = vpop.f32.mrb[11].mxu0  ;;  %4291 = vmatprep.mubr.msk.bf16.mxu1 %vm993_vm0, %v1164_v5 }
 0x1a2   : > { %4918 = vtanh.f32 %v1075_v6  ;;  %v1079_v10 = vadd.f32 %v1078_v9, %v6168_v44  ;;  %1368 = vmatmul.mubr.bf16.vlgmr.msra.gmra.mrb[0].mxu1 %v1163_v2 }
 0x1a3   : > { %v4909_v11 = vpop.eup %4908  ;;  %4920 = vtanh.f32 %v1077_v8 }
 0x1a4   : > { %v4911_v12 = vpop.eup %4910  ;;  %4922 = vtanh.f32 %v1079_v10 }
 0x1a5   : > { %v4913_v13 = vpop.eup %4912 }
 0x1a6   : > { %v4915_v14 = vpop.eup %4914  ;;  %v1082_v15 = vpop.f32.mrb[12].mxu0  ;;  %v1165_v16 = vpack.c.bf16 %v4913_v13, %v4909_v11 }
 0x1a7   : > { %v1083_v17 = vadd.f32 %v1082_v15, %v6165_v43  ;;  %v1084_v18 = vpop.f32.mrb[13].mxu0  ;;  %v1166_v19 = vpack.c.bf16 %v4915_v14, %v4911_v12 }
 0x1a8   : > { %v1085_v20 = vadd.f32 %v1084_v18, %v6168_v44  ;;  %v1086_v21 = vpop.f32.mrb[14].mxu0 }
 0x1a9   : > { %4924 = vtanh.f32 %v1083_v17  ;;  %v1087_v22 = vadd.f32 %v1086_v21, %v6165_v43  ;;  %v1088_v23 = vpop.f32.mrb[15].mxu0  ;;  %4292 = vmatprep.mubr.msk.bf16.mxu1 %vm993_vm0, %v1166_v19 }
 0x1aa   : > { %4926 = vtanh.f32 %v1085_v20  ;;  %v1089_v24 = vadd.f32 %v1088_v23, %v6168_v44  ;;  %1378 = vmatmul.mubr.bf16.gmra.mrb[4].mxu1 %v1165_v16 }
 0x1ab   : > { %v4917_v25 = vpop.eup %4916  ;;  %4928 = vtanh.f32 %v1087_v22 }
 0x1ac   : > { %v4919_v26 = vpop.eup %4918  ;;  %4930 = vtanh.f32 %v1089_v24 }
 0x1ad   : > { %v4921_v27 = vpop.eup %4920 }
 0x1ae   : > { %v4923_v28 = vpop.eup %4922  ;;  %v1092_v29 = vpop.f32.mrb[16].mxu0  ;;  %v1167_v30 = vpack.c.bf16 %v4921_v27, %v4917_v25 }
 0x1af   : > { %v1093_v31 = vadd.f32 %v1092_v29, %v6165_v43  ;;  %v1094_v32 = vpop.f32.mrb[17].mxu0  ;;  %v1168_v33 = vpack.c.bf16 %v4923_v28, %v4919_v26 }
 0x1b0   : > { %v1095_v34 = vadd.f32 %v1094_v32, %v6168_v44  ;;  %v1096_v35 = vpop.f32.mrb[18].mxu0  ;;  %v4689_v32 = vld [vmem:[%s7115_s0 + $0x74] ss:$8 sps:$4 sm:$0xff]  }
 0x1b1   : > { %4932 = vtanh.f32 %v1093_v31  ;;  %v1097_v36 = vadd.f32 %v1096_v35, %v6165_v43  ;;  %v1098_v37 = vpop.f32.mrb[19].mxu0  ;;  %4293 = vmatprep.mubr.msk.bf16.mxu1 %vm993_vm0, %v1168_v33  ;;  %1666 = vmatprep.subr.bf16.mxu0 %v4689_v32  ;;  %v4690_v33 = vld [vmem:[%s7115_s0 + $0x80] ss:$8 sps:$4 sm:$0xff]   ;;  %v4693_v35 = vld [vmem:[%s7115_s0 + $0x90] ss:$8 sps:$4 sm:$0xff]  }
 0x1b2   : > { %4934 = vtanh.f32 %v1095_v34  ;;  %v1099_v38 = vadd.f32 %v1098_v37, %v6168_v44  ;;  %1388 = vmatmul.mubr.bf16.gmra.mrb[8].mxu1 %v1167_v30  ;;  %v4692_v34 = vld [vmem:[%s7115_s0 + $0x84] ss:$8 sps:$4 sm:$0xff]   ;;  %v4696_v37 = vld [vmem:[%s7047_s8] ss:$8 sps:$4 sm:$0xff]  }
 0x1b3   : > { %v4925_v39 = vpop.eup %4924  ;;  %4936 = vtanh.f32 %v1097_v36  ;;  %v4695_v36 = vld [vmem:[%s7115_s0 + $0x94] ss:$8 sps:$4 sm:$0xff]  }
 0x1b4   : > { %v4927_v41 = vpop.eup %4926  ;;  %4938 = vtanh.f32 %v1099_v38  ;;  %v4698_v38 = vld [vmem:[%s7047_s8 + $0x4] ss:$8 sps:$4 sm:$0xff]  }
 0x1b5   : > { %v4929_v45 = vpop.eup %4928  ;;  %1969 = vmatprep.subr.bf16.mxu1 %v4698_v38 }
 0x1b6   : > { %v4931_v46 = vpop.eup %4930  ;;  %v1102_v47 = vpop.f32.mrb[20].mxu0  ;;  %v1169_v48 = vpack.c.bf16 %v4929_v45, %v4925_v39  ;;  %v4701_v39 = vld [vmem:[%s7047_s8 + $0x14] ss:$8 sps:$4 sm:$0xff]   ;;  %1970 = vmatpush1.bf16.msra.mxu1 %v4696_v37  ;;  %v4704_v45 = vld [vmem:[%s7047_s8 + $0x24] ss:$8 sps:$4 sm:$0xff]  }
 0x1b7   : > { %v1103_v49 = vadd.f32 %v1102_v47, %v6165_v43  ;;  %v1104_v50 = vpop.f32.mrb[21].mxu0  ;;  %v1170_v51 = vpack.c.bf16 %v4931_v46, %v4927_v41  ;;  %v4699_v41 = vld [vmem:[%s7047_s8 + $0x10] ss:$8 sps:$4 sm:$0xff]   ;;  %1971 = vmatprep.subr.bf16.mxu1 %v4701_v39  ;;  %v4702_v46 = vld [vmem:[%s7047_s8 + $0x20] ss:$8 sps:$4 sm:$0xff]  }
 0x1b8   : > { %v1105_v52 = vadd.f32 %v1104_v50, %v6168_v44  ;;  %v1106_v53 = vpop.f32.mrb[22].mxu0  ;;  %v4707_v47 = vld [vmem:[%s7047_s8 + $0x34] ss:$8 sps:$4 sm:$0xff]   ;;  %v4708_v50 = vld [vmem:[%s7047_s8 + $0x40] ss:$8 sps:$4 sm:$0xff]  }
 0x1b9   : > { %4940 = vtanh.f32 %v1103_v49  ;;  %v1107_v54 = vadd.f32 %v1106_v53, %v6165_v43  ;;  %v1108_v55 = vpop.f32.mrb[23].mxu0  ;;  %4294 = vmatprep.mubr.msk.bf16.mxu1 %vm993_vm0, %v1170_v51  ;;  %v4710_v49 = vld [vmem:[%s7047_s8 + $0x44] ss:$8 sps:$4 sm:$0xff]   ;;  %v4713_v51 = vld [vmem:[%s7047_s8 + $0x54] ss:$8 sps:$4 sm:$0xff]  }
 0x1ba   : > { %4942 = vtanh.f32 %v1105_v52  ;;  %v1109_v56 = vadd.f32 %v1108_v55, %v6168_v44  ;;  %1398 = vmatmul.mubr.bf16.gmra.mrb[12].mxu1 %v1169_v48  ;;  %v4705_v48 = vld [vmem:[%s7047_s8 + $0x30] ss:$8 sps:$4 sm:$0xff]   ;;  %v4716_v53 = vld [vmem:[%s7047_s8 + $0x64] ss:$8 sps:$4 sm:$0xff]   ;;  %v1199_v55 = vld [vmem:[%s7117_s25] sm:$0x3] }
 0x1bb   : > { %v4933_v57 = vpop.eup %4932  ;;  %4944 = vtanh.f32 %v1107_v54  ;;  %1972 = vmatpush1.bf16.msra.mxu1 %v4699_v41  ;;  %v4711_v52 = vld [vmem:[%s7047_s8 + $0x50] ss:$8 sps:$4 sm:$0xff]   ;;  %v4714_v54 = vld [vmem:[%s7047_s8 + $0x60] ss:$8 sps:$4 sm:$0xff]   ;;  %s6902_s25 = scalar_lea.sflag [#allocation4], %s788_s23 }
 0x1bc   : > { %v4935_v58 = vpop.eup %4934  ;;  %4946 = vtanh.f32 %v1109_v56  ;;  %1973 = vmatprep.subr.bf16.mxu1 %v4704_v45  ;;  %v6274_v56 = vrot.slane %v1199_v55, %v6157_v40 }
 0x1bd   : > { %v4937_v59 = vpop.eup %4936 }
 0x1be   : > { %v4939_v60 = vpop.eup %4938  ;;  %v1112_v61 = vpop.f32.mrb[24].mxu0  ;;  %v1171_v62 = vpack.c.bf16 %v4937_v59, %v4933_v57  ;;  %v6277_v57 = vrot.slane %v1199_v55, %v6162_v42 }
 0x1bf   : > { %v1113_v63 = vadd.f32 %v1112_v61, %v6165_v43  ;;  %v1114_v0 = vpop.f32.mrb[25].mxu0  ;;  %v1172_v1 = vpack.c.bf16 %v4939_v60, %v4935_v58  ;;  %1974 = vmatpush1.bf16.msra.mxu1 %v4702_v46 }
 0x1c0   : > { %v1115_v2 = vadd.f32 %v1114_v0, %v6168_v44  ;;  %v1116_v3 = vpop.f32.mrb[26].mxu0  ;;  %1975 = vmatprep.subr.bf16.mxu1 %v4707_v47 }
 0x1c1   : > { %4948 = vtanh.f32 %v1113_v63  ;;  %v1117_v4 = vadd.f32 %v1116_v3, %v6165_v43  ;;  %v1118_v5 = vpop.f32.mrb[27].mxu0  ;;  %4295 = vmatprep.mubr.msk.bf16.mxu1 %vm993_vm0, %v1172_v1 }
 0x1c2   : > { %4950 = vtanh.f32 %v1115_v2  ;;  %v1119_v6 = vadd.f32 %v1118_v5, %v6168_v44  ;;  %1408 = vmatmul.mubr.bf16.gmra.mrb[16].mxu1 %v1171_v62 }
 0x1c3   : > { %v4941_v7 = vpop.eup %4940  ;;  %4952 = vtanh.f32 %v1117_v4  ;;  %1976 = vmatpush1.bf16.msra.mxu1 %v4705_v48 }
 0x1c4   : > { %v4943_v8 = vpop.eup %4942  ;;  %4954 = vtanh.f32 %v1119_v6  ;;  %1977 = vmatprep.subr.bf16.mxu1 %v4710_v49 }
 0x1c5   : > { %v4945_v9 = vpop.eup %4944 }
 0x1c6   : > { %v4947_v10 = vpop.eup %4946  ;;  %v1122_v11 = vpop.f32.mrb[28].mxu0  ;;  %v1173_v12 = vpack.c.bf16 %v4945_v9, %v4941_v7 }
 0x1c7   : > { %v1123_v13 = vadd.f32 %v1122_v11, %v6165_v43  ;;  %v1124_v14 = vpop.f32.mrb[29].mxu0  ;;  %v1174_v15 = vpack.c.bf16 %v4947_v10, %v4943_v8  ;;  %1978 = vmatpush1.bf16.msra.mxu1 %v4708_v50 }
 0x1c8   : > { %v1125_v16 = vadd.f32 %v1124_v14, %v6168_v44  ;;  %v1126_v17 = vpop.f32.mrb[30].mxu0  ;;  %1979 = vmatprep.subr.bf16.mxu1 %v4713_v51 }
 0x1c9   : > { %4956 = vtanh.f32 %v1123_v13  ;;  %v1127_v18 = vadd.f32 %v1126_v17, %v6165_v43  ;;  %v1128_v19 = vpop.f32.mrb[31].mxu0  ;;  %4296 = vmatprep.mubr.msk.bf16.mxu1 %vm993_vm0, %v1174_v15 }
 0x1ca   : > { %4958 = vtanh.f32 %v1125_v16  ;;  %v1129_v20 = vadd.f32 %v1128_v19, %v6168_v44  ;;  %1418 = vmatmul.mubr.bf16.gmra.mrb[20].mxu1 %v1173_v12  ;;  %v4687_v44 = vld [vmem:[%s7115_s0 + $0x70] ss:$8 sps:$4 sm:$0xff]  }
 0x1cb   : > { %v4949_v21 = vpop.eup %4948  ;;  %4960 = vtanh.f32 %v1127_v18  ;;  %1667 = vmatpush1.bf16.msra.mxu0 %v4687_v44  ;;  %1980 = vmatpush1.bf16.msra.mxu1 %v4711_v52 }
 0x1cc   : > { %v4951_v22 = vpop.eup %4950  ;;  %4962 = vtanh.f32 %v1129_v20  ;;  %1668 = vmatprep.subr.bf16.mxu0 %v4692_v34  ;;  %1981 = vmatprep.subr.bf16.mxu1 %v4716_v53 }
 0x1cd   : > { %v4953_v23 = vpop.eup %4952 }
 0x1ce   : > { %v4955_v24 = vpop.eup %4954  ;;  %v1175_v25 = vpack.c.bf16 %v4953_v23, %v4949_v21 }
 0x1cf   : > { %v1176_v26 = vpack.c.bf16 %v4955_v24, %v4951_v22  ;;  %1669 = vmatpush1.bf16.msra.mxu0 %v4690_v33  ;;  %1982 = vmatpush1.bf16.msra.mxu1 %v4714_v54 }
 0x1d0   : > { %1670 = vmatprep.subr.bf16.mxu0 %v4695_v36 }
 0x1d1   : > { %4297 = vmatprep.mubr.msk.bf16.mxu1 %vm993_vm0, %v1176_v26 }
 0x1d2   : > { %1428 = vmatmul.mubr.bf16.gmra.mrb[24].mxu1 %v1175_v25 }
 0x1d3   : > { %v4957_v27 = vpop.eup %4956  ;;  %1671 = vmatpush1.bf16.msra.mxu0 %v4693_v35 }
 0x1d4   : > { %v4959_v43 = vpop.eup %4958 }
 0x1d5   : > { %v4961_v28 = vpop.eup %4960 }
 0x1d6   : > { %v4963_v29 = vpop.eup %4962  ;;  %v1177_v30 = vpack.c.bf16 %v4961_v28, %v4957_v27 }
 0x1d7   : > { %v1178_v31 = vpack.c.bf16 %v4963_v29, %v4959_v43 }
 0x1d9   : > { %4298 = vmatprep.mubr.msk.bf16.mxu1 %vm993_vm0, %v1178_v31 }
 0x1da   : > { %1438 = vmatmul.mubr.bf16.gmra.mrb[28].mxu1 %v1177_v30 }
 0x275   : > { %v1369_v58 = vpop.f32.mrb[0].mxu1 }
 0x276   : > { %v1370_v59 = vadd.f32 %v1369_v58, %v6274_v56  ;;  %v1371_v60 = vpop.f32.mrb[1].mxu1 }
 0x277   : > { %v1372_v61 = vadd.f32 %v1371_v60, %v6277_v57  ;;  %v1373_v62 = vpop.f32.mrb[2].mxu1 }
 0x278   : > { %4964 = vtanh.f32 %v1370_v59  ;;  %v1374_v63 = vadd.f32 %v1373_v62, %v6274_v56  ;;  %v1375_v0 = vpop.f32.mrb[3].mxu1 }
 0x279   : > { %4966 = vtanh.f32 %v1372_v61  ;;  %v1376_v1 = vadd.f32 %v1375_v0, %v6277_v57 }
 0x27a   : > { %4968 = vtanh.f32 %v1374_v63 }
 0x27b   : > { %4970 = vtanh.f32 %v1376_v1 }
 0x27d   : > { %v1379_v2 = vpop.f32.mrb[4].mxu1 }
 0x27e   : > { %v1380_v3 = vadd.f32 %v1379_v2, %v6274_v56  ;;  %v1381_v4 = vpop.f32.mrb[5].mxu1 }
 0x27f   : > { %v1382_v5 = vadd.f32 %v1381_v4, %v6277_v57  ;;  %v1383_v6 = vpop.f32.mrb[6].mxu1 }
 0x280   : > { %4972 = vtanh.f32 %v1380_v3  ;;  %v1384_v7 = vadd.f32 %v1383_v6, %v6274_v56  ;;  %v1385_v8 = vpop.f32.mrb[7].mxu1 }
 0x281   : > { %4974 = vtanh.f32 %v1382_v5  ;;  %v1386_v9 = vadd.f32 %v1385_v8, %v6277_v57 }
 0x282   : > { %v4965_v10 = vpop.eup %4964  ;;  %4976 = vtanh.f32 %v1384_v7 }
 0x283   : > { %v4967_v11 = vpop.eup %4966  ;;  %4978 = vtanh.f32 %v1386_v9 }
 0x284   : > { %v4969_v12 = vpop.eup %4968 }
 0x285   : > { %v4971_v13 = vpop.eup %4970  ;;  %v1389_v14 = vpop.f32.mrb[8].mxu1  ;;  %v1480_v15 = vpack.c.bf16 %v4969_v12, %v4965_v10 }
 0x286   : > { %v1390_v16 = vadd.f32 %v1389_v14, %v6274_v56  ;;  %v1391_v17 = vpop.f32.mrb[9].mxu1  ;;  %v1481_v18 = vpack.c.bf16 %v4971_v13, %v4967_v11 }
 0x287   : > { %v1392_v19 = vadd.f32 %v1391_v17, %v6277_v57  ;;  %v1393_v20 = vpop.f32.mrb[10].mxu1 }
 0x288   : > { %4980 = vtanh.f32 %v1390_v16  ;;  %v1394_v21 = vadd.f32 %v1393_v20, %v6274_v56  ;;  %v1395_v22 = vpop.f32.mrb[11].mxu1  ;;  %4319 = vmatprep.mubr.msk.bf16.mxu0 %vm993_vm0, %v1481_v18 }
 0x289   : > { %4982 = vtanh.f32 %v1392_v19  ;;  %v1396_v23 = vadd.f32 %v1395_v22, %v6277_v57  ;;  %1685 = vmatmul.mubr.bf16.vlgmr.msra.gmra.mrb[32].mxu0 %v1480_v15 }
 0x28a   : > { %v4973_v24 = vpop.eup %4972  ;;  %4984 = vtanh.f32 %v1394_v21 }
 0x28b   : > { %v4975_v25 = vpop.eup %4974  ;;  %4986 = vtanh.f32 %v1396_v23 }
 0x28c   : > { %v4977_v26 = vpop.eup %4976 }
 0x28d   : > { %v4979_v27 = vpop.eup %4978  ;;  %v1399_v43 = vpop.f32.mrb[12].mxu1  ;;  %v1482_v28 = vpack.c.bf16 %v4977_v26, %v4973_v24 }
 0x28e   : > { %v1400_v29 = vadd.f32 %v1399_v43, %v6274_v56  ;;  %v1401_v30 = vpop.f32.mrb[13].mxu1  ;;  %v1483_v31 = vpack.c.bf16 %v4979_v27, %v4975_v25 }
 0x28f   : > { %v1402_v44 = vadd.f32 %v1401_v30, %v6277_v57  ;;  %v1403_v32 = vpop.f32.mrb[14].mxu1 }
 0x290   : > { %4988 = vtanh.f32 %v1400_v29  ;;  %v1404_v33 = vadd.f32 %v1403_v32, %v6274_v56  ;;  %v1405_v34 = vpop.f32.mrb[15].mxu1  ;;  %4320 = vmatprep.mubr.msk.bf16.mxu0 %vm993_vm0, %v1483_v31 }
 0x291   : > { %4990 = vtanh.f32 %v1402_v44  ;;  %v1406_v35 = vadd.f32 %v1405_v34, %v6277_v57  ;;  %1695 = vmatmul.mubr.bf16.gmra.mrb[36].mxu0 %v1482_v28 }
 0x292   : > { %v4981_v36 = vpop.eup %4980  ;;  %4992 = vtanh.f32 %v1404_v33 }
 0x293   : > { %v4983_v37 = vpop.eup %4982  ;;  %4994 = vtanh.f32 %v1406_v35 }
 0x294   : > { %v4985_v38 = vpop.eup %4984 }
 0x295   : > { %v4987_v39 = vpop.eup %4986  ;;  %v1409_v41 = vpop.f32.mrb[16].mxu1  ;;  %v1484_v45 = vpack.c.bf16 %v4985_v38, %v4981_v36 }
 0x296   : > { %v1410_v46 = vadd.f32 %v1409_v41, %v6274_v56  ;;  %v1411_v47 = vpop.f32.mrb[17].mxu1  ;;  %v1485_v48 = vpack.c.bf16 %v4987_v39, %v4983_v37 }
 0x297   : > { %v1412_v49 = vadd.f32 %v1411_v47, %v6277_v57  ;;  %v1413_v50 = vpop.f32.mrb[18].mxu1  ;;  %v4719_v47 = vld [vmem:[%s7047_s8 + $0x74] ss:$8 sps:$4 sm:$0xff]  }
 0x298   : > { %4996 = vtanh.f32 %v1410_v46  ;;  %v1414_v51 = vadd.f32 %v1413_v50, %v6274_v56  ;;  %v1415_v52 = vpop.f32.mrb[19].mxu1  ;;  %4321 = vmatprep.mubr.msk.bf16.mxu0 %vm993_vm0, %v1485_v48  ;;  %1983 = vmatprep.subr.bf16.mxu1 %v4719_v47  ;;  %v4720_v48 = vld [vmem:[%s7047_s8 + $0x80] ss:$8 sps:$4 sm:$0xff]   ;;  %v4723_v50 = vld [vmem:[%s7047_s8 + $0x90] ss:$8 sps:$4 sm:$0xff]  }
 0x299   : > { %4998 = vtanh.f32 %v1412_v49  ;;  %v1416_v53 = vadd.f32 %v1415_v52, %v6277_v57  ;;  %1705 = vmatmul.mubr.bf16.gmra.mrb[40].mxu0 %v1484_v45  ;;  %v4722_v49 = vld [vmem:[%s7047_s8 + $0x84] ss:$8 sps:$4 sm:$0xff]   ;;  %v4726_v52 = vld [vmem:[%s7049_s10] ss:$8 sps:$4 sm:$0xff]  }
 0x29a   : > { %v4989_v54 = vpop.eup %4988  ;;  %5000 = vtanh.f32 %v1414_v51  ;;  %v4725_v51 = vld [vmem:[%s7047_s8 + $0x94] ss:$8 sps:$4 sm:$0xff]  }
 0x29b   : > { %v4991_v55 = vpop.eup %4990  ;;  %5002 = vtanh.f32 %v1416_v53  ;;  %v4728_v53 = vld [vmem:[%s7049_s10 + $0x4] ss:$8 sps:$4 sm:$0xff]  }
 0x29c   : > { %v4993_v58 = vpop.eup %4992  ;;  %2286 = vmatprep.subr.bf16.mxu0 %v4728_v53 }
 0x29d   : > { %v4995_v59 = vpop.eup %4994  ;;  %v1419_v60 = vpop.f32.mrb[20].mxu1  ;;  %v1486_v61 = vpack.c.bf16 %v4993_v58, %v4989_v54  ;;  %v4731_v54 = vld [vmem:[%s7049_s10 + $0x14] ss:$8 sps:$4 sm:$0xff]   ;;  %2287 = vmatpush1.bf16.msra.mxu0 %v4726_v52  ;;  %v4734_v58 = vld [vmem:[%s7049_s10 + $0x24] ss:$8 sps:$4 sm:$0xff]  }
 0x29e   : > { %v1420_v62 = vadd.f32 %v1419_v60, %v6274_v56  ;;  %v1421_v63 = vpop.f32.mrb[21].mxu1  ;;  %v1487_v0 = vpack.c.bf16 %v4995_v59, %v4991_v55  ;;  %v4729_v55 = vld [vmem:[%s7049_s10 + $0x10] ss:$8 sps:$4 sm:$0xff]   ;;  %2288 = vmatprep.subr.bf16.mxu0 %v4731_v54  ;;  %v4732_v59 = vld [vmem:[%s7049_s10 + $0x20] ss:$8 sps:$4 sm:$0xff]  }
 0x29f   : > { %v1422_v1 = vadd.f32 %v1421_v63, %v6277_v57  ;;  %v1423_v2 = vpop.f32.mrb[22].mxu1  ;;  %v4737_v60 = vld [vmem:[%s7049_s10 + $0x34] ss:$8 sps:$4 sm:$0xff]   ;;  %v4738_v63 = vld [vmem:[%s7049_s10 + $0x40] ss:$8 sps:$4 sm:$0xff]  }
 0x2a0   : > { %5004 = vtanh.f32 %v1420_v62  ;;  %v1424_v3 = vadd.f32 %v1423_v2, %v6274_v56  ;;  %v1425_v4 = vpop.f32.mrb[23].mxu1  ;;  %4322 = vmatprep.mubr.msk.bf16.mxu0 %vm993_vm0, %v1487_v0  ;;  %v4740_v62 = vld [vmem:[%s7049_s10 + $0x44] ss:$8 sps:$4 sm:$0xff]   ;;  %v4743_v0 = vld [vmem:[%s7049_s10 + $0x54] ss:$8 sps:$4 sm:$0xff]  }
 0x2a1   : > { %5006 = vtanh.f32 %v1422_v1  ;;  %v1426_v5 = vadd.f32 %v1425_v4, %v6277_v57  ;;  %1715 = vmatmul.mubr.bf16.gmra.mrb[44].mxu0 %v1486_v61  ;;  %v4735_v61 = vld [vmem:[%s7049_s10 + $0x30] ss:$8 sps:$4 sm:$0xff]   ;;  %v4746_v2 = vld [vmem:[%s7049_s10 + $0x64] ss:$8 sps:$4 sm:$0xff]   ;;  %v1516_v4 = vld [vmem:[%s7118_s7] sm:$0x3] }
 0x2a2   : > { %v4997_v6 = vpop.eup %4996  ;;  %5008 = vtanh.f32 %v1424_v3  ;;  %2289 = vmatpush1.bf16.msra.mxu0 %v4729_v55  ;;  %v4741_v1 = vld [vmem:[%s7049_s10 + $0x50] ss:$8 sps:$4 sm:$0xff]   ;;  %v4744_v3 = vld [vmem:[%s7049_s10 + $0x60] ss:$8 sps:$4 sm:$0xff]  }
 0x2a3   : > { %v4999_v7 = vpop.eup %4998  ;;  %5010 = vtanh.f32 %v1426_v5  ;;  %2290 = vmatprep.subr.bf16.mxu0 %v4734_v58  ;;  %v6383_v5 = vrot.slane %v1516_v4, %v6157_v40 }
 0x2a4   : > { %v5001_v8 = vpop.eup %5000 }
 0x2a5   : > { %v5003_v9 = vpop.eup %5002  ;;  %v1429_v10 = vpop.f32.mrb[24].mxu1  ;;  %v1488_v11 = vpack.c.bf16 %v5001_v8, %v4997_v6  ;;  %v6386_v6 = vrot.slane %v1516_v4, %v6162_v42 }
 0x2a6   : > { %v1430_v12 = vadd.f32 %v1429_v10, %v6274_v56  ;;  %v1431_v13 = vpop.f32.mrb[25].mxu1  ;;  %v1489_v14 = vpack.c.bf16 %v5003_v9, %v4999_v7  ;;  %2291 = vmatpush1.bf16.msra.mxu0 %v4732_v59 }
 0x2a7   : > { %v1432_v15 = vadd.f32 %v1431_v13, %v6277_v57  ;;  %v1433_v16 = vpop.f32.mrb[26].mxu1  ;;  %2292 = vmatprep.subr.bf16.mxu0 %v4737_v60 }
 0x2a8   : > { %5012 = vtanh.f32 %v1430_v12  ;;  %v1434_v17 = vadd.f32 %v1433_v16, %v6274_v56  ;;  %v1435_v18 = vpop.f32.mrb[27].mxu1  ;;  %4323 = vmatprep.mubr.msk.bf16.mxu0 %vm993_vm0, %v1489_v14 }
 0x2a9   : > { %5014 = vtanh.f32 %v1432_v15  ;;  %v1436_v19 = vadd.f32 %v1435_v18, %v6277_v57  ;;  %1725 = vmatmul.mubr.bf16.gmra.mrb[48].mxu0 %v1488_v11 }
 0x2aa   : > { %v5005_v20 = vpop.eup %5004  ;;  %5016 = vtanh.f32 %v1434_v17  ;;  %2293 = vmatpush1.bf16.msra.mxu0 %v4735_v61 }
 0x2ab   : > { %v5007_v21 = vpop.eup %5006  ;;  %5018 = vtanh.f32 %v1436_v19  ;;  %2294 = vmatprep.subr.bf16.mxu0 %v4740_v62 }
 0x2ac   : > { %v5009_v22 = vpop.eup %5008 }
 0x2ad   : > { %v5011_v23 = vpop.eup %5010  ;;  %v1439_v24 = vpop.f32.mrb[28].mxu1  ;;  %v1490_v25 = vpack.c.bf16 %v5009_v22, %v5005_v20 }
 0x2ae   : > { %v1440_v26 = vadd.f32 %v1439_v24, %v6274_v56  ;;  %v1441_v27 = vpop.f32.mrb[29].mxu1  ;;  %v1491_v43 = vpack.c.bf16 %v5011_v23, %v5007_v21  ;;  %2295 = vmatpush1.bf16.msra.mxu0 %v4738_v63 }
 0x2af   : > { %v1442_v28 = vadd.f32 %v1441_v27, %v6277_v57  ;;  %v1443_v29 = vpop.f32.mrb[30].mxu1  ;;  %2296 = vmatprep.subr.bf16.mxu0 %v4743_v0 }
 0x2b0   : > { %5020 = vtanh.f32 %v1440_v26  ;;  %v1444_v30 = vadd.f32 %v1443_v29, %v6274_v56  ;;  %v1445_v31 = vpop.f32.mrb[31].mxu1  ;;  %4324 = vmatprep.mubr.msk.bf16.mxu0 %vm993_vm0, %v1491_v43 }
 0x2b1   : > { %5022 = vtanh.f32 %v1442_v28  ;;  %v1446_v44 = vadd.f32 %v1445_v31, %v6277_v57  ;;  %1735 = vmatmul.mubr.bf16.gmra.mrb[52].mxu0 %v1490_v25  ;;  %v4717_v57 = vld [vmem:[%s7047_s8 + $0x70] ss:$8 sps:$4 sm:$0xff]  }
 0x2b2   : > { %v5013_v32 = vpop.eup %5012  ;;  %5024 = vtanh.f32 %v1444_v30  ;;  %1984 = vmatpush1.bf16.msra.mxu1 %v4717_v57  ;;  %2297 = vmatpush1.bf16.msra.mxu0 %v4741_v1 }
 0x2b3   : > { %v5015_v33 = vpop.eup %5014  ;;  %5026 = vtanh.f32 %v1446_v44  ;;  %1985 = vmatprep.subr.bf16.mxu1 %v4722_v49  ;;  %2298 = vmatprep.subr.bf16.mxu0 %v4746_v2 }
 0x2b4   : > { %v5017_v34 = vpop.eup %5016 }
 0x2b5   : > { %v5019_v35 = vpop.eup %5018  ;;  %v1492_v36 = vpack.c.bf16 %v5017_v34, %v5013_v32 }
 0x2b6   : > { %v1493_v37 = vpack.c.bf16 %v5019_v35, %v5015_v33  ;;  %1986 = vmatpush1.bf16.msra.mxu1 %v4720_v48  ;;  %2299 = vmatpush1.bf16.msra.mxu0 %v4744_v3 }
 0x2b7   : > { %1987 = vmatprep.subr.bf16.mxu1 %v4725_v51 }
 0x2b8   : > { %4325 = vmatprep.mubr.msk.bf16.mxu0 %vm993_vm0, %v1493_v37 }
 0x2b9   : > { %1745 = vmatmul.mubr.bf16.gmra.mrb[56].mxu0 %v1492_v36 }
 0x2ba   : > { %v5021_v38 = vpop.eup %5020  ;;  %1988 = vmatpush1.bf16.msra.mxu1 %v4723_v50 }
 0x2bb   : > { %v5023_v56 = vpop.eup %5022 }
 0x2bc   : > { %v5025_v39 = vpop.eup %5024 }
 0x2bd   : > { %v5027_v41 = vpop.eup %5026  ;;  %v1494_v45 = vpack.c.bf16 %v5025_v39, %v5021_v38 }
 0x2be   : > { %v1495_v46 = vpack.c.bf16 %v5027_v41, %v5023_v56 }
 0x2c0   : > { %4326 = vmatprep.mubr.msk.bf16.mxu0 %vm993_vm0, %v1495_v46 }
 0x2c1   : > { %1755 = vmatmul.mubr.bf16.gmra.mrb[60].mxu0 %v1494_v45 }
 0x35c   : > { %v1686_v7 = vpop.f32.mrb[32].mxu0 }
 0x35d   : > { %v1687_v8 = vadd.f32 %v1686_v7, %v6383_v5  ;;  %v1688_v9 = vpop.f32.mrb[33].mxu0 }
 0x35e   : > { %v1689_v10 = vadd.f32 %v1688_v9, %v6386_v6  ;;  %v1690_v11 = vpop.f32.mrb[34].mxu0 }
 0x35f   : > { %5028 = vtanh.f32 %v1687_v8  ;;  %v1691_v12 = vadd.f32 %v1690_v11, %v6383_v5  ;;  %v1692_v13 = vpop.f32.mrb[35].mxu0 }
 0x360   : > { %5030 = vtanh.f32 %v1689_v10  ;;  %v1693_v14 = vadd.f32 %v1692_v13, %v6386_v6 }
 0x361   : > { %5032 = vtanh.f32 %v1691_v12 }
 0x362   : > { %5034 = vtanh.f32 %v1693_v14 }
 0x364   : > { %v1696_v15 = vpop.f32.mrb[36].mxu0 }
 0x365   : > { %v1697_v16 = vadd.f32 %v1696_v15, %v6383_v5  ;;  %v1698_v17 = vpop.f32.mrb[37].mxu0 }
 0x366   : > { %v1699_v18 = vadd.f32 %v1698_v17, %v6386_v6  ;;  %v1700_v19 = vpop.f32.mrb[38].mxu0 }
 0x367   : > { %5036 = vtanh.f32 %v1697_v16  ;;  %v1701_v20 = vadd.f32 %v1700_v19, %v6383_v5  ;;  %v1702_v21 = vpop.f32.mrb[39].mxu0 }
 0x368   : > { %5038 = vtanh.f32 %v1699_v18  ;;  %v1703_v22 = vadd.f32 %v1702_v21, %v6386_v6 }
 0x369   : > { %v5029_v23 = vpop.eup %5028  ;;  %5040 = vtanh.f32 %v1701_v20 }
 0x36a   : > { %v5031_v24 = vpop.eup %5030  ;;  %5042 = vtanh.f32 %v1703_v22 }
 0x36b   : > { %v5033_v25 = vpop.eup %5032 }
 0x36c   : > { %v5035_v26 = vpop.eup %5034  ;;  %v1706_v27 = vpop.f32.mrb[40].mxu0  ;;  %v1797_v43 = vpack.c.bf16 %v5033_v25, %v5029_v23 }
 0x36d   : > { %v1707_v28 = vadd.f32 %v1706_v27, %v6383_v5  ;;  %v1708_v29 = vpop.f32.mrb[41].mxu0  ;;  %v1798_v30 = vpack.c.bf16 %v5035_v26, %v5031_v24 }
 0x36e   : > { %v1709_v31 = vadd.f32 %v1708_v29, %v6386_v6  ;;  %v1710_v44 = vpop.f32.mrb[42].mxu0 }
 0x36f   : > { %5044 = vtanh.f32 %v1707_v28  ;;  %v1711_v32 = vadd.f32 %v1710_v44, %v6383_v5  ;;  %v1712_v33 = vpop.f32.mrb[43].mxu0  ;;  %4347 = vmatprep.mubr.msk.bf16.mxu1 %vm993_vm0, %v1798_v30 }
 0x370   : > { %5046 = vtanh.f32 %v1709_v31  ;;  %v1713_v34 = vadd.f32 %v1712_v33, %v6386_v6  ;;  %2002 = vmatmul.mubr.bf16.vlgmr.msra.gmra.mrb[32].mxu1 %v1797_v43 }
 0x371   : > { %v5037_v35 = vpop.eup %5036  ;;  %5048 = vtanh.f32 %v1711_v32 }
 0x372   : > { %v5039_v36 = vpop.eup %5038  ;;  %5050 = vtanh.f32 %v1713_v34 }
 0x373   : > { %v5041_v37 = vpop.eup %5040 }
 0x374   : > { %v5043_v38 = vpop.eup %5042  ;;  %v1716_v56 = vpop.f32.mrb[44].mxu0  ;;  %v1799_v39 = vpack.c.bf16 %v5041_v37, %v5037_v35 }
 0x375   : > { %v1717_v41 = vadd.f32 %v1716_v56, %v6383_v5  ;;  %v1718_v45 = vpop.f32.mrb[45].mxu0  ;;  %v1800_v46 = vpack.c.bf16 %v5043_v38, %v5039_v36 }
 0x376   : > { %v1719_v57 = vadd.f32 %v1718_v45, %v6386_v6  ;;  %v1720_v47 = vpop.f32.mrb[46].mxu0 }
 0x377   : > { %5052 = vtanh.f32 %v1717_v41  ;;  %v1721_v48 = vadd.f32 %v1720_v47, %v6383_v5  ;;  %v1722_v49 = vpop.f32.mrb[47].mxu0  ;;  %4348 = vmatprep.mubr.msk.bf16.mxu1 %vm993_vm0, %v1800_v46 }
 0x378   : > { %5054 = vtanh.f32 %v1719_v57  ;;  %v1723_v50 = vadd.f32 %v1722_v49, %v6386_v6  ;;  %2012 = vmatmul.mubr.bf16.gmra.mrb[36].mxu1 %v1799_v39 }
 0x379   : > { %v5045_v51 = vpop.eup %5044  ;;  %5056 = vtanh.f32 %v1721_v48 }
 0x37a   : > { %v5047_v52 = vpop.eup %5046  ;;  %5058 = vtanh.f32 %v1723_v50 }
 0x37b   : > { %v5049_v53 = vpop.eup %5048 }
 0x37c   : > { %v5051_v54 = vpop.eup %5050  ;;  %v1726_v55 = vpop.f32.mrb[48].mxu0  ;;  %v1801_v58 = vpack.c.bf16 %v5049_v53, %v5045_v51 }
 0x37d   : > { %v1727_v59 = vadd.f32 %v1726_v55, %v6383_v5  ;;  %v1728_v60 = vpop.f32.mrb[49].mxu0  ;;  %v1802_v61 = vpack.c.bf16 %v5051_v54, %v5047_v52 }
 0x37e   : > { %v1729_v62 = vadd.f32 %v1728_v60, %v6386_v6  ;;  %v1730_v63 = vpop.f32.mrb[50].mxu0  ;;  %v4749_v60 = vld [vmem:[%s7049_s10 + $0x74] ss:$8 sps:$4 sm:$0xff]  }
 0x37f   : > { %5060 = vtanh.f32 %v1727_v59  ;;  %v1731_v0 = vadd.f32 %v1730_v63, %v6383_v5  ;;  %v1732_v1 = vpop.f32.mrb[51].mxu0  ;;  %4349 = vmatprep.mubr.msk.bf16.mxu1 %vm993_vm0, %v1802_v61  ;;  %2300 = vmatprep.subr.bf16.mxu0 %v4749_v60  ;;  %v4750_v61 = vld [vmem:[%s7049_s10 + $0x80] ss:$8 sps:$4 sm:$0xff]   ;;  %v4753_v63 = vld [vmem:[%s7049_s10 + $0x90] ss:$8 sps:$4 sm:$0xff]  }
 0x380   : > { %5062 = vtanh.f32 %v1729_v62  ;;  %v1733_v2 = vadd.f32 %v1732_v1, %v6386_v6  ;;  %2022 = vmatmul.mubr.bf16.gmra.mrb[40].mxu1 %v1801_v58  ;;  %v4752_v62 = vld [vmem:[%s7049_s10 + $0x84] ss:$8 sps:$4 sm:$0xff]   ;;  %v4756_v1 = vld [vmem:[%s7051_s12] ss:$8 sps:$4 sm:$0xff]  }
 0x381   : > { %v5053_v3 = vpop.eup %5052  ;;  %5064 = vtanh.f32 %v1731_v0  ;;  %v4755_v0 = vld [vmem:[%s7049_s10 + $0x94] ss:$8 sps:$4 sm:$0xff]  }
 0x382   : > { %v5055_v4 = vpop.eup %5054  ;;  %5066 = vtanh.f32 %v1733_v2  ;;  %v4758_v2 = vld [vmem:[%s7051_s12 + $0x4] ss:$8 sps:$4 sm:$0xff]  }
 0x383   : > { %v5057_v7 = vpop.eup %5056  ;;  %2611 = vmatprep.subr.bf16.mxu1 %v4758_v2 }
 0x384   : > { %v5059_v8 = vpop.eup %5058  ;;  %v1736_v9 = vpop.f32.mrb[52].mxu0  ;;  %v1803_v10 = vpack.c.bf16 %v5057_v7, %v5053_v3  ;;  %v4761_v3 = vld [vmem:[%s7051_s12 + $0x14] ss:$8 sps:$4 sm:$0xff]   ;;  %2612 = vmatpush1.bf16.msra.mxu1 %v4756_v1  ;;  %v4764_v7 = vld [vmem:[%s7051_s12 + $0x24] ss:$8 sps:$4 sm:$0xff]  }
 0x385   : > { %v1737_v11 = vadd.f32 %v1736_v9, %v6383_v5  ;;  %v1738_v12 = vpop.f32.mrb[53].mxu0  ;;  %v1804_v13 = vpack.c.bf16 %v5059_v8, %v5055_v4  ;;  %v4759_v4 = vld [vmem:[%s7051_s12 + $0x10] ss:$8 sps:$4 sm:$0xff]   ;;  %2613 = vmatprep.subr.bf16.mxu1 %v4761_v3  ;;  %v4762_v8 = vld [vmem:[%s7051_s12 + $0x20] ss:$8 sps:$4 sm:$0xff]  }
 0x386   : > { %v1739_v14 = vadd.f32 %v1738_v12, %v6386_v6  ;;  %v1740_v15 = vpop.f32.mrb[54].mxu0  ;;  %v4767_v9 = vld [vmem:[%s7051_s12 + $0x34] ss:$8 sps:$4 sm:$0xff]   ;;  %v4768_v12 = vld [vmem:[%s7051_s12 + $0x40] ss:$8 sps:$4 sm:$0xff]  }
 0x387   : > { %5068 = vtanh.f32 %v1737_v11  ;;  %v1741_v16 = vadd.f32 %v1740_v15, %v6383_v5  ;;  %v1742_v17 = vpop.f32.mrb[55].mxu0  ;;  %4350 = vmatprep.mubr.msk.bf16.mxu1 %vm993_vm0, %v1804_v13  ;;  %v4770_v11 = vld [vmem:[%s7051_s12 + $0x44] ss:$8 sps:$4 sm:$0xff]   ;;  %v1833_v13 = vld [vmem:[%s7048_s9] sm:$0x3] }
 0x388   : > { %5070 = vtanh.f32 %v1739_v14  ;;  %v1743_v18 = vadd.f32 %v1742_v17, %v6386_v6  ;;  %2032 = vmatmul.mubr.bf16.gmra.mrb[44].mxu1 %v1803_v10  ;;  %v4765_v10 = vld [vmem:[%s7051_s12 + $0x30] ss:$8 sps:$4 sm:$0xff]   ;;  %v6480_v14 = vrot.slane %v1833_v13, %v6157_v40  ;;  %v6483_v15 = vrot.slane %v1833_v13, %v6162_v42 }
 0x389   : > { %v5061_v19 = vpop.eup %5060  ;;  %5072 = vtanh.f32 %v1741_v16  ;;  %2614 = vmatpush1.bf16.msra.mxu1 %v4759_v4 }
 0x38a   : > { %v5063_v20 = vpop.eup %5062  ;;  %5074 = vtanh.f32 %v1743_v18  ;;  %2615 = vmatprep.subr.bf16.mxu1 %v4764_v7 }
 0x38b   : > { %v5065_v21 = vpop.eup %5064 }
 0x38c   : > { %v5067_v22 = vpop.eup %5066  ;;  %v1746_v23 = vpop.f32.mrb[56].mxu0  ;;  %v1805_v24 = vpack.c.bf16 %v5065_v21, %v5061_v19 }
 0x38d   : > { %v1747_v25 = vadd.f32 %v1746_v23, %v6383_v5  ;;  %v1748_v26 = vpop.f32.mrb[57].mxu0  ;;  %v1806_v27 = vpack.c.bf16 %v5067_v22, %v5063_v20  ;;  %2616 = vmatpush1.bf16.msra.mxu1 %v4762_v8 }
 0x38e   : > { %v1749_v43 = vadd.f32 %v1748_v26, %v6386_v6  ;;  %v1750_v28 = vpop.f32.mrb[58].mxu0  ;;  %2617 = vmatprep.subr.bf16.mxu1 %v4767_v9 }
 0x38f   : > { %5076 = vtanh.f32 %v1747_v25  ;;  %v1751_v29 = vadd.f32 %v1750_v28, %v6383_v5  ;;  %v1752_v30 = vpop.f32.mrb[59].mxu0  ;;  %4351 = vmatprep.mubr.msk.bf16.mxu1 %vm993_vm0, %v1806_v27 }
 0x390   : > { %5078 = vtanh.f32 %v1749_v43  ;;  %v1753_v31 = vadd.f32 %v1752_v30, %v6386_v6  ;;  %2042 = vmatmul.mubr.bf16.gmra.mrb[48].mxu1 %v1805_v24 }
 0x391   : > { %v5069_v44 = vpop.eup %5068  ;;  %5080 = vtanh.f32 %v1751_v29  ;;  %2618 = vmatpush1.bf16.msra.mxu1 %v4765_v10 }
 0x392   : > { %v5071_v32 = vpop.eup %5070  ;;  %5082 = vtanh.f32 %v1753_v31  ;;  %2619 = vmatprep.subr.bf16.mxu1 %v4770_v11 }
 0x393   : > { %v5073_v33 = vpop.eup %5072 }
 0x394   : > { %v5075_v34 = vpop.eup %5074  ;;  %v1756_v35 = vpop.f32.mrb[60].mxu0  ;;  %v1807_v36 = vpack.c.bf16 %v5073_v33, %v5069_v44 }
 0x395   : > { %v1757_v37 = vadd.f32 %v1756_v35, %v6383_v5  ;;  %v1758_v38 = vpop.f32.mrb[61].mxu0  ;;  %v1808_v56 = vpack.c.bf16 %v5075_v34, %v5071_v32  ;;  %2620 = vmatpush1.bf16.msra.mxu1 %v4768_v12 }
 0x396   : > { %v1759_v39 = vadd.f32 %v1758_v38, %v6386_v6  ;;  %v1760_v41 = vpop.f32.mrb[62].mxu0 }
 0x397   : > { %5084 = vtanh.f32 %v1757_v37  ;;  %v1761_v45 = vadd.f32 %v1760_v41, %v6383_v5  ;;  %v1762_v46 = vpop.f32.mrb[63].mxu0  ;;  %4352 = vmatprep.mubr.msk.bf16.mxu1 %vm993_vm0, %v1808_v56 }
 0x398   : > { %5086 = vtanh.f32 %v1759_v39  ;;  %v1763_v57 = vadd.f32 %v1762_v46, %v6386_v6  ;;  %2052 = vmatmul.mubr.bf16.gmra.mrb[52].mxu1 %v1807_v36  ;;  %v4747_v6 = vld [vmem:[%s7049_s10 + $0x70] ss:$8 sps:$4 sm:$0xff]  }
 0x399   : > { %v5077_v47 = vpop.eup %5076  ;;  %5088 = vtanh.f32 %v1761_v45  ;;  %2301 = vmatpush1.bf16.msra.mxu0 %v4747_v6 }
 0x39a   : > { %v5079_v48 = vpop.eup %5078  ;;  %5090 = vtanh.f32 %v1763_v57  ;;  %2302 = vmatprep.subr.bf16.mxu0 %v4752_v62 }
 0x39b   : > { %v5081_v49 = vpop.eup %5080 }
 0x39c   : > { %v5083_v50 = vpop.eup %5082  ;;  %v1809_v51 = vpack.c.bf16 %v5081_v49, %v5077_v47 }
 0x39d   : > { %v1810_v52 = vpack.c.bf16 %v5083_v50, %v5079_v48  ;;  %2303 = vmatpush1.bf16.msra.mxu0 %v4750_v61 }
 0x39e   : > { %2304 = vmatprep.subr.bf16.mxu0 %v4755_v0 }
 0x39f   : > { %4353 = vmatprep.mubr.msk.bf16.mxu1 %vm993_vm0, %v1810_v52 }
 0x3a0   : > { %2062 = vmatmul.mubr.bf16.gmra.mrb[56].mxu1 %v1809_v51 }
 0x3a1   : > { %v5085_v53 = vpop.eup %5084  ;;  %2305 = vmatpush1.bf16.msra.mxu0 %v4753_v63 }
 0x3a2   : > { %v5087_v5 = vpop.eup %5086 }
 0x3a3   : > { %v5089_v54 = vpop.eup %5088 }
 0x3a4   : > { %v5091_v55 = vpop.eup %5090  ;;  %v1811_v58 = vpack.c.bf16 %v5089_v54, %v5085_v53 }
 0x3a5   : > { %v1812_v59 = vpack.c.bf16 %v5091_v55, %v5087_v5 }
 0x3a7   : > { %4354 = vmatprep.mubr.msk.bf16.mxu1 %vm993_vm0, %v1812_v59 }
 0x3a8   : > { %2072 = vmatmul.mubr.bf16.gmra.mrb[60].mxu1 %v1811_v58 }
 0x443   : > { %v2003_v16 = vpop.f32.mrb[32].mxu1 }
 0x444   : > { %v2004_v17 = vadd.f32 %v2003_v16, %v6480_v14  ;;  %v2005_v18 = vpop.f32.mrb[33].mxu1 }
 0x445   : > { %v2006_v19 = vadd.f32 %v2005_v18, %v6483_v15  ;;  %v2007_v20 = vpop.f32.mrb[34].mxu1 }
 0x446   : > { %5092 = vtanh.f32 %v2004_v17  ;;  %v2008_v21 = vadd.f32 %v2007_v20, %v6480_v14  ;;  %v2009_v22 = vpop.f32.mrb[35].mxu1 }
 0x447   : > { %5094 = vtanh.f32 %v2006_v19  ;;  %v2010_v23 = vadd.f32 %v2009_v22, %v6483_v15 }
 0x448   : > { %5096 = vtanh.f32 %v2008_v21 }
 0x449   : > { %5098 = vtanh.f32 %v2010_v23 }
 0x44b   : > { %v2013_v24 = vpop.f32.mrb[36].mxu1 }
 0x44c   : > { %v2014_v25 = vadd.f32 %v2013_v24, %v6480_v14  ;;  %v2015_v26 = vpop.f32.mrb[37].mxu1 }
 0x44d   : > { %v2016_v27 = vadd.f32 %v2015_v26, %v6483_v15  ;;  %v2017_v43 = vpop.f32.mrb[38].mxu1 }
 0x44e   : > { %5100 = vtanh.f32 %v2014_v25  ;;  %v2018_v28 = vadd.f32 %v2017_v43, %v6480_v14  ;;  %v2019_v29 = vpop.f32.mrb[39].mxu1 }
 0x44f   : > { %5102 = vtanh.f32 %v2016_v27  ;;  %v2020_v30 = vadd.f32 %v2019_v29, %v6483_v15 }
 0x450   : > { %v5093_v31 = vpop.eup %5092  ;;  %5104 = vtanh.f32 %v2018_v28 }
 0x451   : > { %v5095_v44 = vpop.eup %5094  ;;  %5106 = vtanh.f32 %v2020_v30 }
 0x452   : > { %v5097_v32 = vpop.eup %5096 }
 0x453   : > { %v5099_v33 = vpop.eup %5098  ;;  %v2023_v34 = vpop.f32.mrb[40].mxu1  ;;  %v2114_v35 = vpack.c.bf16 %v5097_v32, %v5093_v31 }
 0x454   : > { %v2024_v36 = vadd.f32 %v2023_v34, %v6480_v14  ;;  %v2025_v37 = vpop.f32.mrb[41].mxu1  ;;  %v2115_v38 = vpack.c.bf16 %v5099_v33, %v5095_v44 }
 0x455   : > { %v2026_v56 = vadd.f32 %v2025_v37, %v6483_v15  ;;  %v2027_v39 = vpop.f32.mrb[42].mxu1 }
 0x456   : > { %5108 = vtanh.f32 %v2024_v36  ;;  %v2028_v41 = vadd.f32 %v2027_v39, %v6480_v14  ;;  %v2029_v45 = vpop.f32.mrb[43].mxu1  ;;  %4375 = vmatprep.mubr.msk.bf16.mxu0 %vm993_vm0, %v2115_v38 }
 0x457   : > { %5110 = vtanh.f32 %v2026_v56  ;;  %v2030_v46 = vadd.f32 %v2029_v45, %v6483_v15  ;;  %2319 = vmatmul.mubr.bf16.vlgmr.msra.gmra.mrb[64].mxu0 %v2114_v35 }
 0x458   : > { %v5101_v57 = vpop.eup %5100  ;;  %5112 = vtanh.f32 %v2028_v41 }
 0x459   : > { %v5103_v47 = vpop.eup %5102  ;;  %5114 = vtanh.f32 %v2030_v46 }
 0x45a   : > { %v5105_v48 = vpop.eup %5104 }
 0x45b   : > { %v5107_v49 = vpop.eup %5106  ;;  %v2033_v50 = vpop.f32.mrb[44].mxu1  ;;  %v2116_v51 = vpack.c.bf16 %v5105_v48, %v5101_v57 }
 0x45c   : > { %v2034_v52 = vadd.f32 %v2033_v50, %v6480_v14  ;;  %v2035_v53 = vpop.f32.mrb[45].mxu1  ;;  %v2117_v5 = vpack.c.bf16 %v5107_v49, %v5103_v47 }
 0x45d   : > { %v2036_v54 = vadd.f32 %v2035_v53, %v6483_v15  ;;  %v2037_v55 = vpop.f32.mrb[46].mxu1 }
 0x45e   : > { %5116 = vtanh.f32 %v2034_v52  ;;  %v2038_v58 = vadd.f32 %v2037_v55, %v6480_v14  ;;  %v2039_v59 = vpop.f32.mrb[47].mxu1  ;;  %4376 = vmatprep.mubr.msk.bf16.mxu0 %vm993_vm0, %v2117_v5 }
 0x45f   : > { %5118 = vtanh.f32 %v2036_v54  ;;  %v2040_v6 = vadd.f32 %v2039_v59, %v6483_v15  ;;  %2329 = vmatmul.mubr.bf16.gmra.mrb[68].mxu0 %v2116_v51 }
 0x460   : > { %v5109_v60 = vpop.eup %5108  ;;  %5120 = vtanh.f32 %v2038_v58 }
 0x461   : > { %v5111_v61 = vpop.eup %5110  ;;  %5122 = vtanh.f32 %v2040_v6 }
 0x462   : > { %v5113_v62 = vpop.eup %5112 }
 0x463   : > { %v5115_v63 = vpop.eup %5114  ;;  %v2043_v0 = vpop.f32.mrb[48].mxu1  ;;  %v2118_v1 = vpack.c.bf16 %v5113_v62, %v5109_v60 }
 0x464   : > { %v2044_v2 = vadd.f32 %v2043_v0, %v6480_v14  ;;  %v2045_v3 = vpop.f32.mrb[49].mxu1  ;;  %v2119_v4 = vpack.c.bf16 %v5115_v63, %v5111_v61 }
 0x465   : > { %v2046_v7 = vadd.f32 %v2045_v3, %v6483_v15  ;;  %v2047_v8 = vpop.f32.mrb[50].mxu1  ;;  %v4771_v3 = vld [vmem:[%s7051_s12 + $0x50] ss:$8 sps:$4 sm:$0xff]  }
 0x466   : > { %5124 = vtanh.f32 %v2044_v2  ;;  %v2048_v9 = vadd.f32 %v2047_v8, %v6480_v14  ;;  %v2049_v10 = vpop.f32.mrb[51].mxu1  ;;  %4377 = vmatprep.mubr.msk.bf16.mxu0 %vm993_vm0, %v2119_v4  ;;  %v4776_v4 = vld [vmem:[%s7051_s12 + $0x64] ss:$8 sps:$4 sm:$0xff]   ;;  %v4779_v8 = vld [vmem:[%s7051_s12 + $0x74] ss:$8 sps:$4 sm:$0xff]  }
 0x467   : > { %5126 = vtanh.f32 %v2046_v7  ;;  %v2050_v11 = vadd.f32 %v2049_v10, %v6483_v15  ;;  %2339 = vmatmul.mubr.bf16.gmra.mrb[72].mxu0 %v2118_v1  ;;  %v4774_v7 = vld [vmem:[%s7051_s12 + $0x60] ss:$8 sps:$4 sm:$0xff]   ;;  %v5638_v10 = vmov 0  }
 0x468   : > { %v5117_v12 = vpop.eup %5116  ;;  %5128 = vtanh.f32 %v2048_v9  ;;  %v4777_v9 = vld [vmem:[%s7051_s12 + $0x70] ss:$8 sps:$4 sm:$0xff]   ;;  %2643 = vmatprep.mubr.bf16.mxu1 %v5638_v10 }
 0x469   : > { %v5119_v13 = vpop.eup %5118  ;;  %5130 = vtanh.f32 %v2050_v11  ;;  %v4780_v11 = vld [vmem:[#allocation2] ss:$8 sps:$4 sm:$0xff]  }
 0x46a   : > { %v5121_v16 = vpop.eup %5120 }
 0x46b   : > { %v5123_v17 = vpop.eup %5122  ;;  %v2053_v18 = vpop.f32.mrb[52].mxu1  ;;  %v2120_v19 = vpack.c.bf16 %v5121_v16, %v5117_v12  ;;  %v4782_v12 = vld [vmem:[#allocation2 + $0x4] ss:$8 sps:$4 sm:$0xff]   ;;  %v4783_v16 = vld [vmem:[#allocation2 + $0x10] ss:$8 sps:$4 sm:$0xff]  }
 0x46c   : > { %v2054_v20 = vadd.f32 %v2053_v18, %v6480_v14  ;;  %v2055_v21 = vpop.f32.mrb[53].mxu1  ;;  %v2121_v22 = vpack.c.bf16 %v5123_v17, %v5119_v13  ;;  %v4785_v13 = vld [vmem:[#allocation2 + $0x14] ss:$8 sps:$4 sm:$0xff]   ;;  %2928 = vmatprep.subr.bf16.mxu0 %v4782_v12  ;;  %v4788_v17 = vld [vmem:[#allocation2 + $0x24] ss:$8 sps:$4 sm:$0xff]  }
 0x46d   : > { %v2056_v23 = vadd.f32 %v2055_v21, %v6483_v15  ;;  %v2057_v24 = vpop.f32.mrb[54].mxu1  ;;  %2929 = vmatpush1.bf16.msra.mxu0 %v4780_v11  ;;  %v4786_v18 = vld [vmem:[#allocation2 + $0x20] ss:$8 sps:$4 sm:$0xff]   ;;  %v4794_v21 = vld [vmem:[#allocation2 + $0x44] ss:$8 sps:$4 sm:$0xff]   ;;  %v2449_v12 = vld [vmem:[%s6581_s29 + $0x10] sm:$0xff] }
 0x46e   : > { %5132 = vtanh.f32 %v2054_v20  ;;  %v2058_v25 = vadd.f32 %v2057_v24, %v6480_v14  ;;  %v2059_v26 = vpop.f32.mrb[55].mxu1  ;;  %4378 = vmatprep.mubr.msk.bf16.mxu0 %vm993_vm0, %v2121_v22  ;;  %2930 = vmatprep.subr.bf16.mxu0 %v4785_v13  ;;  %v4789_v20 = vld [vmem:[#allocation2 + $0x30] ss:$8 sps:$4 sm:$0xff]   ;;  %v4792_v22 = vld [vmem:[#allocation2 + $0x40] ss:$8 sps:$4 sm:$0xff]  }
 0x46f   : > { %5134 = vtanh.f32 %v2056_v23  ;;  %v2060_v27 = vadd.f32 %v2059_v26, %v6483_v15  ;;  %2349 = vmatmul.mubr.bf16.gmra.mrb[76].mxu0 %v2120_v19  ;;  %v4791_v19 = vld [vmem:[#allocation2 + $0x34] ss:$8 sps:$4 sm:$0xff]   ;;  %v4795_v24 = vld [vmem:[#allocation2 + $0x50] ss:$8 sps:$4 sm:$0xff]   ;;  %v4798_v26 = vld [vmem:[#allocation2 + $0x60] ss:$8 sps:$4 sm:$0xff]  }
 0x470   : > { %v5125_v43 = vpop.eup %5124  ;;  %5136 = vtanh.f32 %v2058_v25  ;;  %v4797_v23 = vld [vmem:[#allocation2 + $0x54] ss:$8 sps:$4 sm:$0xff]   ;;  %v4800_v25 = vld [vmem:[#allocation2 + $0x64] ss:$8 sps:$4 sm:$0xff]  }
 0x471   : > { %v5127_v28 = vpop.eup %5126  ;;  %5138 = vtanh.f32 %v2060_v27  ;;  %2931 = vmatpush1.bf16.msra.mxu0 %v4783_v16  ;;  %v2150_v27 = vld [vmem:[%s7050_s11] sm:$0x3] }
 0x472   : > { %v5129_v29 = vpop.eup %5128  ;;  %2932 = vmatprep.subr.bf16.mxu0 %v4788_v17 }
 0x473   : > { %v5131_v30 = vpop.eup %5130  ;;  %v2063_v31 = vpop.f32.mrb[56].mxu1  ;;  %v2122_v44 = vpack.c.bf16 %v5129_v29, %v5125_v43  ;;  %v6551_v43 = vrot.slane %v2150_v27, %v6157_v40 }
 0x474   : > { %v2064_v32 = vadd.f32 %v2063_v31, %v6480_v14  ;;  %v2065_v33 = vpop.f32.mrb[57].mxu1  ;;  %v2123_v34 = vpack.c.bf16 %v5131_v30, %v5127_v28  ;;  %v6554_v28 = vrot.slane %v2150_v27, %v6162_v42 }
 0x475   : > { %v2066_v35 = vadd.f32 %v2065_v33, %v6483_v15  ;;  %v2067_v36 = vpop.f32.mrb[58].mxu1  ;;  %2933 = vmatpush1.bf16.msra.mxu0 %v4786_v18 }
 0x476   : > { %5140 = vtanh.f32 %v2064_v32  ;;  %v2068_v37 = vadd.f32 %v2067_v36, %v6480_v14  ;;  %v2069_v38 = vpop.f32.mrb[59].mxu1  ;;  %4379 = vmatprep.mubr.msk.bf16.mxu0 %vm993_vm0, %v2123_v34  ;;  %2934 = vmatprep.subr.bf16.mxu0 %v4791_v19 }
 0x477   : > { %5142 = vtanh.f32 %v2066_v35  ;;  %v2070_v56 = vadd.f32 %v2069_v38, %v6483_v15  ;;  %2359 = vmatmul.mubr.bf16.gmra.mrb[80].mxu0 %v2122_v44 }
 0x478   : > { %v5133_v39 = vpop.eup %5132  ;;  %5144 = vtanh.f32 %v2068_v37 }
 0x479   : > { %v5135_v41 = vpop.eup %5134  ;;  %5146 = vtanh.f32 %v2070_v56  ;;  %2935 = vmatpush1.bf16.msra.mxu0 %v4789_v20 }
 0x47a   : > { %v5137_v45 = vpop.eup %5136  ;;  %2936 = vmatprep.subr.bf16.mxu0 %v4794_v21  ;;  %v2450_v21 = vld [vmem:[%s6581_s29 + $0x18] sm:$0xff] }
 0x47b   : > { %v5139_v46 = vpop.eup %5138  ;;  %v2073_v57 = vpop.f32.mrb[60].mxu1  ;;  %v2124_v47 = vpack.c.bf16 %v5137_v45, %v5133_v39 }
 0x47c   : > { %v2074_v48 = vadd.f32 %v2073_v57, %v6480_v14  ;;  %v2075_v49 = vpop.f32.mrb[61].mxu1  ;;  %v2125_v50 = vpack.c.bf16 %v5139_v46, %v5135_v41 }
 0x47d   : > { %v2076_v51 = vadd.f32 %v2075_v49, %v6483_v15  ;;  %v2077_v52 = vpop.f32.mrb[62].mxu1  ;;  %2937 = vmatpush1.bf16.msra.mxu0 %v4792_v22 }
 0x47e   : > { %5148 = vtanh.f32 %v2074_v48  ;;  %v2078_v53 = vadd.f32 %v2077_v52, %v6480_v14  ;;  %v2079_v5 = vpop.f32.mrb[63].mxu1  ;;  %4380 = vmatprep.mubr.msk.bf16.mxu0 %vm993_vm0, %v2125_v50  ;;  %2938 = vmatprep.subr.bf16.mxu0 %v4797_v23 }
 0x47f   : > { %5150 = vtanh.f32 %v2076_v51  ;;  %v2080_v54 = vadd.f32 %v2079_v5, %v6483_v15  ;;  %2369 = vmatmul.mubr.bf16.gmra.mrb[84].mxu0 %v2124_v47  ;;  %v4773_v15 = vld [vmem:[%s7051_s12 + $0x54] ss:$8 sps:$4 sm:$0xff]  }
 0x480   : > { %v5141_v55 = vpop.eup %5140  ;;  %5152 = vtanh.f32 %v2078_v53  ;;  %2621 = vmatprep.subr.bf16.mxu1 %v4773_v15  ;;  %v2447_v53 = vld [vmem:[%s6581_s29] sm:$0xff] }
 0x481   : > { %v5143_v58 = vpop.eup %5142  ;;  %5154 = vtanh.f32 %v2080_v54  ;;  %2622 = vmatpush1.bf16.msra.mxu1 %v4771_v3  ;;  %2939 = vmatpush1.bf16.msra.mxu0 %v4795_v24 }
 0x482   : > { %v5145_v59 = vpop.eup %5144  ;;  %2623 = vmatprep.subr.bf16.mxu1 %v4776_v4  ;;  %2940 = vmatprep.subr.bf16.mxu0 %v4800_v25 }
 0x483   : > { %v5147_v6 = vpop.eup %5146  ;;  %v2126_v60 = vpack.c.bf16 %v5145_v59, %v5141_v55 }
 0x484   : > { %v2127_v61 = vpack.c.bf16 %v5147_v6, %v5143_v58  ;;  %v2448_v6 = vld [vmem:[%s6581_s29 + $0x8] sm:$0xff] }
 0x485   : > { %2624 = vmatpush1.bf16.msra.mxu1 %v4774_v7  ;;  %2941 = vmatpush1.bf16.msra.mxu0 %v4798_v26 }
 0x486   : > { %4381 = vmatprep.mubr.msk.bf16.mxu0 %vm993_vm0, %v2127_v61  ;;  %2625 = vmatprep.subr.bf16.mxu1 %v4779_v8 }
 0x487   : > { %2379 = vmatmul.mubr.bf16.gmra.mrb[88].mxu0 %v2126_v60 }
 0x488   : > { %v5149_v62 = vpop.eup %5148 }
 0x489   : > { %v5151_v14 = vpop.eup %5150  ;;  %2626 = vmatpush1.bf16.msra.mxu1 %v4777_v9 }
 0x48a   : > { %v5153_v63 = vpop.eup %5152 }
 0x48b   : > { %v5155_v0 = vpop.eup %5154  ;;  %v2128_v1 = vpack.c.bf16 %v5153_v63, %v5149_v62 }
 0x48c   : > { %v2129_v2 = vpack.c.bf16 %v5155_v0, %v5151_v14 }
 0x48e   : > { %4382 = vmatprep.mubr.msk.bf16.mxu0 %vm993_vm0, %v2129_v2 }
 0x48f   : > { %2389 = vmatmul.mubr.bf16.gmra.mrb[92].mxu0 %v2128_v1 }
 0x52a   : > { %v2320_v29 = vpop.f32.mrb[64].mxu0 }
 0x52b   : > { %v2321_v30 = vadd.f32 %v2320_v29, %v6551_v43  ;;  %v2322_v31 = vpop.f32.mrb[65].mxu0 }
 0x52c   : > { %v2323_v44 = vadd.f32 %v2322_v31, %v6554_v28  ;;  %v2324_v32 = vpop.f32.mrb[66].mxu0 }
 0x52d   : > { %4024 = vst [vmem:[%s6558_s2] sm:$0xff] %v2321_v30  ;;  %v2325_v33 = vadd.f32 %v2324_v32, %v6551_v43  ;;  %v2326_v34 = vpop.f32.mrb[67].mxu0 }
 0x52e   : > { %v2399_v35 = vmul.f32 0.5, %v2323_v44  ;;  %4025 = vst [vmem:[%s6558_s2 + $0x8] sm:$0xff] %v2323_v44  ;;  %v2327_v36 = vadd.f32 %v2326_v34, %v6554_v28 }
 0x52f   : > { %4026 = vst [vmem:[%s6558_s2 + $0x10] sm:$0xff] %v2325_v33 }
 0x530   : > { %v2415_v37 = vmul.f32 1.442695, %v2399_v35  ;;  %v2400_v38 = vmul.f32 0.5, %v2327_v36  ;;  %4027 = vst [vmem:[%s6558_s2 + $0x18] sm:$0xff] %v2327_v36  ;;  %v2451_v35 = vld [vmem:[%s6581_s29 + $0x20] sm:$0xff] }
 0x532   : > { %5156 = vpow2.f32 %v2415_v37  ;;  %v2417_v56 = vmul.f32 1.442695, %v2400_v38  ;;  %v2330_v39 = vpop.f32.mrb[68].mxu0 }
 0x533   : > { %v6567_v41 = vadd.f32 %v2330_v39, %v6551_v43  ;;  %v2332_v45 = vpop.f32.mrb[69].mxu0 }
 0x534   : > { %5158 = vpow2.f32 %v2417_v56  ;;  %v2333_v46 = vadd.f32 %v2332_v45, %v6554_v28  ;;  %v2334_v57 = vpop.f32.mrb[70].mxu0  ;;  %v2452_v45 = vld [vmem:[%s6581_s29 + $0x28] sm:$0xff] }
 0x535   : > { %4028 = vst [vmem:[%s6558_s2 + $0x20] sm:$0xff] %v6567_v41  ;;  %v6574_v47 = vadd.f32 %v2334_v57, %v6551_v43  ;;  %v2336_v48 = vpop.f32.mrb[71].mxu0 }
 0x536   : > { %v2401_v49 = vmul.f32 0.5, %v2333_v46  ;;  %4029 = vst [vmem:[%s6558_s2 + $0x28] sm:$0xff] %v2333_v46  ;;  %v2337_v50 = vadd.f32 %v2336_v48, %v6554_v28 }
 0x537   : > { %4030 = vst [vmem:[%s6558_s2 + $0x30] sm:$0xff] %v6574_v47 }
 0x538   : > { %v2419_v51 = vmul.f32 1.442695, %v2401_v49  ;;  %v2402_v52 = vmul.f32 0.5, %v2337_v50  ;;  %4031 = vst [vmem:[%s6558_s2 + $0x38] sm:$0xff] %v2337_v50 }
 0x53a   : > { %5160 = vpow2.f32 %v2419_v51  ;;  %v2421_v5 = vmul.f32 1.442695, %v2402_v52  ;;  %v2340_v54 = vpop.f32.mrb[72].mxu0 }
 0x53b   : > { %v6588_v55 = vadd.f32 %v2340_v54, %v6551_v43  ;;  %v2342_v58 = vpop.f32.mrb[73].mxu0 }
 0x53c   : > { %v5157_v59 = vpop.eup %5156  ;;  %5162 = vpow2.f32 %v2421_v5  ;;  %v2343_v60 = vadd.f32 %v2342_v58, %v6554_v28  ;;  %v2344_v61 = vpop.f32.mrb[74].mxu0 }
 0x53d   : > { %v2463_v62 = vmul.f32 %v5157_v59, %v2447_v53  ;;  %4032 = vst [vmem:[%s6558_s2 + $0x40] sm:$0xff] %v6588_v55  ;;  %v6595_v14 = vadd.f32 %v2344_v61, %v6551_v43  ;;  %v2346_v63 = vpop.f32.mrb[75].mxu0 }
 0x53e   : > { %v5159_v0 = vpop.eup %5158  ;;  %v2403_v1 = vmul.f32 0.5, %v2343_v60  ;;  %4033 = vst [vmem:[%s6558_s2 + $0x48] sm:$0xff] %v2343_v60  ;;  %v2347_v2 = vadd.f32 %v2346_v63, %v6554_v28 }
 0x53f   : > { %v2464_v15 = vmul.f32 %v5159_v0, %v2448_v6  ;;  %4034 = vst [vmem:[%s6558_s2 + $0x50] sm:$0xff] %v6595_v14  ;;  %v2479_v3 = vadd.f32 %v2463_v62, %v2321_v30  ;;  %v2453_v6 = vld [vmem:[%s6581_s29 + $0x30] sm:$0xff] }
 0x540   : > { %v2423_v4 = vmul.f32 1.442695, %v2403_v1  ;;  %v2404_v7 = vmul.f32 0.5, %v2347_v2  ;;  %4035 = vst [vmem:[%s6558_s2 + $0x58] sm:$0xff] %v2347_v2  ;;  %v2454_v1 = vld [vmem:[%s6581_s29 + $0x38] sm:$0xff] }
 0x541   : > { %v2480_v8 = vadd.f32 %v2464_v15, %v2325_v33 }
 0x542   : > { %5164 = vpow2.f32 %v2423_v4  ;;  %v2425_v9 = vmul.f32 1.442695, %v2404_v7  ;;  %v2350_v11 = vpop.f32.mrb[76].mxu0 }
 0x543   : > { %v6604_v13 = vadd.f32 %v2350_v11, %v6551_v43  ;;  %v2352_v16 = vpop.f32.mrb[77].mxu0  ;;  %v2495_v17 = vpack.c.bf16 %v2480_v8, %v2479_v3 }
 0x544   : > { %v5161_v18 = vpop.eup %5160  ;;  %5166 = vpow2.f32 %v2425_v9  ;;  %v2353_v19 = vadd.f32 %v2352_v16, %v6554_v28  ;;  %v2354_v20 = vpop.f32.mrb[78].mxu0 }
 0x545   : > { %4036 = vst [vmem:[%s6558_s2 + $0x60] sm:$0xff] %v6604_v13  ;;  %v6611_v22 = vadd.f32 %v2354_v20, %v6551_v43  ;;  %v2356_v23 = vpop.f32.mrb[79].mxu0  ;;  %2644 = vmatmul.mubr.bf16.vlgmr.msra.gmra.mrb[64].mxu1 %v2495_v17  ;;  %v2465_v24 = vmul.f32 %v5161_v18, %v2449_v12 }
 0x546   : > { %v5163_v25 = vpop.eup %5162  ;;  %v2405_v26 = vmul.f32 0.5, %v2353_v19  ;;  %4037 = vst [vmem:[%s6558_s2 + $0x68] sm:$0xff] %v2353_v19  ;;  %v2357_v27 = vadd.f32 %v2356_v23, %v6554_v28  ;;  %2653 = vmatprep.mubr.bf16.mxu1 %v5638_v10  ;;  %v2455_v19 = vld [vmem:[%s6581_s29 + $0x40] sm:$0xff] }
 0x547   : > { %4038 = vst [vmem:[%s6558_s2 + $0x70] sm:$0xff] %v6611_v22  ;;  %v2466_v29 = vmul.f32 %v5163_v25, %v2450_v21  ;;  %v2481_v30 = vadd.f32 %v2465_v24, %v6567_v41 }
 0x548   : > { %v2427_v31 = vmul.f32 1.442695, %v2405_v26  ;;  %v2406_v44 = vmul.f32 0.5, %v2357_v27  ;;  %4039 = vst [vmem:[%s6558_s2 + $0x78] sm:$0xff] %v2357_v27  ;;  %v2456_v26 = vld [vmem:[%s6581_s29 + $0x48] sm:$0xff] }
 0x549   : > { %v2482_v32 = vadd.f32 %v2466_v29, %v6574_v47 }
 0x54a   : > { %5168 = vpow2.f32 %v2427_v31  ;;  %v2429_v33 = vmul.f32 1.442695, %v2406_v44  ;;  %v2360_v34 = vpop.f32.mrb[80].mxu0 }
 0x54b   : > { %v6623_v36 = vadd.f32 %v2360_v34, %v6551_v43  ;;  %v2362_v37 = vpop.f32.mrb[81].mxu0  ;;  %v2496_v38 = vpack.c.bf16 %v2482_v32, %v2481_v30 }
 0x54c   : > { %v5165_v56 = vpop.eup %5164  ;;  %5170 = vpow2.f32 %v2429_v33  ;;  %v2363_v39 = vadd.f32 %v2362_v37, %v6554_v28  ;;  %v2364_v41 = vpop.f32.mrb[82].mxu0 }
 0x54d   : > { %4040 = vst [vmem:[%s6558_s2 + $0x80] sm:$0xff] %v6623_v36  ;;  %v6630_v46 = vadd.f32 %v2364_v41, %v6551_v43  ;;  %v2366_v57 = vpop.f32.mrb[83].mxu0  ;;  %2654 = vmatmul.mubr.bf16.gmra.mrb[68].mxu1 %v2496_v38  ;;  %v2467_v47 = vmul.f32 %v5165_v56, %v2451_v35 }
 0x54e   : > { %v5167_v48 = vpop.eup %5166  ;;  %v2407_v49 = vmul.f32 0.5, %v2363_v39  ;;  %4041 = vst [vmem:[%s6558_s2 + $0x88] sm:$0xff] %v2363_v39  ;;  %v2367_v50 = vadd.f32 %v2366_v57, %v6554_v28  ;;  %2663 = vmatprep.mubr.bf16.mxu1 %v5638_v10  ;;  %v2457_v39 = vld [vmem:[%s6581_s29 + $0x50] sm:$0xff] }
 0x54f   : > { %4042 = vst [vmem:[%s6558_s2 + $0x90] sm:$0xff] %v6630_v46  ;;  %v2468_v51 = vmul.f32 %v5167_v48, %v2452_v45  ;;  %v2483_v52 = vadd.f32 %v2467_v47, %v6588_v55 }
 0x550   : > { %v2431_v53 = vmul.f32 1.442695, %v2407_v49  ;;  %v2408_v5 = vmul.f32 0.5, %v2367_v50  ;;  %4043 = vst [vmem:[%s6558_s2 + $0x98] sm:$0xff] %v2367_v50  ;;  %v2458_v49 = vld [vmem:[%s6581_s29 + $0x58] sm:$0xff] }
 0x551   : > { %v2484_v54 = vadd.f32 %v2468_v51, %v6595_v14 }
 0x552   : > { %5172 = vpow2.f32 %v2431_v53  ;;  %v2433_v58 = vmul.f32 1.442695, %v2408_v5  ;;  %v2370_v59 = vpop.f32.mrb[84].mxu0 }
 0x553   : > { %v6642_v60 = vadd.f32 %v2370_v59, %v6551_v43  ;;  %v2372_v61 = vpop.f32.mrb[85].mxu0  ;;  %v2497_v62 = vpack.c.bf16 %v2484_v54, %v2483_v52 }
 0x554   : > { %v5169_v63 = vpop.eup %5168  ;;  %5174 = vpow2.f32 %v2433_v58  ;;  %v2373_v55 = vadd.f32 %v2372_v61, %v6554_v28  ;;  %v2374_v0 = vpop.f32.mrb[86].mxu0 }
 0x555   : > { %4044 = vst [vmem:[%s6558_s2 + $0xa0] sm:$0xff] %v6642_v60  ;;  %v6649_v14 = vadd.f32 %v2374_v0, %v6551_v43  ;;  %v2376_v2 = vpop.f32.mrb[87].mxu0  ;;  %2664 = vmatmul.mubr.bf16.gmra.mrb[72].mxu1 %v2497_v62  ;;  %v2469_v15 = vmul.f32 %v5169_v63, %v2453_v6  ;;  %v2459_v62 = vld [vmem:[%s6581_s29 + $0x60] sm:$0xff] }
 0x556   : > { %v5171_v3 = vpop.eup %5170  ;;  %v2409_v4 = vmul.f32 0.5, %v2373_v55  ;;  %4045 = vst [vmem:[%s6558_s2 + $0xa8] sm:$0xff] %v2373_v55  ;;  %v2377_v7 = vadd.f32 %v2376_v2, %v6554_v28  ;;  %2673 = vmatprep.mubr.bf16.mxu1 %v5638_v10 }
 0x557   : > { %4046 = vst [vmem:[%s6558_s2 + $0xb0] sm:$0xff] %v6649_v14  ;;  %v2470_v8 = vmul.f32 %v5171_v3, %v2454_v1  ;;  %v2485_v9 = vadd.f32 %v2469_v15, %v6604_v13  ;;  %v2461_v3 = vld [vmem:[%s6581_s29 + $0x70] sm:$0xff] }
 0x558   : > { %v2435_v11 = vmul.f32 1.442695, %v2409_v4  ;;  %v2410_v12 = vmul.f32 0.5, %v2377_v7  ;;  %4047 = vst [vmem:[%s6558_s2 + $0xb8] sm:$0xff] %v2377_v7  ;;  %v2462_v7 = vld [vmem:[%s6581_s29 + $0x78] sm:$0xff] }
 0x559   : > { %v2486_v16 = vadd.f32 %v2470_v8, %v6611_v22 }
 0x55a   : > { %5176 = vpow2.f32 %v2435_v11  ;;  %v2437_v17 = vmul.f32 1.442695, %v2410_v12  ;;  %v2380_v18 = vpop.f32.mrb[88].mxu0 }
 0x55b   : > { %v6661_v20 = vadd.f32 %v2380_v18, %v6551_v43  ;;  %v2382_v21 = vpop.f32.mrb[89].mxu0  ;;  %v2498_v23 = vpack.c.bf16 %v2486_v16, %v2485_v9  ;;  %v4801_v18 = vld [vmem:[#allocation2 + $0x70] ss:$8 sps:$4 sm:$0xff]  }
 0x55c   : > { %v5173_v24 = vpop.eup %5172  ;;  %5178 = vpow2.f32 %v2437_v17  ;;  %v2383_v13 = vadd.f32 %v2382_v21, %v6554_v28  ;;  %v2384_v25 = vpop.f32.mrb[90].mxu0  ;;  %v4806_v21 = vld [vmem:[#allocation2 + $0x84] ss:$8 sps:$4 sm:$0xff]  }
 0x55d   : > { %4048 = vst [vmem:[%s6558_s2 + $0xc0] sm:$0xff] %v6661_v20  ;;  %v2385_v22 = vadd.f32 %v2384_v25, %v6551_v43  ;;  %v2386_v27 = vpop.f32.mrb[91].mxu0  ;;  %2674 = vmatmul.mubr.bf16.gmra.mrb[76].mxu1 %v2498_v23  ;;  %v2471_v29 = vmul.f32 %v5173_v24, %v2455_v19  ;;  %v4803_v19 = vld [vmem:[#allocation2 + $0x74] ss:$8 sps:$4 sm:$0xff]   ;;  %v4807_v23 = vld [vmem:[#allocation2 + $0x90] ss:$8 sps:$4 sm:$0xff]  }
 0x55e   : > { %v5175_v30 = vpop.eup %5174  ;;  %v2411_v31 = vmul.f32 0.5, %v2383_v13  ;;  %4049 = vst [vmem:[%s6558_s2 + $0xc8] sm:$0xff] %v2383_v13  ;;  %v2387_v44 = vadd.f32 %v2386_v27, %v6554_v28  ;;  %2683 = vmatprep.mubr.bf16.mxu1 %v5638_v10  ;;  %2942 = vmatprep.subr.bf16.mxu0 %v4803_v19  ;;  %v4809_v24 = vld [vmem:[#allocation2 + $0x94] ss:$8 sps:$4 sm:$0xff]   ;;  %v4810_v13 = vld [vmem:[#allocation5] ss:$8 sps:$4 sm:$0xff]  }
 0x55f   : > { %4050 = vst [vmem:[%s6558_s2 + $0xd0] sm:$0xff] %v2385_v22  ;;  %v2472_v32 = vmul.f32 %v5175_v30, %v2456_v26  ;;  %v2487_v33 = vadd.f32 %v2471_v29, %v6623_v36  ;;  %2943 = vmatpush1.bf16.msra.mxu0 %v4801_v18  ;;  %v4812_v25 = vld [vmem:[#allocation5 + $0x4] ss:$8 sps:$4 sm:$0xff]   ;;  %v4813_v26 = vld [vmem:[#allocation5 + $0x10] ss:$8 sps:$4 sm:$0xff]  }
 0x560   : > { %v2439_v34 = vmul.f32 1.442695, %v2411_v31  ;;  %v2412_v35 = vmul.f32 0.5, %v2387_v44  ;;  %4051 = vst [vmem:[%s6558_s2 + $0xd8] sm:$0xff] %v2387_v44  ;;  %2944 = vmatprep.subr.bf16.mxu0 %v4806_v21  ;;  %3245 = vmatprep.subr.bf16.mxu1 %v4812_v25  ;;  %v4816_v27 = vld [vmem:[#allocation5 + $0x20] ss:$8 sps:$4 sm:$0xff]  }
 0x561   : > { %v2488_v37 = vadd.f32 %v2472_v32, %v6630_v46  ;;  %3246 = vmatpush1.bf16.msra.mxu1 %v4810_v13  ;;  %v4821_v29 = vld [vmem:[#allocation5 + $0x34] ss:$8 sps:$4 sm:$0xff]   ;;  %v4819_v30 = vld [vmem:[#allocation5 + $0x30] ss:$8 sps:$4 sm:$0xff]   ;;  %v4824_v31 = vld [vmem:[#allocation5 + $0x44] ss:$8 sps:$4 sm:$0xff]  }
 0x562   : > { %5180 = vpow2.f32 %v2439_v34  ;;  %v2441_v38 = vmul.f32 1.442695, %v2412_v35  ;;  %v2390_v56 = vpop.f32.mrb[92].mxu0  ;;  %v4822_v44 = vld [vmem:[#allocation5 + $0x40] ss:$8 sps:$4 sm:$0xff]  }
 0x563   : > { %v2391_v41 = vadd.f32 %v2390_v56, %v6551_v43  ;;  %v2392_v45 = vpop.f32.mrb[93].mxu0  ;;  %v2499_v57 = vpack.c.bf16 %v2488_v37, %v2487_v33  ;;  %v4827_v32 = vld [vmem:[#allocation5 + $0x54] ss:$8 sps:$4 sm:$0xff]   ;;  %v4825_v33 = vld [vmem:[#allocation5 + $0x50] ss:$8 sps:$4 sm:$0xff]  }
 0x564   : > { %v5177_v47 = vpop.eup %5176  ;;  %5182 = vpow2.f32 %v2441_v38  ;;  %v2393_v36 = vadd.f32 %v2392_v45, %v6554_v28  ;;  %v2394_v48 = vpop.f32.mrb[94].mxu0  ;;  %v4830_v34 = vld [vmem:[#allocation5 + $0x64] ss:$8 sps:$4 sm:$0xff]   ;;  %v4828_v35 = vld [vmem:[#allocation5 + $0x60] ss:$8 sps:$4 sm:$0xff]  }
 0x565   : > { %4052 = vst [vmem:[%s6558_s2 + $0xe0] sm:$0xff] %v2391_v41  ;;  %v2395_v46 = vadd.f32 %v2394_v48, %v6551_v43  ;;  %v2396_v50 = vpop.f32.mrb[95].mxu0  ;;  %2684 = vmatmul.mubr.bf16.gmra.mrb[80].mxu1 %v2499_v57  ;;  %v2473_v51 = vmul.f32 %v5177_v47, %v2457_v39  ;;  %v2519_v37 = vld [vmem:[%s7052_s13] sm:$0x3] }
 0x566   : > { %v5179_v52 = vpop.eup %5178  ;;  %v2413_v53 = vmul.f32 0.5, %v2393_v36  ;;  %4053 = vst [vmem:[%s6558_s2 + $0xe8] sm:$0xff] %v2393_v36  ;;  %v2397_v5 = vadd.f32 %v2396_v50, %v6554_v28  ;;  %2693 = vmatprep.mubr.bf16.mxu1 %v5638_v10  ;;  %v2460_v28 = vld [vmem:[%s6581_s29 + $0x68] sm:$0xff]  ;;  %v6699_v38 = vrot.slane %v2519_v37, %v6157_v40  ;;  %v6702_v56 = vrot.slane %v2519_v37, %v6162_v42  ;;  %s7121_s29 = sld [smem:[#allocation20_spill]] }
 0x567   : > { %4054 = vst [vmem:[%s6558_s2 + $0xf0] sm:$0xff] %v2395_v46  ;;  %v2474_v54 = vmul.f32 %v5179_v52, %v2458_v49  ;;  %v2489_v58 = vadd.f32 %v2473_v51, %v6642_v60 }
 0x568   : > { %v2443_v59 = vmul.f32 1.442695, %v2413_v53  ;;  %v2414_v6 = vmul.f32 0.5, %v2397_v5  ;;  %4055 = vst [vmem:[%s6558_s2 + $0xf8] sm:$0xff] %v2397_v5  ;;  %s5560_s2 = sshll.u32 %s5639_s5, 4  ;;  %s5561_s2 = int_to_ptr.vmem [resolvable:$false] %s5560_s2 }
 0x569   : > { %v2490_v43 = vadd.f32 %v2474_v54, %v6649_v14  ;;  %p5563_p6 = scmp.lt.s32.totalorder %s6898_s4, %s5561_s2 }
 0x56a   : > { %5184 = vpow2.f32 %v2443_v59  ;;  %v2445_v61 = vmul.f32 1.442695, %v2414_v6 }
 0x56b   : > { %v2500_v63 = vpack.c.bf16 %v2490_v43, %v2489_v58 }
 0x56c   : > { %v5181_v55 = vpop.eup %5180  ;;  %5186 = vpow2.f32 %v2445_v61  ;;  %p7123_p11 = scmp.ne.s32.totalorder %s7121_s29, 0 }
 0x56d   : > { %2694 = vmatmul.mubr.bf16.gmra.mrb[84].mxu1 %v2500_v63  ;;  %v2475_v0 = vmul.f32 %v5181_v55, %v2459_v62 }
 0x56e   : > { %v5183_v1 = vpop.eup %5182  ;;  %2703 = vmatprep.mubr.bf16.mxu1 %v5638_v10  ;;  %p5558_p13 = pnand %p5557_p8, %p7123_p11 }
 0x56f   : > { %v2476_v60 = vmul.f32 %v5183_v1, %v2460_v28  ;;  %v2491_v2 = vadd.f32 %v2475_v0, %v6661_v20  ;;  %v4804_v20 = vld [vmem:[#allocation2 + $0x80] ss:$8 sps:$4 sm:$0xff]  }
 0x570   : > { %2945 = vmatpush1.bf16.msra.mxu0 %v4804_v20  ;;  %p5559_p1 = pneg %p5558_p13 }
 0x571   : > { %v2492_v15 = vadd.f32 %v2476_v60, %v2385_v22  ;;  %2946 = vmatprep.subr.bf16.mxu0 %v4809_v24  ;;  %v4818_v22 = vld [vmem:[#allocation5 + $0x24] ss:$8 sps:$4 sm:$0xff]  }
 0x573   : > { %v2501_v4 = vpack.c.bf16 %v2492_v15, %v2491_v2 }
 0x574   : > { %v5185_v14 = vpop.eup %5184  ;;  %2947 = vmatpush1.bf16.msra.mxu0 %v4807_v23 }
 0x575   : > { %2704 = vmatmul.mubr.bf16.gmra.mrb[88].mxu1 %v2501_v4  ;;  %v2477_v8 = vmul.f32 %v5185_v14, %v2461_v3 }
 0x576   : > { %v5187_v9 = vpop.eup %5186  ;;  %2713 = vmatprep.mubr.bf16.mxu1 %v5638_v10  ;;  %v4815_v10 = vld [vmem:[#allocation5 + $0x14] ss:$8 sps:$4 sm:$0xff]  }
 0x577   : > { %v2478_v11 = vmul.f32 %v5187_v9, %v2462_v7  ;;  %v2493_v12 = vadd.f32 %v2477_v8, %v2391_v41  ;;  %3247 = vmatprep.subr.bf16.mxu1 %v4815_v10 }
 0x578   : > { %3248 = vmatpush1.bf16.msra.mxu1 %v4813_v26 }
 0x579   : > { %v2494_v16 = vadd.f32 %v2478_v11, %v2395_v46  ;;  %3249 = vmatprep.subr.bf16.mxu1 %v4818_v22 }
 0x57b   : > { %v2502_v17 = vpack.c.bf16 %v2494_v16, %v2493_v12 }
 0x57c   : > { %3250 = vmatpush1.bf16.msra.mxu1 %v4816_v27 }
 0x57d   : > { %2714 = vmatmul.mubr.bf16.gmra.mrb[92].mxu1 %v2502_v17  ;;  %3251 = vmatprep.subr.bf16.mxu1 %v4821_v29 }
 0x580   : > { %3252 = vmatpush1.bf16.msra.mxu1 %v4819_v30 }
 0x581   : > { %3253 = vmatprep.subr.bf16.mxu1 %v4824_v31 }
 0x584   : > { %3254 = vmatpush1.bf16.msra.mxu1 %v4822_v44 }
 0x585   : > { %3255 = vmatprep.subr.bf16.mxu1 %v4827_v32 }
 0x588   : > { %3256 = vmatpush1.bf16.msra.mxu1 %v4825_v33 }
 0x589   : > { %3257 = vmatprep.subr.bf16.mxu1 %v4830_v34 }
 0x58c   : > { %3258 = vmatpush1.bf16.msra.mxu1 %v4828_v35 }
 0x618   : > { %v2645_v39 = vpop.f32.mrb[64].mxu1 }
 0x619   : > { %v2646_v41 = vadd.f32 %v2645_v39, %v6699_v38  ;;  %v2647_v45 = vpop.f32.mrb[65].mxu1 }
 0x61a   : > { %v2648_v57 = vadd.f32 %v2647_v45, %v6702_v56  ;;  %v2649_v47 = vpop.f32.mrb[66].mxu1 }
 0x61b   : > { %5188 = vtanh.f32 %v2646_v41  ;;  %v2650_v36 = vadd.f32 %v2649_v47, %v6699_v38  ;;  %v2651_v48 = vpop.f32.mrb[67].mxu1 }
 0x61c   : > { %5190 = vtanh.f32 %v2648_v57  ;;  %v2652_v49 = vadd.f32 %v2651_v48, %v6702_v56 }
 0x61d   : > { %5192 = vtanh.f32 %v2650_v36 }
 0x61e   : > { %5194 = vtanh.f32 %v2652_v49 }
 0x620   : > { %v2655_v46 = vpop.f32.mrb[68].mxu1 }
 0x621   : > { %v2656_v50 = vadd.f32 %v2655_v46, %v6699_v38  ;;  %v2657_v51 = vpop.f32.mrb[69].mxu1 }
 0x622   : > { %v2658_v52 = vadd.f32 %v2657_v51, %v6702_v56  ;;  %v2659_v53 = vpop.f32.mrb[70].mxu1 }
 0x623   : > { %5196 = vtanh.f32 %v2656_v50  ;;  %v2660_v5 = vadd.f32 %v2659_v53, %v6699_v38  ;;  %v2661_v54 = vpop.f32.mrb[71].mxu1 }
 0x624   : > { %5198 = vtanh.f32 %v2658_v52  ;;  %v2662_v58 = vadd.f32 %v2661_v54, %v6702_v56 }
 0x625   : > { %v5189_v59 = vpop.eup %5188  ;;  %5200 = vtanh.f32 %v2660_v5 }
 0x626   : > { %v5191_v6 = vpop.eup %5190  ;;  %5202 = vtanh.f32 %v2662_v58 }
 0x627   : > { %v5193_v43 = vpop.eup %5192 }
 0x628   : > { %v5195_v61 = vpop.eup %5194  ;;  %v2665_v62 = vpop.f32.mrb[72].mxu1  ;;  %v2756_v63 = vpack.c.bf16 %v5193_v43, %v5189_v59 }
 0x629   : > { %v2666_v55 = vadd.f32 %v2665_v62, %v6699_v38  ;;  %v2667_v28 = vpop.f32.mrb[73].mxu1  ;;  %v2757_v0 = vpack.c.bf16 %v5195_v61, %v5191_v6 }
 0x62a   : > { %v2668_v1 = vadd.f32 %v2667_v28, %v6702_v56  ;;  %v2669_v60 = vpop.f32.mrb[74].mxu1 }
 0x62b   : > { %5204 = vtanh.f32 %v2666_v55  ;;  %v2670_v2 = vadd.f32 %v2669_v60, %v6699_v38  ;;  %v2671_v15 = vpop.f32.mrb[75].mxu1  ;;  %4419 = vmatprep.mubr.msk.bf16.mxu0 %vm993_vm0, %v2757_v0 }
 0x62c   : > { %5206 = vtanh.f32 %v2668_v1  ;;  %v2672_v3 = vadd.f32 %v2671_v15, %v6702_v56  ;;  %2961 = vmatmul.mubr.bf16.vlgmr.msra.gmra.mrb[96].mxu0 %v2756_v63 }
 0x62d   : > { %v5197_v4 = vpop.eup %5196  ;;  %5208 = vtanh.f32 %v2670_v2 }
 0x62e   : > { %v5199_v14 = vpop.eup %5198  ;;  %5210 = vtanh.f32 %v2672_v3 }
 0x62f   : > { %v5201_v7 = vpop.eup %5200 }
 0x630   : > { %v5203_v8 = vpop.eup %5202  ;;  %v2675_v9 = vpop.f32.mrb[76].mxu1  ;;  %v2758_v11 = vpack.c.bf16 %v5201_v7, %v5197_v4 }
 0x631   : > { %v2676_v12 = vadd.f32 %v2675_v9, %v6699_v38  ;;  %v2677_v16 = vpop.f32.mrb[77].mxu1  ;;  %v2759_v17 = vpack.c.bf16 %v5203_v8, %v5199_v14 }
 0x632   : > { %v2678_v18 = vadd.f32 %v2677_v16, %v6702_v56  ;;  %v2679_v19 = vpop.f32.mrb[78].mxu1 }
 0x633   : > { %5212 = vtanh.f32 %v2676_v12  ;;  %v2680_v20 = vadd.f32 %v2679_v19, %v6699_v38  ;;  %v2681_v21 = vpop.f32.mrb[79].mxu1  ;;  %4420 = vmatprep.mubr.msk.bf16.mxu0 %vm993_vm0, %v2759_v17 }
 0x634   : > { %5214 = vtanh.f32 %v2678_v18  ;;  %v2682_v23 = vadd.f32 %v2681_v21, %v6702_v56  ;;  %2971 = vmatmul.mubr.bf16.gmra.mrb[100].mxu0 %v2758_v11 }
 0x635   : > { %v5205_v24 = vpop.eup %5204  ;;  %5216 = vtanh.f32 %v2680_v20 }
 0x636   : > { %v5207_v13 = vpop.eup %5206  ;;  %5218 = vtanh.f32 %v2682_v23 }
 0x637   : > { %v5209_v25 = vpop.eup %5208 }
 0x638   : > { %v5211_v10 = vpop.eup %5210  ;;  %v2685_v26 = vpop.f32.mrb[80].mxu1  ;;  %v2760_v22 = vpack.c.bf16 %v5209_v25, %v5205_v24 }
 0x639   : > { %v2686_v27 = vadd.f32 %v2685_v26, %v6699_v38  ;;  %v2687_v29 = vpop.f32.mrb[81].mxu1  ;;  %v2761_v30 = vpack.c.bf16 %v5211_v10, %v5207_v13 }
 0x63a   : > { %v2688_v31 = vadd.f32 %v2687_v29, %v6702_v56  ;;  %v2689_v44 = vpop.f32.mrb[82].mxu1  ;;  %v4833_v29 = vld [vmem:[#allocation5 + $0x74] ss:$8 sps:$4 sm:$0xff]  }
 0x63b   : > { %5220 = vtanh.f32 %v2686_v27  ;;  %v2690_v32 = vadd.f32 %v2689_v44, %v6699_v38  ;;  %v2691_v33 = vpop.f32.mrb[83].mxu1  ;;  %4421 = vmatprep.mubr.msk.bf16.mxu0 %vm993_vm0, %v2761_v30  ;;  %3259 = vmatprep.subr.bf16.mxu1 %v4833_v29  ;;  %v4834_v30 = vld [vmem:[#allocation5 + $0x80] ss:$8 sps:$4 sm:$0xff]   ;;  %v4837_v44 = vld [vmem:[#allocation5 + $0x90] ss:$8 sps:$4 sm:$0xff]  }
 0x63c   : > { %5222 = vtanh.f32 %v2688_v31  ;;  %v2692_v34 = vadd.f32 %v2691_v33, %v6702_v56  ;;  %2981 = vmatmul.mubr.bf16.gmra.mrb[104].mxu0 %v2760_v22  ;;  %v4836_v31 = vld [vmem:[#allocation5 + $0x84] ss:$8 sps:$4 sm:$0xff]   ;;  %v4840_v33 = vld [vmem:[#allocation7] ss:$8 sps:$4 sm:$0xff]  }
 0x63d   : > { %v5213_v35 = vpop.eup %5212  ;;  %5224 = vtanh.f32 %v2690_v32  ;;  %v4839_v32 = vld [vmem:[#allocation5 + $0x94] ss:$8 sps:$4 sm:$0xff]  }
 0x63e   : > { %v5215_v37 = vpop.eup %5214  ;;  %5226 = vtanh.f32 %v2692_v34  ;;  %v4842_v34 = vld [vmem:[#allocation7 + $0x4] ss:$8 sps:$4 sm:$0xff]  }
 0x63f   : > { %v5217_v39 = vpop.eup %5216  ;;  %3562 = vmatprep.subr.bf16.mxu0 %v4842_v34 }
 0x640   : > { %v5219_v41 = vpop.eup %5218  ;;  %v2695_v45 = vpop.f32.mrb[84].mxu1  ;;  %v2762_v57 = vpack.c.bf16 %v5217_v39, %v5213_v35  ;;  %v4845_v35 = vld [vmem:[#allocation7 + $0x14] ss:$8 sps:$4 sm:$0xff]   ;;  %3563 = vmatpush1.bf16.msra.mxu0 %v4840_v33  ;;  %v4848_v39 = vld [vmem:[#allocation7 + $0x24] ss:$8 sps:$4 sm:$0xff]  }
 0x641   : > { %v2696_v47 = vadd.f32 %v2695_v45, %v6699_v38  ;;  %v2697_v36 = vpop.f32.mrb[85].mxu1  ;;  %v2763_v48 = vpack.c.bf16 %v5219_v41, %v5215_v37  ;;  %v4843_v37 = vld [vmem:[#allocation7 + $0x10] ss:$8 sps:$4 sm:$0xff]   ;;  %3564 = vmatprep.subr.bf16.mxu0 %v4845_v35  ;;  %v4846_v41 = vld [vmem:[#allocation7 + $0x20] ss:$8 sps:$4 sm:$0xff]  }
 0x642   : > { %v2698_v49 = vadd.f32 %v2697_v36, %v6702_v56  ;;  %v2699_v46 = vpop.f32.mrb[86].mxu1  ;;  %v4851_v45 = vld [vmem:[#allocation7 + $0x34] ss:$8 sps:$4 sm:$0xff]   ;;  %v4852_v36 = vld [vmem:[#allocation7 + $0x40] ss:$8 sps:$4 sm:$0xff]  }
 0x643   : > { %5228 = vtanh.f32 %v2696_v47  ;;  %v2700_v50 = vadd.f32 %v2699_v46, %v6699_v38  ;;  %v2701_v51 = vpop.f32.mrb[87].mxu1  ;;  %4422 = vmatprep.mubr.msk.bf16.mxu0 %vm993_vm0, %v2763_v48  ;;  %v4854_v47 = vld [vmem:[#allocation7 + $0x44] ss:$8 sps:$4 sm:$0xff]   ;;  %v4857_v48 = vld [vmem:[#allocation7 + $0x54] ss:$8 sps:$4 sm:$0xff]  }
 0x644   : > { %5230 = vtanh.f32 %v2698_v49  ;;  %v2702_v52 = vadd.f32 %v2701_v51, %v6702_v56  ;;  %2991 = vmatmul.mubr.bf16.gmra.mrb[108].mxu0 %v2762_v57  ;;  %v4849_v57 = vld [vmem:[#allocation7 + $0x30] ss:$8 sps:$4 sm:$0xff]   ;;  %v4860_v46 = vld [vmem:[#allocation7 + $0x64] ss:$8 sps:$4 sm:$0xff]   ;;  %v2792_v51 = vld [vmem:[%s7054_s15] sm:$0x3] }
 0x645   : > { %v5221_v53 = vpop.eup %5220  ;;  %5232 = vtanh.f32 %v2700_v50  ;;  %3565 = vmatpush1.bf16.msra.mxu0 %v4843_v37  ;;  %v4855_v49 = vld [vmem:[#allocation7 + $0x50] ss:$8 sps:$4 sm:$0xff]   ;;  %v4858_v50 = vld [vmem:[#allocation7 + $0x60] ss:$8 sps:$4 sm:$0xff]  }
 0x646   : > { %v5223_v5 = vpop.eup %5222  ;;  %5234 = vtanh.f32 %v2702_v52  ;;  %3566 = vmatprep.subr.bf16.mxu0 %v4848_v39  ;;  %v6748_v52 = vrot.slane %v2792_v51, %v6157_v40 }
 0x647   : > { %v5225_v54 = vpop.eup %5224 }
 0x648   : > { %v5227_v58 = vpop.eup %5226  ;;  %v2705_v59 = vpop.f32.mrb[88].mxu1  ;;  %v2764_v6 = vpack.c.bf16 %v5225_v54, %v5221_v53  ;;  %v6751_v53 = vrot.slane %v2792_v51, %v6162_v42 }
 0x649   : > { %v2706_v43 = vadd.f32 %v2705_v59, %v6699_v38  ;;  %v2707_v61 = vpop.f32.mrb[89].mxu1  ;;  %v2765_v62 = vpack.c.bf16 %v5227_v58, %v5223_v5  ;;  %3567 = vmatpush1.bf16.msra.mxu0 %v4846_v41 }
 0x64a   : > { %v2708_v63 = vadd.f32 %v2707_v61, %v6702_v56  ;;  %v2709_v55 = vpop.f32.mrb[90].mxu1  ;;  %3568 = vmatprep.subr.bf16.mxu0 %v4851_v45 }
 0x64b   : > { %5236 = vtanh.f32 %v2706_v43  ;;  %v2710_v28 = vadd.f32 %v2709_v55, %v6699_v38  ;;  %v2711_v0 = vpop.f32.mrb[91].mxu1  ;;  %4423 = vmatprep.mubr.msk.bf16.mxu0 %vm993_vm0, %v2765_v62 }
 0x64c   : > { %5238 = vtanh.f32 %v2708_v63  ;;  %v2712_v1 = vadd.f32 %v2711_v0, %v6702_v56  ;;  %3001 = vmatmul.mubr.bf16.gmra.mrb[112].mxu0 %v2764_v6 }
 0x64d   : > { %v5229_v60 = vpop.eup %5228  ;;  %5240 = vtanh.f32 %v2710_v28  ;;  %3569 = vmatpush1.bf16.msra.mxu0 %v4849_v57 }
 0x64e   : > { %v5231_v2 = vpop.eup %5230  ;;  %5242 = vtanh.f32 %v2712_v1  ;;  %3570 = vmatprep.subr.bf16.mxu0 %v4854_v47 }
 0x64f   : > { %v5233_v15 = vpop.eup %5232 }
 0x650   : > { %v5235_v3 = vpop.eup %5234  ;;  %v2715_v4 = vpop.f32.mrb[92].mxu1  ;;  %v2766_v14 = vpack.c.bf16 %v5233_v15, %v5229_v60 }
 0x651   : > { %v2716_v7 = vadd.f32 %v2715_v4, %v6699_v38  ;;  %v2717_v8 = vpop.f32.mrb[93].mxu1  ;;  %v2767_v9 = vpack.c.bf16 %v5235_v3, %v5231_v2  ;;  %3571 = vmatpush1.bf16.msra.mxu0 %v4852_v36 }
 0x652   : > { %v2718_v11 = vadd.f32 %v2717_v8, %v6702_v56  ;;  %v2719_v12 = vpop.f32.mrb[94].mxu1  ;;  %3572 = vmatprep.subr.bf16.mxu0 %v4857_v48 }
 0x653   : > { %5244 = vtanh.f32 %v2716_v7  ;;  %v2720_v16 = vadd.f32 %v2719_v12, %v6699_v38  ;;  %v2721_v17 = vpop.f32.mrb[95].mxu1  ;;  %4424 = vmatprep.mubr.msk.bf16.mxu0 %vm993_vm0, %v2767_v9 }
 0x654   : > { %5246 = vtanh.f32 %v2718_v11  ;;  %v2722_v18 = vadd.f32 %v2721_v17, %v6702_v56  ;;  %3011 = vmatmul.mubr.bf16.gmra.mrb[116].mxu0 %v2766_v14  ;;  %v4831_v56 = vld [vmem:[#allocation5 + $0x70] ss:$8 sps:$4 sm:$0xff]  }
 0x655   : > { %v5237_v19 = vpop.eup %5236  ;;  %5248 = vtanh.f32 %v2720_v16  ;;  %3260 = vmatpush1.bf16.msra.mxu1 %v4831_v56  ;;  %3573 = vmatpush1.bf16.msra.mxu0 %v4855_v49 }
 0x656   : > { %v5239_v20 = vpop.eup %5238  ;;  %5250 = vtanh.f32 %v2722_v18  ;;  %3261 = vmatprep.subr.bf16.mxu1 %v4836_v31  ;;  %3574 = vmatprep.subr.bf16.mxu0 %v4860_v46 }
 0x657   : > { %v5241_v21 = vpop.eup %5240 }
 0x658   : > { %v5243_v23 = vpop.eup %5242  ;;  %v2768_v24 = vpack.c.bf16 %v5241_v21, %v5237_v19 }
 0x659   : > { %v2769_v13 = vpack.c.bf16 %v5243_v23, %v5239_v20  ;;  %3262 = vmatpush1.bf16.msra.mxu1 %v4834_v30  ;;  %3575 = vmatpush1.bf16.msra.mxu0 %v4858_v50 }
 0x65a   : > { %3263 = vmatprep.subr.bf16.mxu1 %v4839_v32 }
 0x65b   : > { %4425 = vmatprep.mubr.msk.bf16.mxu0 %vm993_vm0, %v2769_v13 }
 0x65c   : > { %3021 = vmatmul.mubr.bf16.gmra.mrb[120].mxu0 %v2768_v24 }
 0x65d   : > { %v5245_v25 = vpop.eup %5244  ;;  %3264 = vmatpush1.bf16.msra.mxu1 %v4837_v44 }
 0x65e   : > { %v5247_v38 = vpop.eup %5246 }
 0x65f   : > { %v5249_v10 = vpop.eup %5248 }
 0x660   : > { %v5251_v26 = vpop.eup %5250  ;;  %v2770_v22 = vpack.c.bf16 %v5249_v10, %v5245_v25 }
 0x661   : > { %v2771_v27 = vpack.c.bf16 %v5251_v26, %v5247_v38 }
 0x663   : > { %4426 = vmatprep.mubr.msk.bf16.mxu0 %vm993_vm0, %v2771_v27 }
 0x664   : > { %3031 = vmatmul.mubr.bf16.gmra.mrb[124].mxu0 %v2770_v22 }
 0x6ff   : > { %v2962_v5 = vpop.f32.mrb[96].mxu0 }
 0x700   : > { %v2963_v54 = vadd.f32 %v2962_v5, %v6748_v52  ;;  %v2964_v58 = vpop.f32.mrb[97].mxu0 }
 0x701   : > { %v2965_v59 = vadd.f32 %v2964_v58, %v6751_v53  ;;  %v2966_v6 = vpop.f32.mrb[98].mxu0 }
 0x702   : > { %5252 = vtanh.f32 %v2963_v54  ;;  %v2967_v43 = vadd.f32 %v2966_v6, %v6748_v52  ;;  %v2968_v61 = vpop.f32.mrb[99].mxu0 }
 0x703   : > { %5254 = vtanh.f32 %v2965_v59  ;;  %v2969_v62 = vadd.f32 %v2968_v61, %v6751_v53 }
 0x704   : > { %5256 = vtanh.f32 %v2967_v43 }
 0x705   : > { %5258 = vtanh.f32 %v2969_v62 }
 0x707   : > { %v2972_v63 = vpop.f32.mrb[100].mxu0 }
 0x708   : > { %v2973_v55 = vadd.f32 %v2972_v63, %v6748_v52  ;;  %v2974_v28 = vpop.f32.mrb[101].mxu0 }
 0x709   : > { %v2975_v0 = vadd.f32 %v2974_v28, %v6751_v53  ;;  %v2976_v1 = vpop.f32.mrb[102].mxu0 }
 0x70a   : > { %5260 = vtanh.f32 %v2973_v55  ;;  %v2977_v60 = vadd.f32 %v2976_v1, %v6748_v52  ;;  %v2978_v2 = vpop.f32.mrb[103].mxu0 }
 0x70b   : > { %5262 = vtanh.f32 %v2975_v0  ;;  %v2979_v15 = vadd.f32 %v2978_v2, %v6751_v53 }
 0x70c   : > { %v5253_v3 = vpop.eup %5252  ;;  %5264 = vtanh.f32 %v2977_v60 }
 0x70d   : > { %v5255_v4 = vpop.eup %5254  ;;  %5266 = vtanh.f32 %v2979_v15 }
 0x70e   : > { %v5257_v14 = vpop.eup %5256 }
 0x70f   : > { %v5259_v7 = vpop.eup %5258  ;;  %v2982_v8 = vpop.f32.mrb[104].mxu0  ;;  %v3073_v9 = vpack.c.bf16 %v5257_v14, %v5253_v3 }
 0x710   : > { %v2983_v11 = vadd.f32 %v2982_v8, %v6748_v52  ;;  %v2984_v12 = vpop.f32.mrb[105].mxu0  ;;  %v3074_v16 = vpack.c.bf16 %v5259_v7, %v5255_v4 }
 0x711   : > { %v2985_v17 = vadd.f32 %v2984_v12, %v6751_v53  ;;  %v2986_v18 = vpop.f32.mrb[106].mxu0 }
 0x712   : > { %5268 = vtanh.f32 %v2983_v11  ;;  %v2987_v19 = vadd.f32 %v2986_v18, %v6748_v52  ;;  %v2988_v20 = vpop.f32.mrb[107].mxu0  ;;  %4447 = vmatprep.mubr.msk.bf16.mxu1 %vm993_vm0, %v3074_v16 }
 0x713   : > { %5270 = vtanh.f32 %v2985_v17  ;;  %v2989_v21 = vadd.f32 %v2988_v20, %v6751_v53  ;;  %3278 = vmatmul.mubr.bf16.vlgmr.msra.gmra.mrb[96].mxu1 %v3073_v9 }
 0x714   : > { %v5261_v23 = vpop.eup %5260  ;;  %5272 = vtanh.f32 %v2987_v19 }
 0x715   : > { %v5263_v24 = vpop.eup %5262  ;;  %5274 = vtanh.f32 %v2989_v21 }
 0x716   : > { %v5265_v13 = vpop.eup %5264 }
 0x717   : > { %v5267_v25 = vpop.eup %5266  ;;  %v2992_v38 = vpop.f32.mrb[108].mxu0  ;;  %v3075_v10 = vpack.c.bf16 %v5265_v13, %v5261_v23 }
 0x718   : > { %v2993_v26 = vadd.f32 %v2992_v38, %v6748_v52  ;;  %v2994_v22 = vpop.f32.mrb[109].mxu0  ;;  %v3076_v27 = vpack.c.bf16 %v5267_v25, %v5263_v24 }
 0x719   : > { %v2995_v56 = vadd.f32 %v2994_v22, %v6751_v53  ;;  %v2996_v29 = vpop.f32.mrb[110].mxu0 }
 0x71a   : > { %5276 = vtanh.f32 %v2993_v26  ;;  %v2997_v30 = vadd.f32 %v2996_v29, %v6748_v52  ;;  %v2998_v31 = vpop.f32.mrb[111].mxu0  ;;  %4448 = vmatprep.mubr.msk.bf16.mxu1 %vm993_vm0, %v3076_v27 }
 0x71b   : > { %5278 = vtanh.f32 %v2995_v56  ;;  %v2999_v44 = vadd.f32 %v2998_v31, %v6751_v53  ;;  %3288 = vmatmul.mubr.bf16.gmra.mrb[100].mxu1 %v3075_v10 }
 0x71c   : > { %v5269_v32 = vpop.eup %5268  ;;  %5280 = vtanh.f32 %v2997_v30 }
 0x71d   : > { %v5271_v33 = vpop.eup %5270  ;;  %5282 = vtanh.f32 %v2999_v44 }
 0x71e   : > { %v5273_v34 = vpop.eup %5272 }
 0x71f   : > { %v5275_v35 = vpop.eup %5274  ;;  %v3002_v37 = vpop.f32.mrb[112].mxu0  ;;  %v3077_v39 = vpack.c.bf16 %v5273_v34, %v5269_v32 }
 0x720   : > { %v3003_v41 = vadd.f32 %v3002_v37, %v6748_v52  ;;  %v3004_v45 = vpop.f32.mrb[113].mxu0  ;;  %v3078_v57 = vpack.c.bf16 %v5275_v35, %v5271_v33 }
 0x721   : > { %v3005_v47 = vadd.f32 %v3004_v45, %v6751_v53  ;;  %v3006_v36 = vpop.f32.mrb[114].mxu0  ;;  %v4863_v45 = vld [vmem:[#allocation7 + $0x74] ss:$8 sps:$4 sm:$0xff]  }
 0x722   : > { %5284 = vtanh.f32 %v3003_v41  ;;  %v3007_v48 = vadd.f32 %v3006_v36, %v6748_v52  ;;  %v3008_v49 = vpop.f32.mrb[115].mxu0  ;;  %4449 = vmatprep.mubr.msk.bf16.mxu1 %vm993_vm0, %v3078_v57  ;;  %3576 = vmatprep.subr.bf16.mxu0 %v4863_v45  ;;  %v4864_v57 = vld [vmem:[#allocation7 + $0x80] ss:$8 sps:$4 sm:$0xff]   ;;  %v4867_v36 = vld [vmem:[#allocation7 + $0x90] ss:$8 sps:$4 sm:$0xff]  }
 0x723   : > { %5286 = vtanh.f32 %v3005_v47  ;;  %v3009_v46 = vadd.f32 %v3008_v49, %v6751_v53  ;;  %3298 = vmatmul.mubr.bf16.gmra.mrb[104].mxu1 %v3077_v39  ;;  %v4866_v47 = vld [vmem:[#allocation7 + $0x84] ss:$8 sps:$4 sm:$0xff]   ;;  %v4870_v49 = vld [vmem:[#allocation8] ss:$8 sps:$4 sm:$0xff]  }
 0x724   : > { %v5277_v50 = vpop.eup %5276  ;;  %5288 = vtanh.f32 %v3007_v48  ;;  %v4869_v48 = vld [vmem:[#allocation7 + $0x94] ss:$8 sps:$4 sm:$0xff]  }
 0x725   : > { %v5279_v51 = vpop.eup %5278  ;;  %5290 = vtanh.f32 %v3009_v46  ;;  %v4872_v46 = vld [vmem:[#allocation8 + $0x4] ss:$8 sps:$4 sm:$0xff]  }
 0x726   : > { %v5281_v5 = vpop.eup %5280  ;;  %3879 = vmatprep.subr.bf16.mxu1 %v4872_v46 }
 0x727   : > { %v5283_v54 = vpop.eup %5282  ;;  %v3012_v58 = vpop.f32.mrb[116].mxu0  ;;  %v3079_v59 = vpack.c.bf16 %v5281_v5, %v5277_v50  ;;  %v4875_v50 = vld [vmem:[#allocation8 + $0x14] ss:$8 sps:$4 sm:$0xff]   ;;  %3880 = vmatpush1.bf16.msra.mxu1 %v4870_v49  ;;  %v4878_v5 = vld [vmem:[#allocation8 + $0x24] ss:$8 sps:$4 sm:$0xff]  }
 0x728   : > { %v3013_v6 = vadd.f32 %v3012_v58, %v6748_v52  ;;  %v3014_v43 = vpop.f32.mrb[117].mxu0  ;;  %v3080_v61 = vpack.c.bf16 %v5283_v54, %v5279_v51  ;;  %v4873_v51 = vld [vmem:[#allocation8 + $0x10] ss:$8 sps:$4 sm:$0xff]   ;;  %3881 = vmatprep.subr.bf16.mxu1 %v4875_v50  ;;  %v4876_v54 = vld [vmem:[#allocation8 + $0x20] ss:$8 sps:$4 sm:$0xff]  }
 0x729   : > { %v3015_v62 = vadd.f32 %v3014_v43, %v6751_v53  ;;  %v3016_v63 = vpop.f32.mrb[118].mxu0  ;;  %v4881_v58 = vld [vmem:[#allocation8 + $0x34] ss:$8 sps:$4 sm:$0xff]   ;;  %v4882_v43 = vld [vmem:[#allocation8 + $0x40] ss:$8 sps:$4 sm:$0xff]  }
 0x72a   : > { %5292 = vtanh.f32 %v3013_v6  ;;  %v3017_v55 = vadd.f32 %v3016_v63, %v6748_v52  ;;  %v3018_v28 = vpop.f32.mrb[119].mxu0  ;;  %4450 = vmatprep.mubr.msk.bf16.mxu1 %vm993_vm0, %v3080_v61  ;;  %v4884_v6 = vld [vmem:[#allocation8 + $0x44] ss:$8 sps:$4 sm:$0xff]   ;;  %v4887_v61 = vld [vmem:[#allocation8 + $0x54] ss:$8 sps:$4 sm:$0xff]  }
 0x72b   : > { %5294 = vtanh.f32 %v3015_v62  ;;  %v3019_v0 = vadd.f32 %v3018_v28, %v6751_v53  ;;  %3308 = vmatmul.mubr.bf16.gmra.mrb[108].mxu1 %v3079_v59  ;;  %v4879_v59 = vld [vmem:[#allocation8 + $0x30] ss:$8 sps:$4 sm:$0xff]   ;;  %v4890_v63 = vld [vmem:[#allocation8 + $0x64] ss:$8 sps:$4 sm:$0xff]   ;;  %v3109_v28 = vld [vmem:[%s7056_s17] sm:$0x3] }
 0x72c   : > { %v5285_v1 = vpop.eup %5284  ;;  %5296 = vtanh.f32 %v3017_v55  ;;  %3882 = vmatpush1.bf16.msra.mxu1 %v4873_v51  ;;  %v4885_v62 = vld [vmem:[#allocation8 + $0x50] ss:$8 sps:$4 sm:$0xff]   ;;  %v4888_v55 = vld [vmem:[#allocation8 + $0x60] ss:$8 sps:$4 sm:$0xff]  }
 0x72d   : > { %v5287_v60 = vpop.eup %5286  ;;  %5298 = vtanh.f32 %v3019_v0  ;;  %3883 = vmatprep.subr.bf16.mxu1 %v4878_v5  ;;  %v6797_v0 = vrot.slane %v3109_v28, %v6157_v40 }
 0x72e   : > { %v5289_v2 = vpop.eup %5288 }
 0x72f   : > { %v5291_v15 = vpop.eup %5290  ;;  %v3022_v3 = vpop.f32.mrb[120].mxu0  ;;  %v3081_v4 = vpack.c.bf16 %v5289_v2, %v5285_v1  ;;  %v6800_v1 = vrot.slane %v3109_v28, %v6162_v42 }
 0x730   : > { %v3023_v14 = vadd.f32 %v3022_v3, %v6748_v52  ;;  %v3024_v7 = vpop.f32.mrb[121].mxu0  ;;  %v3082_v8 = vpack.c.bf16 %v5291_v15, %v5287_v60  ;;  %3884 = vmatpush1.bf16.msra.mxu1 %v4876_v54 }
 0x731   : > { %v3025_v9 = vadd.f32 %v3024_v7, %v6751_v53  ;;  %v3026_v11 = vpop.f32.mrb[122].mxu0  ;;  %3885 = vmatprep.subr.bf16.mxu1 %v4881_v58 }
 0x732   : > { %5300 = vtanh.f32 %v3023_v14  ;;  %v3027_v12 = vadd.f32 %v3026_v11, %v6748_v52  ;;  %v3028_v16 = vpop.f32.mrb[123].mxu0  ;;  %4451 = vmatprep.mubr.msk.bf16.mxu1 %vm993_vm0, %v3082_v8 }
 0x733   : > { %5302 = vtanh.f32 %v3025_v9  ;;  %v3029_v17 = vadd.f32 %v3028_v16, %v6751_v53  ;;  %3318 = vmatmul.mubr.bf16.gmra.mrb[112].mxu1 %v3081_v4 }
 0x734   : > { %v5293_v18 = vpop.eup %5292  ;;  %5304 = vtanh.f32 %v3027_v12  ;;  %3886 = vmatpush1.bf16.msra.mxu1 %v4879_v59 }
 0x735   : > { %v5295_v19 = vpop.eup %5294  ;;  %5306 = vtanh.f32 %v3029_v17  ;;  %3887 = vmatprep.subr.bf16.mxu1 %v4884_v6 }
 0x736   : > { %v5297_v20 = vpop.eup %5296 }
 0x737   : > { %v5299_v21 = vpop.eup %5298  ;;  %v3032_v23 = vpop.f32.mrb[124].mxu0  ;;  %v3083_v24 = vpack.c.bf16 %v5297_v20, %v5293_v18 }
 0x738   : > { %v3033_v13 = vadd.f32 %v3032_v23, %v6748_v52  ;;  %v3034_v25 = vpop.f32.mrb[125].mxu0  ;;  %v3084_v38 = vpack.c.bf16 %v5299_v21, %v5295_v19  ;;  %3888 = vmatpush1.bf16.msra.mxu1 %v4882_v43 }
 0x739   : > { %v3035_v10 = vadd.f32 %v3034_v25, %v6751_v53  ;;  %v3036_v26 = vpop.f32.mrb[126].mxu0  ;;  %3889 = vmatprep.subr.bf16.mxu1 %v4887_v61 }
 0x73a   : > { %5308 = vtanh.f32 %v3033_v13  ;;  %v3037_v22 = vadd.f32 %v3036_v26, %v6748_v52  ;;  %v3038_v27 = vpop.f32.mrb[127].mxu0  ;;  %4452 = vmatprep.mubr.msk.bf16.mxu1 %vm993_vm0, %v3084_v38 }
 0x73b   : > { %5310 = vtanh.f32 %v3035_v10  ;;  %v3039_v56 = vadd.f32 %v3038_v27, %v6751_v53  ;;  %3328 = vmatmul.mubr.bf16.gmra.mrb[116].mxu1 %v3083_v24  ;;  %v4861_v53 = vld [vmem:[#allocation7 + $0x70] ss:$8 sps:$4 sm:$0xff]  }
 0x73c   : > { %v5301_v29 = vpop.eup %5300  ;;  %5312 = vtanh.f32 %v3037_v22  ;;  %3577 = vmatpush1.bf16.msra.mxu0 %v4861_v53  ;;  %3890 = vmatpush1.bf16.msra.mxu1 %v4885_v62 }
 0x73d   : > { %v5303_v30 = vpop.eup %5302  ;;  %5314 = vtanh.f32 %v3039_v56  ;;  %3578 = vmatprep.subr.bf16.mxu0 %v4866_v47  ;;  %3891 = vmatprep.subr.bf16.mxu1 %v4890_v63 }
 0x73e   : > { %v5305_v31 = vpop.eup %5304 }
 0x73f   : > { %v5307_v44 = vpop.eup %5306  ;;  %v3085_v32 = vpack.c.bf16 %v5305_v31, %v5301_v29 }
 0x740   : > { %v3086_v33 = vpack.c.bf16 %v5307_v44, %v5303_v30  ;;  %3579 = vmatpush1.bf16.msra.mxu0 %v4864_v57  ;;  %3892 = vmatpush1.bf16.msra.mxu1 %v4888_v55 }
 0x741   : > { %3580 = vmatprep.subr.bf16.mxu0 %v4869_v48 }
 0x742   : > { %4453 = vmatprep.mubr.msk.bf16.mxu1 %vm993_vm0, %v3086_v33 }
 0x743   : > { %3338 = vmatmul.mubr.bf16.gmra.mrb[120].mxu1 %v3085_v32 }
 0x744   : > { %v5309_v34 = vpop.eup %5308  ;;  %3581 = vmatpush1.bf16.msra.mxu0 %v4867_v36 }
 0x745   : > { %v5311_v52 = vpop.eup %5310 }
 0x746   : > { %v5313_v35 = vpop.eup %5312 }
 0x747   : > { %v5315_v37 = vpop.eup %5314  ;;  %v3087_v39 = vpack.c.bf16 %v5313_v35, %v5309_v34 }
 0x748   : > { %v3088_v41 = vpack.c.bf16 %v5315_v37, %v5311_v52 }
 0x74a   : > { %4454 = vmatprep.mubr.msk.bf16.mxu1 %vm993_vm0, %v3088_v41 }
 0x74b   : > { %3348 = vmatmul.mubr.bf16.gmra.mrb[124].mxu1 %v3087_v39 }
 0x7e6   : > { %v3279_v60 = vpop.f32.mrb[96].mxu1 }
 0x7e7   : > { %v3280_v2 = vadd.f32 %v3279_v60, %v6797_v0  ;;  %v3281_v15 = vpop.f32.mrb[97].mxu1 }
 0x7e8   : > { %v3282_v3 = vadd.f32 %v3281_v15, %v6800_v1  ;;  %v3283_v4 = vpop.f32.mrb[98].mxu1 }
 0x7e9   : > { %5316 = vtanh.f32 %v3280_v2  ;;  %v3284_v14 = vadd.f32 %v3283_v4, %v6797_v0  ;;  %v3285_v7 = vpop.f32.mrb[99].mxu1 }
 0x7ea   : > { %5318 = vtanh.f32 %v3282_v3  ;;  %v3286_v8 = vadd.f32 %v3285_v7, %v6800_v1 }
 0x7eb   : > { %5320 = vtanh.f32 %v3284_v14 }
 0x7ec   : > { %5322 = vtanh.f32 %v3286_v8 }
 0x7ee   : > { %v3289_v9 = vpop.f32.mrb[100].mxu1 }
 0x7ef   : > { %v3290_v11 = vadd.f32 %v3289_v9, %v6797_v0  ;;  %v3291_v12 = vpop.f32.mrb[101].mxu1 }
 0x7f0   : > { %v3292_v16 = vadd.f32 %v3291_v12, %v6800_v1  ;;  %v3293_v17 = vpop.f32.mrb[102].mxu1 }
 0x7f1   : > { %5324 = vtanh.f32 %v3290_v11  ;;  %v3294_v18 = vadd.f32 %v3293_v17, %v6797_v0  ;;  %v3295_v19 = vpop.f32.mrb[103].mxu1 }
 0x7f2   : > { %5326 = vtanh.f32 %v3292_v16  ;;  %v3296_v20 = vadd.f32 %v3295_v19, %v6800_v1 }
 0x7f3   : > { %v5317_v21 = vpop.eup %5316  ;;  %5328 = vtanh.f32 %v3294_v18 }
 0x7f4   : > { %v5319_v23 = vpop.eup %5318  ;;  %5330 = vtanh.f32 %v3296_v20 }
 0x7f5   : > { %v5321_v24 = vpop.eup %5320 }
 0x7f6   : > { %v5323_v13 = vpop.eup %5322  ;;  %v3299_v25 = vpop.f32.mrb[104].mxu1  ;;  %v3390_v38 = vpack.c.bf16 %v5321_v24, %v5317_v21 }
 0x7f7   : > { %v3300_v10 = vadd.f32 %v3299_v25, %v6797_v0  ;;  %v3301_v26 = vpop.f32.mrb[105].mxu1  ;;  %v3391_v22 = vpack.c.bf16 %v5323_v13, %v5319_v23 }
 0x7f8   : > { %v3302_v27 = vadd.f32 %v3301_v26, %v6800_v1  ;;  %v3303_v56 = vpop.f32.mrb[106].mxu1 }
 0x7f9   : > { %5332 = vtanh.f32 %v3300_v10  ;;  %v3304_v29 = vadd.f32 %v3303_v56, %v6797_v0  ;;  %v3305_v30 = vpop.f32.mrb[107].mxu1  ;;  %4475 = vmatprep.mubr.msk.bf16.mxu0 %vm993_vm0, %v3391_v22 }
 0x7fa   : > { %5334 = vtanh.f32 %v3302_v27  ;;  %v3306_v31 = vadd.f32 %v3305_v30, %v6800_v1  ;;  %3595 = vmatmul.mubr.bf16.vlgmr.msra.gmra.mrb[128].mxu0 %v3390_v38 }
 0x7fb   : > { %v5325_v44 = vpop.eup %5324  ;;  %5336 = vtanh.f32 %v3304_v29 }
 0x7fc   : > { %v5327_v32 = vpop.eup %5326  ;;  %5338 = vtanh.f32 %v3306_v31 }
 0x7fd   : > { %v5329_v33 = vpop.eup %5328 }
 0x7fe   : > { %v5331_v34 = vpop.eup %5330  ;;  %v3309_v52 = vpop.f32.mrb[108].mxu1  ;;  %v3392_v35 = vpack.c.bf16 %v5329_v33, %v5325_v44 }
 0x7ff   : > { %v3310_v37 = vadd.f32 %v3309_v52, %v6797_v0  ;;  %v3311_v39 = vpop.f32.mrb[109].mxu1  ;;  %v3393_v41 = vpack.c.bf16 %v5331_v34, %v5327_v32 }
 0x800   : > { %v3312_v53 = vadd.f32 %v3311_v39, %v6800_v1  ;;  %v3313_v45 = vpop.f32.mrb[110].mxu1 }
 0x801   : > { %5340 = vtanh.f32 %v3310_v37  ;;  %v3314_v57 = vadd.f32 %v3313_v45, %v6797_v0  ;;  %v3315_v47 = vpop.f32.mrb[111].mxu1  ;;  %4476 = vmatprep.mubr.msk.bf16.mxu0 %vm993_vm0, %v3393_v41 }
 0x802   : > { %5342 = vtanh.f32 %v3312_v53  ;;  %v3316_v36 = vadd.f32 %v3315_v47, %v6800_v1  ;;  %3605 = vmatmul.mubr.bf16.gmra.mrb[132].mxu0 %v3392_v35 }
 0x803   : > { %v5333_v48 = vpop.eup %5332  ;;  %5344 = vtanh.f32 %v3314_v57 }
 0x804   : > { %v5335_v49 = vpop.eup %5334  ;;  %5346 = vtanh.f32 %v3316_v36 }
 0x805   : > { %v5337_v46 = vpop.eup %5336 }
 0x806   : > { %v5339_v50 = vpop.eup %5338  ;;  %v3319_v51 = vpop.f32.mrb[112].mxu1  ;;  %v3394_v5 = vpack.c.bf16 %v5337_v46, %v5333_v48 }
 0x807   : > { %v3320_v54 = vadd.f32 %v3319_v51, %v6797_v0  ;;  %v3321_v58 = vpop.f32.mrb[113].mxu1  ;;  %v3395_v59 = vpack.c.bf16 %v5339_v50, %v5335_v49 }
 0x808   : > { %v3322_v6 = vadd.f32 %v3321_v58, %v6800_v1  ;;  %v3323_v43 = vpop.f32.mrb[114].mxu1  ;;  %v4893_v58 = vld [vmem:[#allocation8 + $0x74] ss:$8 sps:$4 sm:$0xff]  }
 0x809   : > { %5348 = vtanh.f32 %v3320_v54  ;;  %v3324_v61 = vadd.f32 %v3323_v43, %v6797_v0  ;;  %v3325_v62 = vpop.f32.mrb[115].mxu1  ;;  %4477 = vmatprep.mubr.msk.bf16.mxu0 %vm993_vm0, %v3395_v59  ;;  %3893 = vmatprep.subr.bf16.mxu1 %v4893_v58  ;;  %v4894_v59 = vld [vmem:[#allocation8 + $0x80] ss:$8 sps:$4 sm:$0xff]   ;;  %v4897_v43 = vld [vmem:[#allocation8 + $0x90] ss:$8 sps:$4 sm:$0xff]  }
 0x80a   : > { %5350 = vtanh.f32 %v3322_v6  ;;  %v3326_v63 = vadd.f32 %v3325_v62, %v6800_v1  ;;  %3615 = vmatmul.mubr.bf16.gmra.mrb[136].mxu0 %v3394_v5  ;;  %v4896_v6 = vld [vmem:[#allocation8 + $0x84] ss:$8 sps:$4 sm:$0xff]   ;;  %v3426_v62 = vld [vmem:[%s7120_s19] sm:$0x3]  ;;  %s5562_s19 = scalar_lea.vmem %s5561_s2, 8192 }
 0x80b   : > { %v5341_v55 = vpop.eup %5340  ;;  %5352 = vtanh.f32 %v3324_v61  ;;  %v4899_v61 = vld [vmem:[#allocation8 + $0x94] ss:$8 sps:$4 sm:$0xff]   ;;  %p5564_p9 = scmp.lt.s32.totalorder %s5562_s19, %s5556_s6 }
 0x80c   : > { %v5343_v28 = vpop.eup %5342  ;;  %5354 = vtanh.f32 %v3326_v63  ;;  %v6846_v63 = vrot.slane %v3426_v62, %v6157_v40 }
 0x80d   : > { %v5345_v60 = vpop.eup %5344  ;;  %p5565_p5 = por %p5564_p9, %p5563_p6 }
 0x80e   : > { %v5347_v2 = vpop.eup %5346  ;;  %v3329_v15 = vpop.f32.mrb[116].mxu1  ;;  %v3396_v3 = vpack.c.bf16 %v5345_v60, %v5341_v55  ;;  %v6849_v55 = vrot.slane %v3426_v62, %v6162_v42 }
 0x80f   : > { %v3330_v4 = vadd.f32 %v3329_v15, %v6797_v0  ;;  %v3331_v14 = vpop.f32.mrb[117].mxu1  ;;  %v3397_v7 = vpack.c.bf16 %v5347_v2, %v5343_v28  ;;  %p5566_p0 = pnand %p5565_p5, %p5559_p1 }
 0x810   : > { %v3332_v8 = vadd.f32 %v3331_v14, %v6800_v1  ;;  %v3333_v9 = vpop.f32.mrb[118].mxu1 }
 0x811   : > { %5356 = vtanh.f32 %v3330_v4  ;;  %v3334_v11 = vadd.f32 %v3333_v9, %v6797_v0  ;;  %v3335_v12 = vpop.f32.mrb[119].mxu1  ;;  %4478 = vmatprep.mubr.msk.bf16.mxu0 %vm993_vm0, %v3397_v7 }
 0x812   : > { %5358 = vtanh.f32 %v3332_v8  ;;  %v3336_v16 = vadd.f32 %v3335_v12, %v6800_v1  ;;  %3625 = vmatmul.mubr.bf16.gmra.mrb[140].mxu0 %v3396_v3 }
 0x813   : > { %v5349_v17 = vpop.eup %5348  ;;  %5360 = vtanh.f32 %v3334_v11 }
 0x814   : > { %v5351_v18 = vpop.eup %5350  ;;  %5362 = vtanh.f32 %v3336_v16 }
 0x815   : > { %v5353_v19 = vpop.eup %5352 }
 0x816   : > { %v5355_v20 = vpop.eup %5354  ;;  %v3339_v21 = vpop.f32.mrb[120].mxu1  ;;  %v3398_v23 = vpack.c.bf16 %v5353_v19, %v5349_v17 }
 0x817   : > { %v3340_v24 = vadd.f32 %v3339_v21, %v6797_v0  ;;  %v3341_v13 = vpop.f32.mrb[121].mxu1  ;;  %v3399_v25 = vpack.c.bf16 %v5355_v20, %v5351_v18 }
 0x818   : > { %v3342_v38 = vadd.f32 %v3341_v13, %v6800_v1  ;;  %v3343_v10 = vpop.f32.mrb[122].mxu1 }
 0x819   : > { %5364 = vtanh.f32 %v3340_v24  ;;  %v3344_v26 = vadd.f32 %v3343_v10, %v6797_v0  ;;  %v3345_v22 = vpop.f32.mrb[123].mxu1  ;;  %4479 = vmatprep.mubr.msk.bf16.mxu0 %vm993_vm0, %v3399_v25 }
 0x81a   : > { %5366 = vtanh.f32 %v3342_v38  ;;  %v3346_v27 = vadd.f32 %v3345_v22, %v6800_v1  ;;  %3635 = vmatmul.mubr.bf16.gmra.mrb[144].mxu0 %v3398_v23 }
 0x81b   : > { %v5357_v56 = vpop.eup %5356  ;;  %5368 = vtanh.f32 %v3344_v26 }
 0x81c   : > { %v5359_v29 = vpop.eup %5358  ;;  %5370 = vtanh.f32 %v3346_v27 }
 0x81d   : > { %v5361_v30 = vpop.eup %5360 }
 0x81e   : > { %v5363_v31 = vpop.eup %5362  ;;  %v3349_v44 = vpop.f32.mrb[124].mxu1  ;;  %v3400_v32 = vpack.c.bf16 %v5361_v30, %v5357_v56 }
 0x81f   : > { %v3350_v33 = vadd.f32 %v3349_v44, %v6797_v0  ;;  %v3351_v34 = vpop.f32.mrb[125].mxu1  ;;  %v3401_v52 = vpack.c.bf16 %v5363_v31, %v5359_v29 }
 0x820   : > { %v3352_v35 = vadd.f32 %v3351_v34, %v6800_v1  ;;  %v3353_v37 = vpop.f32.mrb[126].mxu1 }
 0x821   : > { %5372 = vtanh.f32 %v3350_v33  ;;  %v3354_v39 = vadd.f32 %v3353_v37, %v6797_v0  ;;  %v3355_v41 = vpop.f32.mrb[127].mxu1  ;;  %4480 = vmatprep.mubr.msk.bf16.mxu0 %vm993_vm0, %v3401_v52 }
 0x822   : > { %5374 = vtanh.f32 %v3352_v35  ;;  %v3356_v53 = vadd.f32 %v3355_v41, %v6800_v1  ;;  %3645 = vmatmul.mubr.bf16.gmra.mrb[148].mxu0 %v3400_v32  ;;  %v4891_v1 = vld [vmem:[#allocation8 + $0x70] ss:$8 sps:$4 sm:$0xff]  }
 0x823   : > { %v5365_v45 = vpop.eup %5364  ;;  %5376 = vtanh.f32 %v3354_v39  ;;  %3894 = vmatpush1.bf16.msra.mxu1 %v4891_v1 }
 0x824   : > { %v5367_v57 = vpop.eup %5366  ;;  %5378 = vtanh.f32 %v3356_v53  ;;  %3895 = vmatprep.subr.bf16.mxu1 %v4896_v6 }
 0x825   : > { %v5369_v47 = vpop.eup %5368 }
 0x826   : > { %v5371_v36 = vpop.eup %5370  ;;  %v3402_v48 = vpack.c.bf16 %v5369_v47, %v5365_v45 }
 0x827   : > { %v3403_v49 = vpack.c.bf16 %v5371_v36, %v5367_v57  ;;  %3896 = vmatpush1.bf16.msra.mxu1 %v4894_v59 }
 0x828   : > { %3897 = vmatprep.subr.bf16.mxu1 %v4899_v61 }
 0x829   : > { %4481 = vmatprep.mubr.msk.bf16.mxu0 %vm993_vm0, %v3403_v49 }
 0x82a   : > { %3655 = vmatmul.mubr.bf16.gmra.mrb[152].mxu0 %v3402_v48 }
 0x82b   : > { %v5373_v46 = vpop.eup %5372  ;;  %3898 = vmatpush1.bf16.msra.mxu1 %v4897_v43 }
 0x82c   : > { %v5375_v0 = vpop.eup %5374 }
 0x82d   : > { %v5377_v50 = vpop.eup %5376 }
 0x82e   : > { %v5379_v51 = vpop.eup %5378  ;;  %v3404_v5 = vpack.c.bf16 %v5377_v50, %v5373_v46 }
 0x82f   : > { %v3405_v54 = vpack.c.bf16 %v5379_v51, %v5375_v0 }
 0x831   : > { %4482 = vmatprep.mubr.msk.bf16.mxu0 %vm993_vm0, %v3405_v54 }
 0x832   : > { %3665 = vmatmul.mubr.bf16.gmra.mrb[156].mxu0 %v3404_v5 }
 0x8cd   : > { %v3596_v28 = vpop.f32.mrb[128].mxu0 }
 0x8ce   : > { %v3597_v60 = vadd.f32 %v3596_v28, %v6846_v63  ;;  %v3598_v2 = vpop.f32.mrb[129].mxu0 }
 0x8cf   : > { %v3599_v15 = vadd.f32 %v3598_v2, %v6849_v55  ;;  %v3600_v3 = vpop.f32.mrb[130].mxu0 }
 0x8d0   : > { %5380 = vtanh.f32 %v3597_v60  ;;  %v3601_v4 = vadd.f32 %v3600_v3, %v6846_v63  ;;  %v3602_v14 = vpop.f32.mrb[131].mxu0 }
 0x8d1   : > { %5382 = vtanh.f32 %v3599_v15  ;;  %v3603_v7 = vadd.f32 %v3602_v14, %v6849_v55 }
 0x8d2   : > { %5384 = vtanh.f32 %v3601_v4 }
 0x8d3   : > { %5386 = vtanh.f32 %v3603_v7 }
 0x8d5   : > { %v3606_v8 = vpop.f32.mrb[132].mxu0 }
 0x8d6   : > { %v3607_v9 = vadd.f32 %v3606_v8, %v6846_v63  ;;  %v3608_v11 = vpop.f32.mrb[133].mxu0 }
 0x8d7   : > { %v3609_v12 = vadd.f32 %v3608_v11, %v6849_v55  ;;  %v3610_v16 = vpop.f32.mrb[134].mxu0 }
 0x8d8   : > { %5388 = vtanh.f32 %v3607_v9  ;;  %v3611_v17 = vadd.f32 %v3610_v16, %v6846_v63  ;;  %v3612_v18 = vpop.f32.mrb[135].mxu0 }
 0x8d9   : > { %5390 = vtanh.f32 %v3609_v12  ;;  %v3613_v19 = vadd.f32 %v3612_v18, %v6849_v55 }
 0x8da   : > { %v5381_v20 = vpop.eup %5380  ;;  %5392 = vtanh.f32 %v3611_v17 }
 0x8db   : > { %v5383_v21 = vpop.eup %5382  ;;  %5394 = vtanh.f32 %v3613_v19 }
 0x8dc   : > { %v5385_v23 = vpop.eup %5384 }
 0x8dd   : > { %v5387_v24 = vpop.eup %5386  ;;  %v3616_v13 = vpop.f32.mrb[136].mxu0  ;;  %v3707_v25 = vpack.c.bf16 %v5385_v23, %v5381_v20 }
 0x8de   : > { %v3617_v38 = vadd.f32 %v3616_v13, %v6846_v63  ;;  %v3618_v10 = vpop.f32.mrb[137].mxu0  ;;  %v3708_v26 = vpack.c.bf16 %v5387_v24, %v5383_v21 }
 0x8df   : > { %v3619_v22 = vadd.f32 %v3618_v10, %v6849_v55  ;;  %v3620_v27 = vpop.f32.mrb[138].mxu0 }
 0x8e0   : > { %5396 = vtanh.f32 %v3617_v38  ;;  %v3621_v56 = vadd.f32 %v3620_v27, %v6846_v63  ;;  %v3622_v29 = vpop.f32.mrb[139].mxu0  ;;  %4503 = vmatprep.mubr.msk.bf16.mxu1 %vm993_vm0, %v3708_v26 }
 0x8e1   : > { %5398 = vtanh.f32 %v3619_v22  ;;  %v3623_v30 = vadd.f32 %v3622_v29, %v6849_v55  ;;  %3912 = vmatmul.mubr.bf16.vlgmr.msra.gmra.mrb[128].mxu1 %v3707_v25 }
 0x8e2   : > { %v5389_v31 = vpop.eup %5388  ;;  %5400 = vtanh.f32 %v3621_v56 }
 0x8e3   : > { %v5391_v44 = vpop.eup %5390  ;;  %5402 = vtanh.f32 %v3623_v30 }
 0x8e4   : > { %v5393_v32 = vpop.eup %5392 }
 0x8e5   : > { %v5395_v33 = vpop.eup %5394  ;;  %v3626_v34 = vpop.f32.mrb[140].mxu0  ;;  %v3709_v52 = vpack.c.bf16 %v5393_v32, %v5389_v31 }
 0x8e6   : > { %v3627_v35 = vadd.f32 %v3626_v34, %v6846_v63  ;;  %v3628_v37 = vpop.f32.mrb[141].mxu0  ;;  %v3710_v39 = vpack.c.bf16 %v5395_v33, %v5391_v44 }
 0x8e7   : > { %v3629_v41 = vadd.f32 %v3628_v37, %v6849_v55  ;;  %v3630_v53 = vpop.f32.mrb[142].mxu0 }
 0x8e8   : > { %5404 = vtanh.f32 %v3627_v35  ;;  %v3631_v45 = vadd.f32 %v3630_v53, %v6846_v63  ;;  %v3632_v57 = vpop.f32.mrb[143].mxu0  ;;  %4504 = vmatprep.mubr.msk.bf16.mxu1 %vm993_vm0, %v3710_v39 }
 0x8e9   : > { %5406 = vtanh.f32 %v3629_v41  ;;  %v3633_v47 = vadd.f32 %v3632_v57, %v6849_v55  ;;  %3922 = vmatmul.mubr.bf16.gmra.mrb[132].mxu1 %v3709_v52 }
 0x8ea   : > { %v5397_v36 = vpop.eup %5396  ;;  %5408 = vtanh.f32 %v3631_v45 }
 0x8eb   : > { %v5399_v48 = vpop.eup %5398  ;;  %5410 = vtanh.f32 %v3633_v47 }
 0x8ec   : > { %v5401_v49 = vpop.eup %5400 }
 0x8ed   : > { %v5403_v46 = vpop.eup %5402  ;;  %v3636_v0 = vpop.f32.mrb[144].mxu0  ;;  %v3711_v50 = vpack.c.bf16 %v5401_v49, %v5397_v36 }
 0x8ee   : > { %v3637_v51 = vadd.f32 %v3636_v0, %v6846_v63  ;;  %v3638_v5 = vpop.f32.mrb[145].mxu0  ;;  %v3712_v54 = vpack.c.bf16 %v5403_v46, %v5399_v48 }
 0x8ef   : > { %v3639_v1 = vadd.f32 %v3638_v5, %v6849_v55  ;;  %v3640_v58 = vpop.f32.mrb[146].mxu0 }
 0x8f0   : > { %5412 = vtanh.f32 %v3637_v51  ;;  %v3641_v59 = vadd.f32 %v3640_v58, %v6846_v63  ;;  %v3642_v6 = vpop.f32.mrb[147].mxu0  ;;  %4505 = vmatprep.mubr.msk.bf16.mxu1 %vm993_vm0, %v3712_v54 }
 0x8f1   : > { %5414 = vtanh.f32 %v3639_v1  ;;  %v3643_v43 = vadd.f32 %v3642_v6, %v6849_v55  ;;  %3932 = vmatmul.mubr.bf16.gmra.mrb[136].mxu1 %v3711_v50 }
 0x8f2   : > { %v5405_v61 = vpop.eup %5404  ;;  %5416 = vtanh.f32 %v3641_v59 }
 0x8f3   : > { %v5407_v62 = vpop.eup %5406  ;;  %5418 = vtanh.f32 %v3643_v43 }
 0x8f4   : > { %v5409_v28 = vpop.eup %5408 }
 0x8f5   : > { %v5411_v60 = vpop.eup %5410  ;;  %v3646_v2 = vpop.f32.mrb[148].mxu0  ;;  %v3713_v15 = vpack.c.bf16 %v5409_v28, %v5405_v61 }
 0x8f6   : > { %v3647_v3 = vadd.f32 %v3646_v2, %v6846_v63  ;;  %v3648_v4 = vpop.f32.mrb[149].mxu0  ;;  %v3714_v14 = vpack.c.bf16 %v5411_v60, %v5407_v62 }
 0x8f7   : > { %v3649_v7 = vadd.f32 %v3648_v4, %v6849_v55  ;;  %v3650_v8 = vpop.f32.mrb[150].mxu0 }
 0x8f8   : > { %5420 = vtanh.f32 %v3647_v3  ;;  %v3651_v9 = vadd.f32 %v3650_v8, %v6846_v63  ;;  %v3652_v11 = vpop.f32.mrb[151].mxu0  ;;  %4506 = vmatprep.mubr.msk.bf16.mxu1 %vm993_vm0, %v3714_v14 }
 0x8f9   : > { %5422 = vtanh.f32 %v3649_v7  ;;  %v3653_v12 = vadd.f32 %v3652_v11, %v6849_v55  ;;  %3942 = vmatmul.mubr.bf16.gmra.mrb[140].mxu1 %v3713_v15 }
 0x8fa   : > { %v5413_v16 = vpop.eup %5412  ;;  %5424 = vtanh.f32 %v3651_v9 }
 0x8fb   : > { %v5415_v17 = vpop.eup %5414  ;;  %5426 = vtanh.f32 %v3653_v12 }
 0x8fc   : > { %v5417_v18 = vpop.eup %5416 }
 0x8fd   : > { %v5419_v19 = vpop.eup %5418  ;;  %v3656_v20 = vpop.f32.mrb[152].mxu0  ;;  %v3715_v21 = vpack.c.bf16 %v5417_v18, %v5413_v16 }
 0x8fe   : > { %v3657_v23 = vadd.f32 %v3656_v20, %v6846_v63  ;;  %v3658_v24 = vpop.f32.mrb[153].mxu0  ;;  %v3716_v13 = vpack.c.bf16 %v5419_v19, %v5415_v17 }
 0x8ff   : > { %v3659_v25 = vadd.f32 %v3658_v24, %v6849_v55  ;;  %v3660_v38 = vpop.f32.mrb[154].mxu0 }
 0x900   : > { %5428 = vtanh.f32 %v3657_v23  ;;  %v3661_v10 = vadd.f32 %v3660_v38, %v6846_v63  ;;  %v3662_v26 = vpop.f32.mrb[155].mxu0  ;;  %4507 = vmatprep.mubr.msk.bf16.mxu1 %vm993_vm0, %v3716_v13 }
 0x901   : > { %5430 = vtanh.f32 %v3659_v25  ;;  %v3663_v22 = vadd.f32 %v3662_v26, %v6849_v55  ;;  %3952 = vmatmul.mubr.bf16.gmra.mrb[144].mxu1 %v3715_v21 }
 0x902   : > { %v5421_v27 = vpop.eup %5420  ;;  %5432 = vtanh.f32 %v3661_v10 }
 0x903   : > { %v5423_v56 = vpop.eup %5422  ;;  %5434 = vtanh.f32 %v3663_v22 }
 0x904   : > { %v5425_v29 = vpop.eup %5424 }
 0x905   : > { %v5427_v30 = vpop.eup %5426  ;;  %v3666_v31 = vpop.f32.mrb[156].mxu0  ;;  %v3717_v44 = vpack.c.bf16 %v5425_v29, %v5421_v27 }
 0x906   : > { %v3667_v32 = vadd.f32 %v3666_v31, %v6846_v63  ;;  %v3668_v33 = vpop.f32.mrb[157].mxu0  ;;  %v3718_v34 = vpack.c.bf16 %v5427_v30, %v5423_v56 }
 0x907   : > { %v3669_v52 = vadd.f32 %v3668_v33, %v6849_v55  ;;  %v3670_v35 = vpop.f32.mrb[158].mxu0 }
 0x908   : > { %5436 = vtanh.f32 %v3667_v32  ;;  %v3671_v37 = vadd.f32 %v3670_v35, %v6846_v63  ;;  %v3672_v39 = vpop.f32.mrb[159].mxu0  ;;  %4508 = vmatprep.mubr.msk.bf16.mxu1 %vm993_vm0, %v3718_v34 }
 0x909   : > { %5438 = vtanh.f32 %v3669_v52  ;;  %v3673_v41 = vadd.f32 %v3672_v39, %v6849_v55  ;;  %3962 = vmatmul.mubr.bf16.gmra.mrb[148].mxu1 %v3717_v44 }
 0x90a   : > { %v5429_v53 = vpop.eup %5428  ;;  %5440 = vtanh.f32 %v3671_v37 }
 0x90b   : > { %v5431_v45 = vpop.eup %5430  ;;  %5442 = vtanh.f32 %v3673_v41 }
 0x90c   : > { %v5433_v57 = vpop.eup %5432 }
 0x90d   : > { %v5435_v47 = vpop.eup %5434  ;;  %v3719_v36 = vpack.c.bf16 %v5433_v57, %v5429_v53 }
 0x90e   : > { %v3720_v48 = vpack.c.bf16 %v5435_v47, %v5431_v45 }
 0x910   : > { %4509 = vmatprep.mubr.msk.bf16.mxu1 %vm993_vm0, %v3720_v48 }
 0x911   : > { %3972 = vmatmul.mubr.bf16.gmra.mrb[152].mxu1 %v3719_v36 }
 0x912   : > { %v5437_v63 = vpop.eup %5436 }
 0x913   : > { %v5439_v49 = vpop.eup %5438 }
 0x914   : > { %v5441_v46 = vpop.eup %5440 }
 0x915   : > { %v5443_v55 = vpop.eup %5442  ;;  %v3721_v0 = vpack.c.bf16 %v5441_v46, %v5437_v63 }
 0x916   : > { %v3722_v50 = vpack.c.bf16 %v5443_v55, %v5439_v49 }
 0x918   : > { %4510 = vmatprep.mubr.msk.bf16.mxu1 %vm993_vm0, %v3722_v50 }
 0x919   : > { %3982 = vmatmul.mubr.bf16.gmra.mrb[156].mxu1 %v3721_v0 }
 0x91a   : > { %5569 = shalt.err (!%p5566_p0)
}
 0x91b   : > { %s5570_s23 = scalar_lea.hbm %s6896_s21, 4096  ;;  %s5574_s28 = scalar_lea.hbm %s7122_s3, 8192 }
 0x91c   : > { %p5571_p10 = scmp.ne.s32.totalorder %s6896_s21, %s5570_s23  ;;  %p5575_p4 = scmp.lt.u32.totalorder %s6896_s21, %s7122_s3 }
 0x91d   : > { %p5576_p12 = scmp.lt.u32.totalorder %s5574_s28, %s5570_s23  ;;  %p5578_p8 = scmp.lt.u32.totalorder %s5570_s23, %s6896_s21 }
 0x91e   : > { %p5572_p2 = pnand %p5571_p10, %p7123_p11 }
 0x91f   : > { %p5577_p7 = por %p5576_p12, %p5575_p4 }
 0x920   : > { %p5573_p3 = pneg %p5572_p2 }
 0x921   : > { %p5579_p13 = por %p5578_p8, %p5577_p7 }
 0x923   : > { %p5580_p1 = pnand %p5579_p13, %p5573_p3 }
 0x925   : > { %5583 = shalt.err (!%p5580_p1)
}
 0x926   : > { %s5640_s6 = smov 256   ;;  %s5641_s19 = smov 16  }
 0x927   : > { %4537 = dma.vmem_to_hbm [thread:$0]  (%p7123_p11), %s6898_s4, 4096, %s6896_s21, %s6902_s25, %s5640_s6, %s5640_s6, %s5641_s19  }
 0x928   : > { %s7124_s24 = sld [smem:[#allocation31_spill]]  ;;  %s7125_s23 = sshll.u32 %s7137_s22, 4 }
 0x929   : > { %s7126_s2 = sld [smem:[#allocation32_spill]] }
 0x92e   : > { %v3743_v51 = vld [vmem:[%s7124_s24] sm:$0x3] }
 0x92f   : > { %v6930_v5 = vrot.slane %v3743_v51, %v6157_v40  ;;  %v6933_v54 = vrot.slane %v3743_v51, %v6162_v42  ;;  %s6940_s0 = scalar_lea.vmem %s7126_s2, %s7125_s23 }
 0x9b4   : > { %v3913_v1 = vpop.f32.mrb[128].mxu1 }
 0x9b5   : > { %v3914_v58 = vadd.f32 %v3913_v1, %v6930_v5  ;;  %v3915_v59 = vpop.f32.mrb[129].mxu1 }
 0x9b6   : > { %v3916_v40 = vadd.f32 %v3915_v59, %v6933_v54  ;;  %v3917_v6 = vpop.f32.mrb[130].mxu1 }
 0x9b7   : > { %3992 = vst [vmem:[%s6940_s0] sm:$0xff] %v3914_v58  ;;  %v3918_v42 = vadd.f32 %v3917_v6, %v6930_v5  ;;  %v3919_v43 = vpop.f32.mrb[131].mxu1 }
 0x9b8   : > { %3993 = vst.msk [vmem:[%s6940_s0 + $0x8] sm:$0xff] %vm993_vm0, %v3916_v40  ;;  %v3920_v61 = vadd.f32 %v3919_v43, %v6933_v54 }
 0x9b9   : > { %3994 = vst [vmem:[%s6940_s0 + $0x10] sm:$0xff] %v3918_v42 }
 0x9ba   : > { %3995 = vst.msk [vmem:[%s6940_s0 + $0x18] sm:$0xff] %vm993_vm0, %v3920_v61 }
 0x9bc   : > { %v3923_v62 = vpop.f32.mrb[132].mxu1 }
 0x9bd   : > { %v3924_v28 = vadd.f32 %v3923_v62, %v6930_v5  ;;  %v3925_v60 = vpop.f32.mrb[133].mxu1 }
 0x9be   : > { %v3926_v2 = vadd.f32 %v3925_v60, %v6933_v54  ;;  %v3927_v15 = vpop.f32.mrb[134].mxu1 }
 0x9bf   : > { %3996 = vst [vmem:[%s6940_s0 + $0x20] sm:$0xff] %v3924_v28  ;;  %v3928_v3 = vadd.f32 %v3927_v15, %v6930_v5  ;;  %v3929_v4 = vpop.f32.mrb[135].mxu1 }
 0x9c0   : > { %3997 = vst.msk [vmem:[%s6940_s0 + $0x28] sm:$0xff] %vm993_vm0, %v3926_v2  ;;  %v3930_v14 = vadd.f32 %v3929_v4, %v6933_v54 }
 0x9c1   : > { %3998 = vst [vmem:[%s6940_s0 + $0x30] sm:$0xff] %v3928_v3 }
 0x9c2   : > { %3999 = vst.msk [vmem:[%s6940_s0 + $0x38] sm:$0xff] %vm993_vm0, %v3930_v14 }
 0x9c4   : > { %v3933_v7 = vpop.f32.mrb[136].mxu1 }
 0x9c5   : > { %v3934_v8 = vadd.f32 %v3933_v7, %v6930_v5  ;;  %v3935_v9 = vpop.f32.mrb[137].mxu1 }
 0x9c6   : > { %v3936_v11 = vadd.f32 %v3935_v9, %v6933_v54  ;;  %v3937_v12 = vpop.f32.mrb[138].mxu1 }
 0x9c7   : > { %4000 = vst [vmem:[%s6940_s0 + $0x40] sm:$0xff] %v3934_v8  ;;  %v3938_v16 = vadd.f32 %v3937_v12, %v6930_v5  ;;  %v3939_v17 = vpop.f32.mrb[139].mxu1 }
 0x9c8   : > { %4001 = vst.msk [vmem:[%s6940_s0 + $0x48] sm:$0xff] %vm993_vm0, %v3936_v11  ;;  %v3940_v18 = vadd.f32 %v3939_v17, %v6933_v54 }
 0x9c9   : > { %4002 = vst [vmem:[%s6940_s0 + $0x50] sm:$0xff] %v3938_v16 }
 0x9ca   : > { %4003 = vst.msk [vmem:[%s6940_s0 + $0x58] sm:$0xff] %vm993_vm0, %v3940_v18 }
 0x9cc   : > { %v3943_v19 = vpop.f32.mrb[140].mxu1 }
 0x9cd   : > { %v3944_v20 = vadd.f32 %v3943_v19, %v6930_v5  ;;  %v3945_v21 = vpop.f32.mrb[141].mxu1 }
 0x9ce   : > { %v3946_v23 = vadd.f32 %v3945_v21, %v6933_v54  ;;  %v3947_v24 = vpop.f32.mrb[142].mxu1 }
 0x9cf   : > { %4004 = vst [vmem:[%s6940_s0 + $0x60] sm:$0xff] %v3944_v20  ;;  %v3948_v13 = vadd.f32 %v3947_v24, %v6930_v5  ;;  %v3949_v25 = vpop.f32.mrb[143].mxu1 }
 0x9d0   : > { %4005 = vst.msk [vmem:[%s6940_s0 + $0x68] sm:$0xff] %vm993_vm0, %v3946_v23  ;;  %v3950_v38 = vadd.f32 %v3949_v25, %v6933_v54 }
 0x9d1   : > { %4006 = vst [vmem:[%s6940_s0 + $0x70] sm:$0xff] %v3948_v13 }
 0x9d2   : > { %4007 = vst.msk [vmem:[%s6940_s0 + $0x78] sm:$0xff] %vm993_vm0, %v3950_v38 }
 0x9d4   : > { %v3953_v10 = vpop.f32.mrb[144].mxu1 }
 0x9d5   : > { %v3954_v26 = vadd.f32 %v3953_v10, %v6930_v5  ;;  %v3955_v22 = vpop.f32.mrb[145].mxu1 }
 0x9d6   : > { %v3956_v27 = vadd.f32 %v3955_v22, %v6933_v54  ;;  %v3957_v56 = vpop.f32.mrb[146].mxu1 }
 0x9d7   : > { %4008 = vst [vmem:[%s6940_s0 + $0x80] sm:$0xff] %v3954_v26  ;;  %v3958_v29 = vadd.f32 %v3957_v56, %v6930_v5  ;;  %v3959_v30 = vpop.f32.mrb[147].mxu1 }
 0x9d8   : > { %4009 = vst.msk [vmem:[%s6940_s0 + $0x88] sm:$0xff] %vm993_vm0, %v3956_v27  ;;  %v3960_v31 = vadd.f32 %v3959_v30, %v6933_v54 }
 0x9d9   : > { %4010 = vst [vmem:[%s6940_s0 + $0x90] sm:$0xff] %v3958_v29 }
 0x9da   : > { %4011 = vst.msk [vmem:[%s6940_s0 + $0x98] sm:$0xff] %vm993_vm0, %v3960_v31 }
 0x9dc   : > { %v3963_v44 = vpop.f32.mrb[148].mxu1 }
 0x9dd   : > { %v3964_v32 = vadd.f32 %v3963_v44, %v6930_v5  ;;  %v3965_v33 = vpop.f32.mrb[149].mxu1 }
 0x9de   : > { %v3966_v34 = vadd.f32 %v3965_v33, %v6933_v54  ;;  %v3967_v52 = vpop.f32.mrb[150].mxu1 }
 0x9df   : > { %4012 = vst [vmem:[%s6940_s0 + $0xa0] sm:$0xff] %v3964_v32  ;;  %v3968_v35 = vadd.f32 %v3967_v52, %v6930_v5  ;;  %v3969_v37 = vpop.f32.mrb[151].mxu1 }
 0x9e0   : > { %4013 = vst.msk [vmem:[%s6940_s0 + $0xa8] sm:$0xff] %vm993_vm0, %v3966_v34  ;;  %v3970_v39 = vadd.f32 %v3969_v37, %v6933_v54 }
 0x9e1   : > { %4014 = vst [vmem:[%s6940_s0 + $0xb0] sm:$0xff] %v3968_v35 }
 0x9e2   : > { %4015 = vst.msk [vmem:[%s6940_s0 + $0xb8] sm:$0xff] %vm993_vm0, %v3970_v39 }
 0x9e4   : > { %v3973_v41 = vpop.f32.mrb[152].mxu1 }
 0x9e5   : > { %v3974_v53 = vadd.f32 %v3973_v41, %v6930_v5  ;;  %v3975_v45 = vpop.f32.mrb[153].mxu1 }
 0x9e6   : > { %v3976_v57 = vadd.f32 %v3975_v45, %v6933_v54  ;;  %v3977_v47 = vpop.f32.mrb[154].mxu1 }
 0x9e7   : > { %4016 = vst [vmem:[%s6940_s0 + $0xc0] sm:$0xff] %v3974_v53  ;;  %v3978_v36 = vadd.f32 %v3977_v47, %v6930_v5  ;;  %v3979_v48 = vpop.f32.mrb[155].mxu1 }
 0x9e8   : > { %4017 = vst.msk [vmem:[%s6940_s0 + $0xc8] sm:$0xff] %vm993_vm0, %v3976_v57  ;;  %v3980_v63 = vadd.f32 %v3979_v48, %v6933_v54 }
 0x9e9   : > { %4018 = vst [vmem:[%s6940_s0 + $0xd0] sm:$0xff] %v3978_v36 }
 0x9ea   : > { %4019 = vst.msk [vmem:[%s6940_s0 + $0xd8] sm:$0xff] %vm993_vm0, %v3980_v63 }
 0x9ec   : > { %v3983_v49 = vpop.f32.mrb[156].mxu1 }
 0x9ed   : > { %v3984_v46 = vadd.f32 %v3983_v49, %v6930_v5  ;;  %v3985_v55 = vpop.f32.mrb[157].mxu1 }
 0x9ee   : > { %v3986_v0 = vadd.f32 %v3985_v55, %v6933_v54  ;;  %v3987_v50 = vpop.f32.mrb[158].mxu1 }
 0x9ef   : > { %4020 = vst [vmem:[%s6940_s0 + $0xe0] sm:$0xff] %v3984_v46  ;;  %v3988_v51 = vadd.f32 %v3987_v50, %v6930_v5  ;;  %v3989_v1 = vpop.f32.mrb[159].mxu1 }
 0x9f0   : > { %4021 = vst.msk [vmem:[%s6940_s0 + $0xe8] sm:$0xff] %vm993_vm0, %v3986_v0  ;;  %v3990_v58 = vadd.f32 %v3989_v1, %v6933_v54 }
 0x9f1   : > { %4022 = vst [vmem:[%s6940_s0 + $0xf0] sm:$0xff] %v3988_v51 }
 0x9f2   : > { %4023 = vst.msk [vmem:[%s6940_s0 + $0xf8] sm:$0xff] %vm993_vm0, %v3990_v58 }
 0x9f3 PF: > { %s7127_s22 = sld [smem:[#allocation17_spill]]  ;;  %s7128_s24 = sld [smem:[#allocation15_spill]] }
 0x9f4   : > { %s7129_s29 = sld [smem:[#allocation21_spill]] }
 0x9f9   : > { %p4564_p11 = scmp.ge.s32.totalorder %s7127_s22, 2  ;;  %s4105_s4 = sand.u32 1, %s7128_s24  }
 0x9fa   : > { %p7130_p6 = scmp.ne.s32.totalorder %s7129_s29, 0  ;;  %s4106_s21 = scalar_lea.sflag [#allocation4], %s4105_s4 }
 0x9fc   : > { %p4553_p9 = pnand %p4564_p11, %p7130_p6 }
 0x9fe   : > { %5613 = dma.done.wait (!%p4553_p9), %s4106_s21, 4096  }
 0x9ff   : > { %5615 = vsyncadd (!%p4553_p9), %s4106_s21, 4294963200  ;;  %s7131_s25 = sld [smem:[#allocation18_spill]]  ;;  %s7132_s6 = sld [smem:[#allocation16_spill]] }
 0xa00   : > { %s7133_s24 = sld [smem:[#allocation19_spill]]  ;;  %s7134_s4 = smov %s5622_s30 }
 0xa05   : > { %p37_p5 = scmp.ge.s32.totalorder %s7131_s25, 4   ;;  %s7135_s30 = smov %s7132_s6 }
 0xa07   :  { %39 = sbr.rel (!%p37_p5) target bundleno = 19 (0x13), region = 175 }
 0xa0e   :  { %4111 = vsyncpa [#allocation3], 1 }
 0xa0f   :  { %4113 = vsyncpa [#allocation3 + $0x1], 1 }
 0xa10   :  { %4114 = vsyncpa [#allocation6], 1 }
 0xa11   :  { %4115 = vsyncpa [#allocation9], 1 }
 0xa12   :  { %4116 = vsyncpa [#allocation4], 1 }
 0xa13   :  { %4118 = vsyncpa [#allocation4 + $0x1], 1 }

</bundles_post_ra>
